<compile_context>
chip_gen: v7x
topology: tpu7x:2x2x1
jax: 0.10.0
libtpu: 0.0.40
codegen_flags: <defaults>
</compile_context>

<pallas_src>
import jax
import jax.numpy as jnp
from jax.experimental import pallas as pl
from jax.experimental.pallas import tpu as pltpu

EPS = 1e-5
LANE = 128


# ----------------------------------------------------------------------------
# Shared per-sample 3x3 conv body (pad -> im2col -> one big-K MXU matmul).
# ----------------------------------------------------------------------------
def _conv3x3_one_matmul(act_hwc, w_ref, pad_ref, col_ref):
    """3x3 'SAME' conv of one sample as a single K=9*CP MXU matmul.

    act_hwc : (H, W, CP) f32 value (input activation, BN/ReLU already applied)
    w_ref   : (9*CP, CP) Ref, tap-major conv weights (conv_dtype)
    pad_ref : (H+2, W+2, CP) conv_dtype scratch (spatially padded input)
    col_ref : (H*W, 9*CP)   conv_dtype scratch (im2col slab)
    returns : (H*W, CP) f32 conv output
    """
    H, W, CP = act_hwc.shape
    Hp, Wp = H + 2, W + 2
    M = H * W

    # Zero only the halo ring; the interior is fully overwritten below.
    # Rows are on the outer dim (no sublane-alignment constraint); columns are
    # zeroed 2-wide at even offsets so bf16 sublane packing stays aligned — the
    # extra interior columns (1 and Wp-2) are rewritten by the interior store.
    zrow = jnp.zeros((1, Wp, CP), pad_ref.dtype)
    pad_ref[0:1, :, :] = zrow
    pad_ref[Hp - 1:Hp, :, :] = zrow
    zcol = jnp.zeros((Hp, 2, CP), pad_ref.dtype)
    pad_ref[:, 0:2, :] = zcol
    pad_ref[:, Wp - 2:Wp, :] = zcol

    # Interior: single f32 -> conv_dtype cast on write.
    pad_ref[1:H + 1, 1:W + 1, :] = act_hwc.astype(pad_ref.dtype)

    # im2col: gather the 9 taps into one lane-aligned (M, 9*CP) slab so the
    # conv is ONE K=9*CP matmul (good K fill on the 256-deep MXU).  Copies are
    # already conv_dtype — no per-tap casts.
    for t in range(9):
        dy, dx = t // 3, t % 3
        col_ref[:, t * CP:(t + 1) * CP] = (
            pad_ref[dy:dy + H, dx:dx + W, :].reshape(M, CP))
    # TODO(synk): if VMEM-pressed (v7x 64 MiB) at big tiles, group taps by
    # kernel row (three K=3*CP matmuls) to shrink col_ref 3x.

    return jnp.dot(col_ref[...], w_ref[...], preferred_element_type=jnp.float32)


# ----------------------------------------------------------------------------
# Pass 1: conv1 + per-tile BN statistics.
# ----------------------------------------------------------------------------
def _conv_stats_kernel(x_ref, w_ref, y_ref, stats_ref, pad_ref, col_ref):
    _, H, W, CP = x_ref.shape
    acc = _conv3x3_one_matmul(x_ref[0], w_ref, pad_ref, col_ref)   # (H*W, CP) f32
    y_ref[0] = acc.reshape(H, W, CP)
    # Per-tile partial statistics; reduced across tiles in the wrapper so
    # training-mode batch statistics remain global under the grid.
    s = jnp.sum(acc, axis=0, keepdims=True)            # (1, CP)
    sq = jnp.sum(acc * acc, axis=0, keepdims=True)     # (1, CP)
    stats_ref[0:1, 0:1, :] = s.reshape(1, 1, CP)
    stats_ref[0:1, 1:2, :] = sq.reshape(1, 1, CP)


# ----------------------------------------------------------------------------
# Pass 2: bn1 (single FMA) -> relu -> conv2 + per-tile BN statistics.
# ----------------------------------------------------------------------------
def _bn_relu_conv_stats_kernel(y1_ref, sc_ref, sh_ref, w_ref,
                               y2_ref, stats_ref, pad_ref, col_ref):
    _, H, W, CP = y1_ref.shape
    # BatchNorm folded to one multiply-add per element, ReLU fused.
    h = jnp.maximum(y1_ref[0] * sc_ref[...] + sh_ref[...], 0.0)    # (H, W, CP)
    acc = _conv3x3_one_matmul(h, w_ref, pad_ref, col_ref)
    y2_ref[0] = acc.reshape(H, W, CP)
    s = jnp.sum(acc, axis=0, keepdims=True)
    sq = jnp.sum(acc * acc, axis=0, keepdims=True)
    stats_ref[0:1, 0:1, :] = s.reshape(1, 1, CP)
    stats_ref[0:1, 1:2, :] = sq.reshape(1, 1, CP)


# ----------------------------------------------------------------------------
# Pass 3: bn2 (single FMA) + residual add + relu (lane-dense store).
# ----------------------------------------------------------------------------
def _bn_add_relu_kernel(y2_ref, x_ref, sc_ref, sh_ref, o_ref):
    o_ref[...] = jnp.maximum(
        y2_ref[...] * sc_ref[...] + sh_ref[...] + x_ref[...], 0.0
    ).astype(o_ref.dtype)


# ----------------------------------------------------------------------------
# Wrapper.
# ----------------------------------------------------------------------------
def _fold_bn(ssum, ssq, gamma, beta, m):
    """Global training-mode BN folded to per-channel (scale, shift), f32."""
    mean = ssum / m
    var = jnp.maximum(ssq / m - mean * mean, 0.0)       # cancellation guard
    scale = gamma * jax.lax.rsqrt(var + EPS)
    shift = beta - mean * scale
    return scale.reshape(1, -1), shift.reshape(1, -1)


def basic_block_pallas(x_nhwc, w1_hwio, w2_hwio, g1, b1, g2, b2,
                       conv_dtype=jnp.bfloat16):
    N, H, W, C = x_nhwc.shape
    assert w1_hwio.shape == (3, 3, C, C) and w2_hwio.shape == (3, 3, C, C), \
        "stride=1 / downsample=None BasicBlock requires planes == inplanes"

    CP = ((C + LANE - 1) // LANE) * LANE            # lane-dense channel count
    pc = CP - C
    xp = jnp.pad(x_nhwc, ((0, 0), (0, 0), (0, 0), (0, pc))).astype(jnp.float32)

    def prep_w(w):                                  # (3,3,C,C) -> (9*CP, CP)
        wpad = jnp.pad(w, ((0, 0), (0, 0), (0, pc), (0, pc)))
        return wpad.reshape(9 * CP, CP).astype(conv_dtype)

    def prep_p(p):                                  # (C,) -> (CP,) f32
        return jnp.pad(p, (0, pc)).astype(jnp.float32)

    w1, w2 = prep_w(w1_hwio), prep_w(w2_hwio)
    g1p, b1p, g2p, b2p = prep_p(g1), prep_p(b1), prep_p(g2), prep_p(b2)

    M = N * H * W                                   # elements per channel
    Mt = H * W                                      # rows per grid step
    bpe = jnp.dtype(conv_dtype).itemsize

    # BlockSpecs: one batch sample per grid step; weights / BN vectors have
    # constant index_maps -> fetched once, VMEM-resident across all steps.
    tile_spec = pl.BlockSpec((1, H, W, CP), lambda n: (n, 0, 0, 0))
    w_spec = pl.BlockSpec((9 * CP, CP), lambda n: (0, 0))
    vec_spec = pl.BlockSpec((1, CP), lambda n: (0, 0))
    stats_spec = pl.BlockSpec((1, 2, CP), lambda n: (n, 0, 0))

    conv_scratch = [
        pltpu.VMEM((H + 2, W + 2, CP), conv_dtype),   # padded conv input
        pltpu.VMEM((Mt, 9 * CP), conv_dtype),         # im2col slab
    ]

    # Per-generation VMEM budgeting: scratch + resident weights + ~double-
    # buffered f32 I/O tiles.  Cap at 48 MiB so it also fits v7x (64 MiB).
    est = ((H + 2) * (W + 2) * CP * bpe + Mt * 9 * CP * bpe
           + 9 * CP * CP * bpe + 4 * Mt * CP * 4)
    vmem_limit = int(min(max(2 * est, 32 << 20), 48 << 20))

    cparams = pltpu.CompilerParams(
        dimension_semantics=("parallel",),   # v7x: both TensorCores split N
        vmem_limit_bytes=vmem_limit)

    conv_cost = pl.CostEstimate(
        flops=2 * M * (9 * CP) * CP, transcendentals=0,
        bytes_accessed=2 * M * CP * 4 + 9 * CP * CP * bpe + N * 2 * CP * 4)

    # ---- pass 1: conv1 + partial BN1 statistics ----
    y1, st1 = pl.pallas_call(
        _conv_stats_kernel,
        grid=(N,),
        in_specs=[tile_spec, w_spec],
        out_specs=(tile_spec, stats_spec),
        out_shape=(jax.ShapeDtypeStruct((N, H, W, CP), jnp.float32),
                   jax.ShapeDtypeStruct((N, 2, CP), jnp.float32)),
        scratch_shapes=conv_scratch,
        compiler_params=cparams,
        cost_estimate=conv_cost,
    )(xp, w1)

    sc1, sh1 = _fold_bn(st1[:, 0, :].sum(0), st1[:, 1, :].sum(0), g1p, b1p, M)

    # ---- pass 2: bn1 -> relu -> conv2 + partial BN2 statistics ----
    y2, st2 = pl.pallas_call(
        _bn_relu_conv_stats_kernel,
        grid=(N,),
        in_specs=[tile_spec, vec_spec, vec_spec, w_spec],
        out_specs=(tile_spec, stats_spec),
        out_shape=(jax.ShapeDtypeStruct((N, H, W, CP), jnp.float32),
                   jax.ShapeDtypeStruct((N, 2, CP), jnp.float32)),
        scratch_shapes=conv_scratch,
        compiler_params=cparams,
        cost_estimate=conv_cost,
    )(y1, sc1, sh1, w2)

    sc2, sh2 = _fold_bn(st2[:, 0, :].sum(0), st2[:, 1, :].sum(0), g2p, b2p, M)

    # ---- pass 3: bn2 + residual add + relu ----
    out = pl.pallas_call(
        _bn_add_relu_kernel,
        grid=(N,),
        in_specs=[tile_spec, tile_spec, vec_spec, vec_spec],
        out_specs=tile_spec,
        out_shape=jax.ShapeDtypeStruct((N, H, W, CP), jnp.float32),
        compiler_params=cparams,
    )(y2, xp, sc2, sh2)

    # Lane-dense padded store in the kernel; slice back to true C here.
    return out[..., :C]


# ----------------------------------------------------------------------------
# Pure-JAX f32 reference (NHWC layout, PyTorch training-mode semantics).
# ----------------------------------------------------------------------------
def basic_block_ref(x_nhwc, w1_hwio, w2_hwio, g1, b1, g2, b2):
    dn = jax.lax.conv_dimension_numbers(x_nhwc.shape, w1_hwio.shape,
                                        ("NHWC", "HWIO", "NHWC"))
    y = jax.lax.conv_general_dilated(x_nhwc, w1_hwio, (1, 1), "SAME",
                                     dimension_numbers=dn)
    m = y.mean(axis=(0, 1, 2))
    v = ((y - m) ** 2).mean(axis=(0, 1, 2))
    y = (y - m) / jnp.sqrt(v + EPS) * g1 + b1
    y = jnp.maximum(y, 0.0)
    y2 = jax.lax.conv_general_dilated(y, w2_hwio, (1, 1), "SAME",
                                      dimension_numbers=dn)
    m2 = y2.mean(axis=(0, 1, 2))
    v2 = ((y2 - m2) ** 2).mean(axis=(0, 1, 2))
    y2 = (y2 - m2) / jnp.sqrt(v2 + EPS) * g2 + b2
    return jnp.maximum(y2 + x_nhwc, 0.0)


if __name__ == "__main__":
    # BasicBlock(inplanes=4, planes=4, stride=1, downsample=None)
    N, C, H, W = 2, 4, 16, 16
    key = jax.random.PRNGKey(0)
    k0, k1, k2, k3, k4, k5, k6 = jax.random.split(key, 7)

    x_nchw = jax.random.normal(k0, (N, C, H, W), jnp.float32)      # PyTorch layout
    w1 = 0.1 * jax.random.normal(k1, (3, 3, C, C), jnp.float32)    # HWIO
    w2 = 0.1 * jax.random.normal(k2, (3, 3, C, C), jnp.float32)    # HWIO
    g1 = 1.0 + 0.05 * jax.random.normal(k3, (C,), jnp.float32)
    b1 = 0.05 * jax.random.normal(k4, (C,), jnp.float32)
    g2 = 1.0 + 0.05 * jax.random.normal(k5, (C,), jnp.float32)
    b2 = 0.05 * jax.random.normal(k6, (C,), jnp.float32)

    x_nhwc = jnp.transpose(x_nchw, (0, 2, 3, 1))   # NCHW (PyTorch) -> NHWC

    out = basic_block_pallas(x_nhwc, w1, w2, g1, b1, g2, b2)
    out = jax.block_until_ready(out)

    ref = basic_block_ref(x_nhwc, w1, w2, g1, b1, g2, b2)
    # bf16 MXU operands (f32 accumulation) dominate the error vs the f32 ref;
    # pass conv_dtype=jnp.float32 for a tight-tolerance mode.
    assert jnp.allclose(out, ref, atol=5e-2, rtol=5e-2), \
        f"max err = {jnp.max(jnp.abs(out - ref))}"

    _ = jnp.transpose(out, (0, 3, 1, 2))           # back to NCHW if desired
    print("KERNEL_OK")
</pallas_src>

<mosaic_0001>
module attributes {stable_mosaic.version = 11 : i64} {
  func.func @_conv_stats_kernel(%arg0: i32, %arg1: memref<1x16x16x128xf32, #tpu.memory_space<vmem>>, %arg2: memref<1152x128xbf16, #tpu.memory_space<vmem>>, %arg3: memref<1x16x16x128xf32, #tpu.memory_space<vmem>>, %arg4: memref<1x2x128xf32, #tpu.memory_space<vmem>>, %arg5: memref<18x18x128xbf16, #tpu.memory_space<vmem>>, %arg6: memref<256x1152xbf16, #tpu.memory_space<vmem>>) attributes {dimension_semantics = [#tpu.dimension_semantics<parallel>], iteration_bounds = array<i64: 2>, scalar_prefetch = 0 : i64, scratch_operands = 2 : i64, tpu.core_type = #tpu.core_type<tc>, window_params = [{transform_indices = @transform_0, window_bounds = array<i64: 1, 16, 16, 128>}, {pipeline_mode = #tpu.pipeline_mode<synchronous>, transform_indices = @transform_1, window_bounds = array<i64: 1152, 128>}, {transform_indices = @transform_2, window_bounds = array<i64: 1, 16, 16, 128>}, {transform_indices = @transform_3, window_bounds = array<i64: 1, 2, 128>}]} {
    %c0 = arith.constant 0 : index
    %c0_0 = arith.constant 0 : index
    %c0_1 = arith.constant 0 : index
    %c0_2 = arith.constant 0 : index
    %0 = vector.load %arg1[%c0, %c0_0, %c0_1, %c0_2] : memref<1x16x16x128xf32, #tpu.memory_space<vmem>>, vector<1x16x16x128xf32>
    %1 = vector.shape_cast %0 : vector<1x16x16x128xf32> to vector<16x16x128xf32>
    %cst = arith.constant 0.000000e+00 : bf16
    %2 = vector.broadcast %cst : bf16 to vector<1x18x128xbf16>
    %c0_3 = arith.constant 0 : index
    %c0_4 = arith.constant 0 : index
    %c0_5 = arith.constant 0 : index
    %3 = vector.load %arg5[%c0_3, %c0_4, %c0_5] : memref<18x18x128xbf16, #tpu.memory_space<vmem>>, vector<1x18x128xbf16>
    tpu.vector_store %arg5[%c0_3, %c0_4, %c0_5], %2 {strides = array<i32>} : memref<18x18x128xbf16, #tpu.memory_space<vmem>>, vector<1x18x128xbf16>,
    %c17 = arith.constant 17 : index
    %c0_6 = arith.constant 0 : index
    %c0_7 = arith.constant 0 : index
    %4 = vector.load %arg5[%c17, %c0_6, %c0_7] : memref<18x18x128xbf16, #tpu.memory_space<vmem>>, vector<1x18x128xbf16>
    tpu.vector_store %arg5[%c17, %c0_6, %c0_7], %2 {strides = array<i32>} : memref<18x18x128xbf16, #tpu.memory_space<vmem>>, vector<1x18x128xbf16>,
    %cst_8 = arith.constant 0.000000e+00 : bf16
    %5 = vector.broadcast %cst_8 : bf16 to vector<18x2x128xbf16>
    %c0_9 = arith.constant 0 : index
    %c0_10 = arith.constant 0 : index
    %c0_11 = arith.constant 0 : index
    %6 = vector.load %arg5[%c0_9, %c0_10, %c0_11] : memref<18x18x128xbf16, #tpu.memory_space<vmem>>, vector<18x2x128xbf16>
    tpu.vector_store %arg5[%c0_9, %c0_10, %c0_11], %5 {strides = array<i32>} : memref<18x18x128xbf16, #tpu.memory_space<vmem>>, vector<18x2x128xbf16>,
    %c0_12 = arith.constant 0 : index
    %c16 = arith.constant 16 : index
    %c0_13 = arith.constant 0 : index
    %7 = vector.load %arg5[%c0_12, %c16, %c0_13] : memref<18x18x128xbf16, #tpu.memory_space<vmem>>, vector<18x2x128xbf16>
    tpu.vector_store %arg5[%c0_12, %c16, %c0_13], %5 {strides = array<i32>} : memref<18x18x128xbf16, #tpu.memory_space<vmem>>, vector<18x2x128xbf16>,
    %8 = arith.truncf %1 : vector<16x16x128xf32> to vector<16x16x128xbf16>
    %c1 = arith.constant 1 : index
    %c1_14 = arith.constant 1 : index
    %c0_15 = arith.constant 0 : index
    %9 = vector.load %arg5[%c1, %c1_14, %c0_15] : memref<18x18x128xbf16, #tpu.memory_space<vmem>>, vector<16x16x128xbf16>
    tpu.vector_store %arg5[%c1, %c1_14, %c0_15], %8 {strides = array<i32>} : memref<18x18x128xbf16, #tpu.memory_space<vmem>>, vector<16x16x128xbf16>,
    %c0_16 = arith.constant 0 : index
    %c0_17 = arith.constant 0 : index
    %c0_18 = arith.constant 0 : index
    %10 = vector.load %arg5[%c0_16, %c0_17, %c0_18] : memref<18x18x128xbf16, #tpu.memory_space<vmem>>, vector<16x16x128xbf16>
    %11 = vector.shape_cast %10 : vector<16x16x128xbf16> to vector<256x128xbf16>
    %c0_19 = arith.constant 0 : index
    %c0_20 = arith.constant 0 : index
    %12 = vector.load %arg6[%c0_19, %c0_20] : memref<256x1152xbf16, #tpu.memory_space<vmem>>, vector<256x128xbf16>
    tpu.vector_store %arg6[%c0_19, %c0_20], %11 {strides = array<i32>} : memref<256x1152xbf16, #tpu.memory_space<vmem>>, vector<256x128xbf16>,
    %c0_21 = arith.constant 0 : index
    %c1_22 = arith.constant 1 : index
    %c0_23 = arith.constant 0 : index
    %13 = vector.load %arg5[%c0_21, %c1_22, %c0_23] : memref<18x18x128xbf16, #tpu.memory_space<vmem>>, vector<16x16x128xbf16>
    %14 = vector.shape_cast %13 : vector<16x16x128xbf16> to vector<256x128xbf16>
    %c0_24 = arith.constant 0 : index
    %c128 = arith.constant 128 : index
    %15 = vector.load %arg6[%c0_24, %c128] : memref<256x1152xbf16, #tpu.memory_space<vmem>>, vector<256x128xbf16>
    tpu.vector_store %arg6[%c0_24, %c128], %14 {strides = array<i32>} : memref<256x1152xbf16, #tpu.memory_space<vmem>>, vector<256x128xbf16>,
    %c0_25 = arith.constant 0 : index
    %c2 = arith.constant 2 : index
    %c0_26 = arith.constant 0 : index
    %16 = vector.load %arg5[%c0_25, %c2, %c0_26] : memref<18x18x128xbf16, #tpu.memory_space<vmem>>, vector<16x16x128xbf16>
    %17 = vector.shape_cast %16 : vector<16x16x128xbf16> to vector<256x128xbf16>
    %c0_27 = arith.constant 0 : index
    %c256 = arith.constant 256 : index
    %18 = vector.load %arg6[%c0_27, %c256] : memref<256x1152xbf16, #tpu.memory_space<vmem>>, vector<256x128xbf16>
    tpu.vector_store %arg6[%c0_27, %c256], %17 {strides = array<i32>} : memref<256x1152xbf16, #tpu.memory_space<vmem>>, vector<256x128xbf16>,
    %c1_28 = arith.constant 1 : index
    %c0_29 = arith.constant 0 : index
    %c0_30 = arith.constant 0 : index
    %19 = vector.load %arg5[%c1_28, %c0_29, %c0_30] : memref<18x18x128xbf16, #tpu.memory_space<vmem>>, vector<16x16x128xbf16>
    %20 = vector.shape_cast %19 : vector<16x16x128xbf16> to vector<256x128xbf16>
    %c0_31 = arith.constant 0 : index
    %c384 = arith.constant 384 : index
    %21 = vector.load %arg6[%c0_31, %c384] : memref<256x1152xbf16, #tpu.memory_space<vmem>>, vector<256x128xbf16>
    tpu.vector_store %arg6[%c0_31, %c384], %20 {strides = array<i32>} : memref<256x1152xbf16, #tpu.memory_space<vmem>>, vector<256x128xbf16>,
    %c1_32 = arith.constant 1 : index
    %c1_33 = arith.constant 1 : index
    %c0_34 = arith.constant 0 : index
    %22 = vector.load %arg5[%c1_32, %c1_33, %c0_34] : memref<18x18x128xbf16, #tpu.memory_space<vmem>>, vector<16x16x128xbf16>
    %23 = vector.shape_cast %22 : vector<16x16x128xbf16> to vector<256x128xbf16>
    %c0_35 = arith.constant 0 : index
    %c512 = arith.constant 512 : index
    %24 = vector.load %arg6[%c0_35, %c512] : memref<256x1152xbf16, #tpu.memory_space<vmem>>, vector<256x128xbf16>
    tpu.vector_store %arg6[%c0_35, %c512], %23 {strides = array<i32>} : memref<256x1152xbf16, #tpu.memory_space<vmem>>, vector<256x128xbf16>,
    %c1_36 = arith.constant 1 : index
    %c2_37 = arith.constant 2 : index
    %c0_38 = arith.constant 0 : index
    %25 = vector.load %arg5[%c1_36, %c2_37, %c0_38] : memref<18x18x128xbf16, #tpu.memory_space<vmem>>, vector<16x16x128xbf16>
    %26 = vector.shape_cast %25 : vector<16x16x128xbf16> to vector<256x128xbf16>
    %c0_39 = arith.constant 0 : index
    %c640 = arith.constant 640 : index
    %27 = vector.load %arg6[%c0_39, %c640] : memref<256x1152xbf16, #tpu.memory_space<vmem>>, vector<256x128xbf16>
    tpu.vector_store %arg6[%c0_39, %c640], %26 {strides = array<i32>} : memref<256x1152xbf16, #tpu.memory_space<vmem>>, vector<256x128xbf16>,
    %c2_40 = arith.constant 2 : index
    %c0_41 = arith.constant 0 : index
    %c0_42 = arith.constant 0 : index
    %28 = vector.load %arg5[%c2_40, %c0_41, %c0_42] : memref<18x18x128xbf16, #tpu.memory_space<vmem>>, vector<16x16x128xbf16>
    %29 = vector.shape_cast %28 : vector<16x16x128xbf16> to vector<256x128xbf16>
    %c0_43 = arith.constant 0 : index
    %c768 = arith.constant 768 : index
    %30 = vector.load %arg6[%c0_43, %c768] : memref<256x1152xbf16, #tpu.memory_space<vmem>>, vector<256x128xbf16>
    tpu.vector_store %arg6[%c0_43, %c768], %29 {strides = array<i32>} : memref<256x1152xbf16, #tpu.memory_space<vmem>>, vector<256x128xbf16>,
    %c2_44 = arith.constant 2 : index
    %c1_45 = arith.constant 1 : index
    %c0_46 = arith.constant 0 : index
    %31 = vector.load %arg5[%c2_44, %c1_45, %c0_46] : memref<18x18x128xbf16, #tpu.memory_space<vmem>>, vector<16x16x128xbf16>
    %32 = vector.shape_cast %31 : vector<16x16x128xbf16> to vector<256x128xbf16>
    %c0_47 = arith.constant 0 : index
    %c896 = arith.constant 896 : index
    %33 = vector.load %arg6[%c0_47, %c896] : memref<256x1152xbf16, #tpu.memory_space<vmem>>, vector<256x128xbf16>
    tpu.vector_store %arg6[%c0_47, %c896], %32 {strides = array<i32>} : memref<256x1152xbf16, #tpu.memory_space<vmem>>, vector<256x128xbf16>,
    %c2_48 = arith.constant 2 : index
    %c2_49 = arith.constant 2 : index
    %c0_50 = arith.constant 0 : index
    %34 = vector.load %arg5[%c2_48, %c2_49, %c0_50] : memref<18x18x128xbf16, #tpu.memory_space<vmem>>, vector<16x16x128xbf16>
    %35 = vector.shape_cast %34 : vector<16x16x128xbf16> to vector<256x128xbf16>
    %c0_51 = arith.constant 0 : index
    %c1024 = arith.constant 1024 : index
    %36 = vector.load %arg6[%c0_51, %c1024] : memref<256x1152xbf16, #tpu.memory_space<vmem>>, vector<256x128xbf16>
    tpu.vector_store %arg6[%c0_51, %c1024], %35 {strides = array<i32>} : memref<256x1152xbf16, #tpu.memory_space<vmem>>, vector<256x128xbf16>,
    %c0_52 = arith.constant 0 : index
    %c0_53 = arith.constant 0 : index
    %37 = vector.load %arg6[%c0_52, %c0_53] : memref<256x1152xbf16, #tpu.memory_space<vmem>>, vector<256x1152xbf16>
    %c0_54 = arith.constant 0 : index
    %c0_55 = arith.constant 0 : index
    %38 = vector.load %arg2[%c0_54, %c0_55] : memref<1152x128xbf16, #tpu.memory_space<vmem>>, vector<1152x128xbf16>
    %cst_56 = arith.constant dense<0.000000e+00> : vector<256x128xf32>
    %39 = tpu.matmul %37, %38, %cst_56 {dimension_numbers = #tpu.dot_dimension_numbers<[1], [0], [0], [1], [0, 0, 1, 1], [], []>} : vector<256x1152xbf16>, vector<1152x128xbf16>, vector<256x128xf32> -> vector<256x128xf32>
    %40 = vector.shape_cast %39 : vector<256x128xf32> to vector<16x16x128xf32>
    %c0_57 = arith.constant 0 : index
    %c0_58 = arith.constant 0 : index
    %c0_59 = arith.constant 0 : index
    %c0_60 = arith.constant 0 : index
    %41 = vector.load %arg3[%c0_57, %c0_58, %c0_59, %c0_60] : memref<1x16x16x128xf32, #tpu.memory_space<vmem>>, vector<1x16x16x128xf32>
    %42 = vector.shape_cast %41 : vector<1x16x16x128xf32> to vector<16x16x128xf32>
    %43 = vector.shape_cast %40 : vector<16x16x128xf32> to vector<1x16x16x128xf32>
    tpu.vector_store %arg3[%c0_57, %c0_58, %c0_59, %c0_60], %43 {strides = array<i32>} : memref<1x16x16x128xf32, #tpu.memory_space<vmem>>, vector<1x16x16x128xf32>,
    %cst_61 = arith.constant dense<0.000000e+00> : vector<128xf32>
    %44 = vector.multi_reduction <add>, %39, %cst_61 [0] : vector<256x128xf32> to vector<128xf32>
    %45 = vector.shape_cast %44 : vector<128xf32> to vector<1x128xf32>
    %46 = arith.mulf %39, %39 : vector<256x128xf32>
    %cst_62 = arith.constant dense<0.000000e+00> : vector<128xf32>
    %47 = vector.multi_reduction <add>, %46, %cst_62 [0] : vector<256x128xf32> to vector<128xf32>
    %48 = vector.shape_cast %47 : vector<128xf32> to vector<1x128xf32>
    %49 = vector.shape_cast %45 : vector<1x128xf32> to vector<1x1x128xf32>
    %c0_63 = arith.constant 0 : index
    %c0_64 = arith.constant 0 : index
    %c0_65 = arith.constant 0 : index
    %50 = vector.load %arg4[%c0_63, %c0_64, %c0_65] : memref<1x2x128xf32, #tpu.memory_space<vmem>>, vector<1x1x128xf32>
    tpu.vector_store %arg4[%c0_63, %c0_64, %c0_65], %49 {strides = array<i32>} : memref<1x2x128xf32, #tpu.memory_space<vmem>>, vector<1x1x128xf32>,
    %51 = vector.shape_cast %48 : vector<1x128xf32> to vector<1x1x128xf32>
    %c0_66 = arith.constant 0 : index
    %c1_67 = arith.constant 1 : index
    %c0_68 = arith.constant 0 : index
    %52 = vector.load %arg4[%c0_66, %c1_67, %c0_68] : memref<1x2x128xf32, #tpu.memory_space<vmem>>, vector<1x1x128xf32>
    tpu.vector_store %arg4[%c0_66, %c1_67, %c0_68], %51 {strides = array<i32>} : memref<1x2x128xf32, #tpu.memory_space<vmem>>, vector<1x1x128xf32>,
    return
  }
  func.func @transform_0(%arg0: i32) -> (i32, i32, i32, i32) {
    %c0_i32 = arith.constant 0 : i32
    %c0_i32_0 = arith.constant 0 : i32
    %c0_i32_1 = arith.constant 0 : i32
    %c0_i32_2 = arith.constant 0 : i32
    return %arg0, %c0_i32, %c0_i32_0, %c0_i32_1 : i32, i32, i32, i32
  }
  func.func @transform_1(%arg0: i32) -> (i32, i32) {
    %c0_i32 = arith.constant 0 : i32
    %c0_i32_0 = arith.constant 0 : i32
    %c0_i32_1 = arith.constant 0 : i32
    return %c0_i32, %c0_i32_0 : i32, i32
  }
  func.func @transform_2(%arg0: i32) -> (i32, i32, i32, i32) {
    %c0_i32 = arith.constant 0 : i32
    %c0_i32_0 = arith.constant 0 : i32
    %c0_i32_1 = arith.constant 0 : i32
    %c0_i32_2 = arith.constant 0 : i32
    return %arg0, %c0_i32, %c0_i32_0, %c0_i32_1 : i32, i32, i32, i32
  }
  func.func @transform_3(%arg0: i32) -> (i32, i32, i32) {
    %c0_i32 = arith.constant 0 : i32
    %c0_i32_0 = arith.constant 0 : i32
    %c0_i32_1 = arith.constant 0 : i32
    return %arg0, %c0_i32, %c0_i32_0 : i32, i32, i32
  }
}

</mosaic_0001>

<bundles_post_ra>
// kernel: tpu_custom_call.1
= control target key start
LH: loop header
LB: loop body
LE: loop exit
PB: predicated region body
PF: predicated region fallthrough
CT: control target
= control target key end

     0   :  { %9 = vsyncpa [#allocation5], 0  ;;  %s8245_s0 = inlined_call_operand.hbm [shape: f32[2,16,16,128], index: 0, kind: input, shape index: {}]   ;;  %s8246_s1 = inlined_call_operand.hbm [shape: bf16[1152,128], index: 1, kind: input, shape index: {}]   ;;  %s8247_s2 = inlined_call_operand.hbm [shape: f32[2,16,16,128], index: 2, kind: output, shape index: {0}]   ;;  %s8248_s3 = inlined_call_operand.hbm [shape: f32[2,2,128], index: 3, kind: output, shape index: {1}]  }
   0x1   :  { %11 = vsyncpa [#allocation5 + $0x1], 0 }
   0x2   :  { %12 = vsyncpa [#allocation8], 0 }
   0x3   :  { %13 = vsyncpa [#allocation6], 0 }
   0x4   :  { %15 = vsyncpa [#allocation6 + $0x1], 0 }
   0x5   :  { %16 = vsyncpa [#allocation11], 0 }
   0x6   :  { %18 = vsyncpa [#allocation11 + $0x1], 0  ;;  %s6746_s12 = smov 0   ;;  %s6748_s13 = smov 0  }
   0x7   :  { %s6750_s14 = smov 0   ;;  %s6752_s15 = smov 0  }
   0x8 LB: > { %s6767_s16 = sadd.s32 4294967295, %s6713_s15   ;;  %s5479_s17 = sadd.s32 4294967294, %s6713_s15   ;;  %s6713_s15 = sphi %s6752_s15, %s8310_s15   ;;  %s6709_s14 = sphi %s6750_s14, %s8309_s14   ;;  %s6705_s13 = sphi %s6748_s13, %s8308_s13   ;;  %s6701_s12 = sphi %s6746_s12, %s8307_s12  }
   0x9   : > { %p44_p0 = scmp.ne.s32.totalorder %s6705_s13, %s6701_s12  ;;  %p8249_p1 = scmp.eq.s32.totalorder %s6767_s16, 0 }
   0xa   : > { %p95_p3 = scmp.eq.s32.totalorder %s5479_s17, 1  ;;  %p5480_p5 = scmp.ge.s32.totalorder %s6713_s15, 1 }
   0xb   : > { %p6776_p4 = por %p8249_p1, %p44_p0  ;;  %p128_p7 = scmp.lt.s32.totalorder %s6713_s15, 3 }
   0xc   : > { %p6781_p6 = por %p95_p3, %p44_p0  ;;  %s6715_s21 = smov [#allocation7]  }
   0xd   : > { %s8252_s18 = scalar_select %p6776_p4, 1, 0 }
   0xe   : > { %s8253_s19 = scalar_select %p6781_p6, 1, 0 }
   0xf   : > { %p6786_p8 = pnand %p5480_p5, %p128_p7  ;;  %s140_s22 = sshll.u32 %s6715_s21, 4  ;;  %s6790_s22 = int_to_ptr.vmem [resolvable:$true] %s140_s22 }
  0x10   : > { %s6802_s24 = sadd.s32 1, %s6713_s15   ;;  %s31_s25 = sadd.s32 1, %s6709_s14 }
  0x11   : > { %s8254_s20 = scalar_select %p6786_p8, 1, 0 }
  0x12   : > { %p6374_p9 = pneg %p6786_p8  ;;  %s28_s26 = ssub.s32 %s6713_s15, %s6802_s24 }
  0x13   : > { %s6553_s29 = scalar_lea.hbm %s8246_s1, 9216 }
  0x14   : > { %p6797_p11 = pnand %p6374_p9, %p8249_p1  ;;  %p6554_p12 = scmp.ne.s32.totalorder %s8246_s1, %s6553_s29 }
  0x15   : > { %p6560_p5 = scmp.lt.u32.totalorder %s6553_s29, %s8246_s1 }
  0x16   : > { %p6555_p13 = pneg %p6797_p11 }
  0x18   : > { %p6556_p0 = pnand %p6555_p13, %p6554_p12 }
  0x1a   : > { %p6557_p3 = pneg %p6556_p0 }
  0x1c   : > { %p6562_p7 = pnand %p6560_p5, %p6557_p3 }
  0x1e   : > { %6565 = shalt.err (!%p6562_p7)
}
  0x1f   : > { %s6566_s7 = scalar_lea.vmem %s6790_s22, 9216  ;;  %p6574_p2 = scmp.lt.s32.totalorder %s6790_s22, %s6790_s22 }
  0x20   : > { %p6567_p9 = scmp.ne.s32.totalorder %s6790_s22, %s6566_s7  ;;  %p6575_p6 = scmp.lt.s32.totalorder %s6566_s7, %s6566_s7 }
  0x22   : > { %p6569_p10 = pnand %p6567_p9, %p6555_p13  ;;  %p6576_p4 = por %p6575_p6, %p6574_p2 }
  0x24   : > { %p6570_p1 = pneg %p6569_p10 }
  0x26   : > { %p6577_p8 = pnand %p6576_p4, %p6570_p1 }
  0x28   : > { %6580 = shalt.err (!%p6577_p8)
}
  0x29   : > { %s6716_s8 = smov 64   ;;  %s6717_s9 = smov 4  }
  0x2a   : > { %6377 = dma.hbm_to_vmem [thread:$0]  (!%p6797_p11), %s8246_s1, 9216, %s6790_s22, [#allocation8], %s6716_s8, %s6716_s8, %s6717_s9  }
  0x2b   : > { %p29_p2 = scmp.eq.s32.totalorder %s28_s26, 0  ;;  %p38_p1 = scmp.ne.s32.totalorder %s6709_s14, %s6705_s13 }
  0x2c   : > { %p39_p4 = scmp.eq.s32.totalorder %s6713_s15, 0  ;;  %p6390_p6 = scmp.lt.s32.totalorder %s6713_s15, 2 }
  0x2d   : > { %s6833_s17 = scalar_select %p29_p2, %s6709_s14, %s31_s25  }
  0x2e   : > { %p40_p8 = por %p39_p4, %p38_p1  ;;  %p8256_p10 = scmp.eq.s32.totalorder %s6767_s16, 1 }
  0x2f   : > { %s154_s27 = sand.u32 1, %s6709_s14   ;;  %s5794_s28 = sshll.u32 %s6713_s15, 12 }
  0x30   : > { %p6837_p12 = por %p8256_p10, %p38_p1  ;;  %s5483_s29 = sshll.u32 %s154_s27, 8 }
  0x31   : > { %s6846_s4 = scalar_lea.hbm %s8245_s0, %s5794_s28  ;;  %s158_s22 = scalar_lea.vmem [#allocation4], %s5483_s29 }
  0x32   : > { %s165_s25 = sshll.u32 %s158_s22, 4  ;;  %p6848_p11 = pnand %p6390_p6, %p40_p8  ;;  %s6852_s25 = int_to_ptr.vmem [resolvable:$true] %s165_s25 }
  0x33   : > { %s6854_s5 = scalar_lea.sflag [#allocation5], %s154_s27  ;;  %s6581_s6 = scalar_lea.hbm %s6846_s4, 4096 }
  0x34   : > { %p6582_p13 = scmp.ne.s32.totalorder %s6846_s4, %s6581_s6  ;;  %p6583_p0 = pneg %p6848_p11 }
  0x35   : > { %s6586_s9 = scalar_lea.hbm %s8245_s0, 8192  ;;  %p6587_p7 = scmp.lt.u32.totalorder %s6846_s4, %s8245_s0 }
  0x36   : > { %p6584_p3 = pnand %p6583_p0, %p6582_p13  ;;  %p6588_p9 = scmp.lt.u32.totalorder %s6586_s9, %s6581_s6 }
  0x37   : > { %p6590_p1 = scmp.lt.u32.totalorder %s6581_s6, %s6846_s4 }
  0x38   : > { %p6585_p5 = pneg %p6584_p3  ;;  %p6589_p2 = por %p6588_p9, %p6587_p7 }
  0x3a   : > { %p6591_p4 = por %p6590_p1, %p6589_p2 }
  0x3c   : > { %p6592_p6 = pnand %p6591_p4, %p6585_p5 }
  0x3e   : > { %6595 = shalt.err (!%p6592_p6)
}
  0x3f   : > { %s6596_s27 = scalar_lea.vmem %s6852_s25, 4096  ;;  %s6718_s28 = smov [#allocation4]  }
  0x40   : > { %p6597_p8 = scmp.ne.s32.totalorder %s6852_s25, %s6596_s27  ;;  %s6601_s29 = sshll.u32 %s6718_s28, 4  ;;  %s6602_s29 = int_to_ptr.vmem [resolvable:$false] %s6601_s29 }
  0x41   : > { %s6603_s23 = scalar_lea.vmem %s6602_s29, 8192  ;;  %p6604_p3 = scmp.lt.s32.totalorder %s6852_s25, %s6602_s29 }
  0x42   : > { %p6599_p10 = pnand %p6597_p8, %p6583_p0  ;;  %p6605_p7 = scmp.lt.s32.totalorder %s6603_s23, %s6596_s27 }
  0x44   : > { %p6600_p13 = pneg %p6599_p10  ;;  %p6606_p9 = por %p6605_p7, %p6604_p3 }
  0x46   : > { %p6607_p2 = pnand %p6606_p9, %p6600_p13 }
  0x48   : > { %6610 = shalt.err (!%p6607_p2)
}
  0x49   : > { %s6719_s30 = smov 128   ;;  %s6720_s22 = smov 8  }
  0x4a   : > { %6381 = dma.hbm_to_vmem [thread:$0]  (!%p6848_p11), %s6846_s4, 4096, %s6852_s25, %s6854_s5, %s6719_s30, %s6719_s30, %s6720_s22  }
  0x4b   : > { %p8259_p0 = scmp.ne.s32.totalorder %s8254_s20, 0 }
  0x4d   : > { %177 = sbr.rel (%p8259_p0) target bundleno = 742 (0x2e6), region = 28 }
  0x54   : > { %s6885_s6 = sand.u32 1, %s6705_s13   ;;  %p8260_p5 = scmp.ne.s32.totalorder %s8252_s18, 0 }
  0x55   : > { %s5487_s7 = sshll.u32 %s6885_s6, 8  ;;  %s180_s8 = scalar_lea.sflag [#allocation5], %s6885_s6 }
  0x56   : > { %s6891_s9 = scalar_lea.vmem [#allocation4], %s5487_s7 }
  0x57   : > { %6684 = dma.done.wait (%p8260_p5), %s180_s8, 4096  }
  0x58   : > { %6686 = vsyncadd (%p8260_p5), %s180_s8, 4294963200  ;;  %p8261_p11 = scmp.eq.s32.totalorder %s6767_s16, 0 }
  0x5a   : > { %6688 = dma.done.wait (%p8261_p11), [#allocation8], 9216   ;;  %p8262_p1 = pmov %p8261_p11 }
  0x5b   : > { %v6721_v0 = vmov 0   ;;  %v6433_v1 = vld [vmem:[#allocation7 + $0x40] sm:$0xff]   ;;  %v6435_v3 = vld [vmem:[#allocation7 + $0x48] sm:$0xff]   ;;  %v6437_v5 = vld [vmem:[#allocation7 + $0x50] sm:$0xff]   ;;  %vm1020_vm0 = vsmask.f32 3328 }
  0x5c   : > { %6690 = vsyncadd (%p8262_p1), [#allocation8], 4294958080  ;;  %248 = vst [vmem:[#allocation2] sm:$0xf] %v6721_v0  ;;  %v6434_v2 = vld [vmem:[#allocation7] sm:$0xff]   ;;  %5828 = vmatprep.subr.bf16.mxu0 %v6433_v1  ;;  %6348 = vmatprep.subr.bf16.mxu1 %v6433_v1  ;;  %v6436_v4 = vld [vmem:[#allocation7 + $0x8] sm:$0xff]  }
  0x5d   : > { %249 = vst [vmem:[#allocation2 + $0x4] sm:$0xf] %v6721_v0  ;;  %250 = vst [vmem:[#allocation2 + $0x8] sm:$0x1] %v6721_v0  ;;  %5829 = vmatpush3.bf16.msra.mxu0 %v6434_v2  ;;  %6356 = vmatpush3.bf16.msra.mxu1 %v6434_v2  ;;  %v6438_v6 = vld [vmem:[#allocation7 + $0x10] sm:$0xff]   ;;  %v6439_v7 = vld [vmem:[#allocation7 + $0x58] sm:$0xff]  }
  0x5e   : > { %252 = vst [vmem:[#allocation2 + $0xcc] sm:$0xf] %v6721_v0  ;;  %253 = vst [vmem:[#allocation2 + $0xd0] sm:$0xf] %v6721_v0  ;;  %5830 = vmatprep.subr.bf16.mxu0 %v6435_v3  ;;  %6349 = vmatprep.subr.bf16.mxu1 %v6435_v3  ;;  %vm1021_vm1 = vsmask.f32 7440 }
  0x5f   : > { %254 = vst [vmem:[#allocation2 + $0xd4] sm:$0x1] %v6721_v0  ;;  %256 = vst [vmem:[#allocation2 + $0xc] sm:$0x1] %v6721_v0  ;;  %vm387_vm2 = vsmask.f32 256 }
  0x60   : > { %257 = vst [vmem:[#allocation2 + $0x18] sm:$0x1] %v6721_v0  ;;  %258 = vst [vmem:[#allocation2 + $0x24] sm:$0x1] %v6721_v0  ;;  %vm388_vm3 = vsmask.f32 4368 }
  0x61   : > { %259 = vst [vmem:[#allocation2 + $0x30] sm:$0x1] %v6721_v0  ;;  %260 = vst [vmem:[#allocation2 + $0x3c] sm:$0x1] %v6721_v0  ;;  %5831 = vmatpush3.bf16.msra.mxu0 %v6436_v4  ;;  %6357 = vmatpush3.bf16.msra.mxu1 %v6436_v4  ;;  %v6440_v8 = vld [vmem:[#allocation7 + $0x18] sm:$0xff]   ;;  %v6441_v9 = vld [vmem:[#allocation7 + $0x60] sm:$0xff]  }
  0x62   : > { %261 = vst [vmem:[#allocation2 + $0x48] sm:$0x1] %v6721_v0  ;;  %262 = vst [vmem:[#allocation2 + $0x54] sm:$0x1] %v6721_v0  ;;  %5832 = vmatprep.subr.bf16.mxu0 %v6437_v5  ;;  %6350 = vmatprep.subr.bf16.mxu1 %v6437_v5  ;;  %vm712_vm4 = vsmask.f32 7938 }
  0x63   : > { %263 = vst [vmem:[#allocation2 + $0x60] sm:$0x1] %v6721_v0  ;;  %264 = vst [vmem:[#allocation2 + $0x6c] sm:$0x1] %v6721_v0  ;;  %v6442_v10 = vld [vmem:[#allocation7 + $0x20] sm:$0xff]   ;;  %v6443_v11 = vld [vmem:[#allocation7 + $0x68] sm:$0xff]  }
  0x64   : > { %265 = vst [vmem:[#allocation2 + $0x78] sm:$0x1] %v6721_v0  ;;  %266 = vst [vmem:[#allocation2 + $0x84] sm:$0x1] %v6721_v0  ;;  %vm711_vm5 = vcmask 1043456   ;;  %v238_v19 = vld [vmem:[%s6891_s9 + $0xb0] sm:$0xff] }
  0x65   : > { %267 = vst [vmem:[#allocation2 + $0x90] sm:$0x1] %v6721_v0  ;;  %268 = vst [vmem:[#allocation2 + $0x9c] sm:$0x1] %v6721_v0  ;;  %5833 = vmatpush3.bf16.msra.mxu0 %v6438_v6  ;;  %6358 = vmatpush3.bf16.msra.mxu1 %v6438_v6  ;;  %v973_v13 = vld [vmem:[#allocation2 + $0x4] sm:$0xf]  ;;  %v5817_v23 = vpack.c.bf16 %v238_v19, %v238_v19 }
  0x66   : > { %269 = vst [vmem:[#allocation2 + $0xa8] sm:$0x1] %v6721_v0  ;;  %270 = vst [vmem:[#allocation2 + $0xb4] sm:$0x1] %v6721_v0  ;;  %5834 = vmatprep.subr.bf16.mxu0 %v6439_v7  ;;  %6351 = vmatprep.subr.bf16.mxu1 %v6439_v7  ;;  %v1033_v17 = vshll.u32 %v973_v13, 16  ;;  %v1037_v18 = vshrl.u32 %v973_v13, 16 }
  0x67   : > { %271 = vst [vmem:[#allocation2 + $0xc0] sm:$0x1] %v6721_v0  ;;  %274 = vst [vmem:[#allocation2 + $0x14] sm:$0x1] %v6721_v0  ;;  %v239_v20 = vld [vmem:[%s6891_s9 + $0xb8] sm:$0xff]  ;;  %v6444_v21 = vld [vmem:[#allocation7 + $0x28] sm:$0xff]  }
  0x68   : > { %275 = vst [vmem:[#allocation2 + $0x20] sm:$0x1] %v6721_v0  ;;  %276 = vst [vmem:[#allocation2 + $0x2c] sm:$0x1] %v6721_v0  ;;  %v5818_v24 = vpack.c.bf16 %v239_v20, %v239_v20  ;;  %vm718_vm6 = vcmask 1040384   ;;  %v1035_v27 = vrot.slane %v1033_v17, 5 }
  0x69   : > { %277 = vst [vmem:[#allocation2 + $0x38] sm:$0x1] %v6721_v0  ;;  %278 = vst [vmem:[#allocation2 + $0x44] sm:$0x1] %v6721_v0  ;;  %5835 = vmatpush3.bf16.msra.mxu0 %v6440_v8  ;;  %6359 = vmatpush3.bf16.msra.mxu1 %v6440_v8  ;;  %v1039_v28 = vrot.slane %v1037_v18, 4  ;;  %v6445_v29 = vld [vmem:[#allocation7 + $0x70] sm:$0xff]  }
  0x6a   : > { %279 = vst [vmem:[#allocation2 + $0x50] sm:$0x1] %v6721_v0  ;;  %280 = vst [vmem:[#allocation2 + $0x5c] sm:$0x1] %v6721_v0  ;;  %5836 = vmatprep.subr.bf16.mxu0 %v6441_v9  ;;  %6352 = vmatprep.subr.bf16.mxu1 %v6441_v9  ;;  %v578_v31 = vshrl.u32 %v5817_v23, 16  ;;  %v581_v32 = vshll.u32 %v5817_v23, 16 }
  0x6b   : > { %281 = vst [vmem:[#allocation2 + $0x68] sm:$0x1] %v6721_v0  ;;  %282 = vst [vmem:[#allocation2 + $0x74] sm:$0x1] %v6721_v0  ;;  %v586_v33 = vshrl.u32 %v5818_v24, 16  ;;  %v6446_v34 = vld [vmem:[#allocation7 + $0x30] sm:$0xff]   ;;  %v1040_v36 = vor.u32 %v1039_v28, %v1035_v27 }
  0x6c   : > { %283 = vst [vmem:[#allocation2 + $0x80] sm:$0x1] %v6721_v0  ;;  %284 = vst [vmem:[#allocation2 + $0x8c] sm:$0x1] %v6721_v0  ;;  %v589_v39 = vshll.u32 %v5818_v24, 16  ;;  %v6447_v41 = vld [vmem:[#allocation7 + $0x78] sm:$0xff]  }
  0x6d   : > { %285 = vst [vmem:[#allocation2 + $0x98] sm:$0x1] %v6721_v0  ;;  %286 = vst [vmem:[#allocation2 + $0xa4] sm:$0x1] %v6721_v0  ;;  %5837 = vmatpush3.bf16.msra.mxu0 %v6442_v10  ;;  %6360 = vmatpush3.bf16.msra.mxu1 %v6442_v10  ;;  %v793_v40 = vld [vmem:[#allocation2 + $0x90] sm:$0xf] }
  0x6e   : > { %287 = vst [vmem:[#allocation2 + $0xb0] sm:$0x1] %v6721_v0  ;;  %288 = vst [vmem:[#allocation2 + $0xbc] sm:$0x1] %v6721_v0  ;;  %5838 = vmatprep.subr.bf16.mxu0 %v6443_v11  ;;  %6353 = vmatprep.subr.bf16.mxu1 %v6443_v11  ;;  %v580_v42 = vrot.slane %v578_v31, 7  ;;  %v588_v43 = vrot.slane %v586_v33, 7 }
  0x6f   : > { %289 = vst [vmem:[#allocation2 + $0xc8] sm:$0x1] %v6721_v0  ;;  %255 = vst [vmem:[#allocation2] sm:$0x1] %v6721_v0  ;;  %v1041_v46 = vrot.slane %v1040_v36, 4  ;;  %v6448_v59 = vld [vmem:[#allocation7 + $0x38] sm:$0xff]  }
  0x70   : > { %273 = vst [vmem:[#allocation2 + $0x8] sm:$0x1] %v6721_v0  ;;  %272 = vst [vmem:[#allocation2 + $0xcc] sm:$0x1] %v6721_v0  ;;  %v583_v49 = vor.u32 %v581_v32, %v580_v42  ;;  %v584_v50 = vrot.slane %v580_v42, 4  ;;  %v591_v51 = vor.u32 %v589_v39, %v588_v43  ;;  %v593_v52 = vrot.slane %v588_v43, 4 }
  0x71   : > { %290 = vst [vmem:[#allocation2 + $0xd4] sm:$0x1] %v6721_v0  ;;  %vm6905_vm7 = vmor %vm1020_vm0, %vm1021_vm1  ;;  %5839 = vmatpush3.bf16.msra.mxu0 %v6444_v21  ;;  %6361 = vmatpush3.bf16.msra.mxu1 %v6444_v21  ;;  %v216_v60 = vld [vmem:[%s6891_s9] sm:$0xff]  ;;  %v217_v63 = vld [vmem:[%s6891_s9 + $0x8] sm:$0xff]  ;;  %vm1583_vm11 = vcmask 1042432   ;;  %vm1584_vm12 = vcmask 1046532  }
  0x72   : > { %vm6911_vm8 = vmor %vm387_vm2, %vm388_vm3  ;;  %5840 = vmatprep.subr.bf16.mxu0 %v6445_v29  ;;  %6354 = vmatprep.subr.bf16.mxu1 %v6445_v29  ;;  %v6451_v61 = vld [vmem:[#allocation7 + $0xc0] sm:$0xff]   ;;  %v5795_v0 = vpack.c.bf16 %v216_v60, %v216_v60  ;;  %v5796_v1 = vpack.c.bf16 %v217_v63, %v217_v63  ;;  %v241_v3 = vld [vmem:[%s6891_s9 + $0xc8] sm:$0xff]  ;;  %s8081_s18 = scalar_lea.vmem [#allocation9], %s5487_s7  ;;  %s5827_s20 = sshll.u32 %s6767_s16, 12 }
  0x73   : > { %vm6917_vm9 = vmand %vm711_vm5, %vm712_vm4  ;;  %v592_v56 = vsel %vm6911_vm8, %v584_v50, %v591_v51  ;;  %v6452_v62 = vld [vmem:[#allocation7 + $0x140] sm:$0xff]   ;;  %v5820_v8 = vpack.c.bf16 %v241_v3, %v241_v3  ;;  %v714_v17 = vld [vmem:[#allocation2 + $0xc] sm:$0xf]  ;;  %s5351_s4 = sshll.u32 %s8081_s18, 4  ;;  %s8166_s5 = scalar_lea.hbm %s8247_s2, %s5827_s20  ;;  %s8168_s4 = int_to_ptr.vmem [resolvable:$true] %s5351_s4 }
  0x74   : > { %vm6923_vm10 = vmand %vm718_vm6, %vm387_vm2  ;;  %v797_v48 = vld [vmem:[#allocation2 + $0x98] sm:$0x1]  ;;  %v794_v57 = vsel %vm6917_vm9, %v583_v49, %v793_v40  ;;  %796 = vst [vmem:[#allocation2 + $0x94] sm:$0xf] %v592_v56  ;;  %v391_v5 = vshrl.u32 %v5795_v0, 16  ;;  %v394_v6 = vshll.u32 %v5795_v0, 16 }
  0x75   : > { %v798_v58 = vsel %vm6923_vm10, %v593_v52, %v797_v48  ;;  %5841 = vmatpush3.bf16.msra.mxu0 %v6446_v34  ;;  %6362 = vmatpush3.bf16.msra.mxu1 %v6446_v34  ;;  %795 = vst [vmem:[#allocation2 + $0x90] sm:$0xf] %v794_v57  ;;  %v240_v2 = vld [vmem:[%s6891_s9 + $0xc0] sm:$0xff]  ;;  %v399_v10 = vshrl.u32 %v5796_v1, 16  ;;  %v402_v11 = vshll.u32 %v5796_v1, 16  ;;  %v606_v19 = vshll.u32 %v5820_v8, 16  ;;  %vm7060_vm13 = vmor %vm1583_vm11, %vm1584_vm12 }
  0x76   : > { %v972_v12 = vld [vmem:[#allocation2] sm:$0xf]  ;;  %799 = vst [vmem:[#allocation2 + $0x98] sm:$0x1] %v798_v58  ;;  %5842 = vmatprep.subr.bf16.mxu0 %v6447_v41  ;;  %6355 = vmatprep.subr.bf16.mxu1 %v6447_v41  ;;  %v5819_v7 = vpack.c.bf16 %v240_v2, %v240_v2  ;;  %v6454_v9 = vld [vmem:[#allocation7 + $0x100] sm:$0xff]   ;;  %v218_v56 = vld [vmem:[%s6891_s9 + $0x10] sm:$0xff] }
  0x77   : > { %v974_v14 = vld [vmem:[#allocation2 + $0x8] sm:$0x1]  ;;  %v1024_v15 = vshrl.u32 %v972_v12, 16  ;;  %v1027_v16 = vshll.u32 %v972_v12, 16  ;;  %v6449_v4 = vld [vmem:[#allocation2] sm:$0xff]   ;;  %v393_v12 = vrot.slane %v391_v5, 7  ;;  %v5797_v60 = vpack.c.bf16 %v218_v56, %v218_v56 }
  0x78   : > { %v1043_v22 = vshll.u32 %v974_v14, 16  ;;  %v595_v13 = vshrl.u32 %v5819_v7, 16  ;;  %v598_v14 = vshll.u32 %v5819_v7, 16  ;;  %v720_v18 = vld [vmem:[#allocation2 + $0x14] sm:$0x1]  ;;  %v6462_v50 = vld [vmem:[#allocation7 + $0x148] sm:$0xff]  }
  0x79   : > { %v1026_v25 = vrot.slane %v1024_v15, 4  ;;  %v1029_v26 = vrot.slane %v1027_v16, 5  ;;  %5843 = vmatpush3.bf16.msra.mxu0 %v6448_v59  ;;  %6363 = vmatpush3.bf16.msra.mxu1 %v6448_v59  ;;  %v603_v15 = vshrl.u32 %v5820_v8, 16  ;;  %v401_v16 = vrot.slane %v399_v10, 7  ;;  %v800_v42 = vld [vmem:[#allocation2 + $0x9c] sm:$0xf] }
  0x7a   : > { %v1045_v37 = vrot.slane %v1043_v22, 5  ;;  %5940 = vmatprep.subr.bf16.mxu1 %v6451_v61  ;;  %6052 = vmatprep.subr.bf16.mxu0 %v6452_v62  ;;  %v396_v23 = vor.u32 %v394_v6, %v393_v12  ;;  %v397_v29 = vrot.slane %v393_v12, 4  ;;  %v804_v49 = vld [vmem:[#allocation2 + $0xa4] sm:$0x1]  ;;  %v219_v57 = vld [vmem:[%s6891_s9 + $0x18] sm:$0xff]  ;;  %v6453_v1 = vld [vmem:[#allocation7 + $0x80] sm:$0xff]  }
  0x7b   : > { %v1030_v35 = vor.u32 %v1029_v26, %v1026_v25  ;;  %v1009_v21 = vld [vmem:[#allocation2 + $0x94] sm:$0xf]  ;;  %v404_v31 = vor.u32 %v402_v11, %v401_v16  ;;  %v406_v32 = vrot.slane %v401_v16, 4  ;;  %v605_v48 = vrot.slane %v603_v15, 7  ;;  %v242_v3 = vld [vmem:[%s6891_s9 + $0xd0] sm:$0xff]  ;;  %v6455_v5 = vld [vmem:[#allocation7 + $0xc8] sm:$0xff]  }
  0x7c   : > { %v1046_v54 = vsel %vm6905_vm7, %v1041_v46, %v1045_v37  ;;  %v1008_v20 = vld [vmem:[#allocation2 + $0x90] sm:$0xf]  ;;  %v1321_v26 = vshll.u32 %v1009_v21, 16  ;;  %v715_v40 = vsel %vm6917_vm9, %v396_v23, %v714_v17  ;;  %v597_v46 = vrot.slane %v595_v13, 7  ;;  %v6456_v13 = vld [vmem:[#allocation7 + $0x88] sm:$0xff]   ;;  %s5333_s10 = scalar_lea.sflag [#allocation6], %s6885_s6 }
  0x7d   : > { %v1031_v45 = vrot.slane %v1030_v35, 4  ;;  %v1010_v22 = vld [vmem:[#allocation2 + $0x98] sm:$0x1]  ;;  %v1312_v24 = vshrl.u32 %v1008_v20, 16  ;;  %v1315_v25 = vshll.u32 %v1008_v20, 16  ;;  %v405_v39 = vsel %vm6911_vm8, %v397_v29, %v404_v31  ;;  %v6450_v0 = vld [vmem:[#allocation2 + $0x90] sm:$0xff]  }
  0x7e   : > { %v1331_v28 = vshll.u32 %v1010_v22, 16  ;;  %v1323_v35 = vrot.slane %v1321_v26, 5  ;;  %v721_v41 = vsel %vm6923_vm10, %v406_v32, %v720_v18  ;;  %716 = vst [vmem:[#allocation2 + $0xc] sm:$0xf] %v715_v40  ;;  %717 = vst [vmem:[#allocation2 + $0x10] sm:$0xf] %v405_v39  ;;  %v608_v58 = vor.u32 %v606_v19, %v605_v48 }
  0x7f   : > { %v1036_v53 = vsel %vm6905_vm7, %v1031_v45, %v1035_v27  ;;  %v1325_v27 = vshrl.u32 %v1009_v21, 16  ;;  %v1314_v33 = vrot.slane %v1312_v24, 4  ;;  %v1317_v34 = vrot.slane %v1315_v25, 5  ;;  %722 = vst [vmem:[#allocation2 + $0x14] sm:$0x1] %v721_v41  ;;  %v243_v12 = vld [vmem:[%s6891_s9 + $0xd8] sm:$0xff] }
  0x80   : > { %v5539_v55 = vcombine.low %v1036_v53, %v1046_v54  ;;  %v1333_v37 = vrot.slane %v1331_v28, 5  ;;  %v600_v53 = vor.u32 %v598_v14, %v597_v46  ;;  %v601_v54 = vrot.slane %v597_v46, 4  ;;  %v723_v22 = vld [vmem:[#allocation2 + $0x18] sm:$0xf]  ;;  %v6459_v24 = vld [vmem:[#allocation7 + $0xd0] sm:$0xff]   ;;  %s6611_s11 = scalar_lea.vmem %s8168_s4, 4096 }
  0x81   : > { %v1327_v36 = vrot.slane %v1325_v27, 4  ;;  %v1318_v43 = vor.u32 %v1317_v34, %v1314_v33  ;;  %v610_v59 = vrot.slane %v605_v48, 4  ;;  %v5798_v61 = vpack.c.bf16 %v219_v57, %v219_v57  ;;  %v727_v33 = vld [vmem:[#allocation2 + $0x20] sm:$0x1]  ;;  %p6612_p4 = scmp.ne.s32.totalorder %s8168_s4, %s6611_s11  ;;  %s6722_s27 = smov [#allocation9]  }
  0x82   : > { %4419 = vmatprep.mubr.bf16.mxu0 %v5539_v55  ;;  %v6464_v55 = vld [vmem:[#allocation7 + $0x108] sm:$0xff]   ;;  %v801_v2 = vsel %vm6917_vm9, %v600_v53, %v800_v42  ;;  %v609_v6 = vsel %vm6911_vm8, %v601_v54, %v608_v58  ;;  %v408_v8 = vshrl.u32 %v5797_v60, 16  ;;  %v6961_v17 = vpack.c.bf16 %v242_v3, %v242_v3  ;;  %s6615_s28 = sshll.u32 %s6722_s27, 4  ;;  %s6616_s28 = int_to_ptr.vmem [resolvable:$false] %s6615_s28 }
  0x83   : > { %4420 = vmatmul.mubr.bf16.vlgmr.msra.gmra.mrb[0].mxu0 %v6449_v4  ;;  %v1328_v45 = vor.u32 %v1327_v36, %v1323_v35  ;;  %v1319_v51 = vrot.slane %v1318_v43, 4  ;;  %802 = vst [vmem:[#allocation2 + $0x9c] sm:$0xf] %v801_v2  ;;  %v805_v7 = vsel %vm6923_vm10, %v610_v59, %v804_v49  ;;  %803 = vst [vmem:[#allocation2 + $0xa0] sm:$0xf] %v609_v6  ;;  %v416_v10 = vshrl.u32 %v5798_v61, 16  ;;  %p6613_p6 = pnand %p6612_p4, %p6837_p12  ;;  %p6618_p10 = scmp.lt.s32.totalorder %s8168_s4, %s6616_s28 }
  0x84   : > { %6053 = vmatpush3.bf16.msra.mxu0 %v6454_v9  ;;  %806 = vst [vmem:[#allocation2 + $0xa4] sm:$0x1] %v805_v7  ;;  %v411_v9 = vshll.u32 %v5797_v60, 16  ;;  %v419_v11 = vshll.u32 %v5798_v61, 16  ;;  %v410_v25 = vrot.slane %v408_v8, 7  ;;  %v6963_v27 = vpack.c.bf16 %v243_v12, %v243_v12  ;;  %v6461_v43 = vld [vmem:[#allocation7 + $0xd8] sm:$0xff]  }
  0x85   : > { %v1329_v52 = vrot.slane %v1328_v45, 4  ;;  %6054 = vmatprep.subr.bf16.mxu0 %v6462_v50  ;;  %v1324_v62 = vsel %vm6905_vm7, %v1319_v51, %v1323_v35  ;;  %v975_v14 = vld [vmem:[#allocation2 + $0xc] sm:$0xf]  ;;  %v976_v15 = vld [vmem:[#allocation2 + $0x10] sm:$0xf]  ;;  %v418_v26 = vrot.slane %v416_v10, 7  ;;  %p6614_p8 = pneg %p6613_p6 }
  0x86   : > { %v977_v16 = vld [vmem:[#allocation2 + $0x14] sm:$0x1]  ;;  %v1048_v18 = vshrl.u32 %v975_v14, 16  ;;  %v1051_v19 = vshll.u32 %v975_v14, 16  ;;  %v1057_v20 = vshll.u32 %v976_v15, 16  ;;  %v1061_v21 = vshrl.u32 %v976_v15, 16 }
  0x87   : > { %v1334_v63 = vsel %vm6905_vm7, %v1329_v52, %v1333_v37  ;;  %v1067_v23 = vshll.u32 %v977_v16, 16  ;;  %v6460_v35 = vld [vmem:[#allocation7 + $0x90] sm:$0xff]   ;;  %v413_v36 = vor.u32 %v411_v9, %v410_v25  ;;  %v414_v37 = vrot.slane %v410_v25, 4  ;;  %v220_v7 = vld [vmem:[%s6891_s9 + $0x20] sm:$0xff]  ;;  %v221_v8 = vld [vmem:[%s6891_s9 + $0x28] sm:$0xff]  ;;  %s6617_s29 = scalar_lea.vmem %s6616_s28, 8192 }
  0x88   : > { %6055 = vmatpush3.bf16.msra.mxu0 %v6464_v55  ;;  %v5551_v4 = vcombine.low %v1324_v62, %v1334_v63  ;;  %v1050_v28 = vrot.slane %v1048_v18, 4  ;;  %v1053_v29 = vrot.slane %v1051_v19, 5  ;;  %v1059_v31 = vrot.slane %v1057_v20, 5  ;;  %v6457_v61 = vld [vmem:[#allocation2 + $0xc] sm:$0xff]   ;;  %v244_v14 = vld [vmem:[%s6891_s9 + $0xe0] sm:$0xff]  ;;  %v245_v19 = vld [vmem:[%s6891_s9 + $0xe8] sm:$0xff]  ;;  %p6619_p13 = scmp.lt.s32.totalorder %s6617_s29, %s6611_s11 }
  0x89   : > { %v1063_v32 = vrot.slane %v1061_v21, 4  ;;  %v1069_v34 = vrot.slane %v1067_v23, 5  ;;  %v421_v39 = vor.u32 %v419_v11, %v418_v26  ;;  %v423_v45 = vrot.slane %v418_v26, 4  ;;  %v807_v23 = vld [vmem:[#allocation2 + $0xa8] sm:$0xf]  ;;  %v6468_v25 = vld [vmem:[#allocation7 + $0xa0] sm:$0xff]  }
  0x8a   : > { %4515 = vmatprep.mubr.bf16.mxu1 %v5551_v4  ;;  %v1054_v40 = vor.u32 %v1053_v29, %v1050_v28  ;;  %v1011_v42 = vld [vmem:[#allocation2 + $0x9c] sm:$0xf]  ;;  %v612_v46 = vshrl.u32 %v6961_v17, 16  ;;  %v1012_v48 = vld [vmem:[#allocation2 + $0xa0] sm:$0xf]  ;;  %v724_v53 = vsel %vm6917_vm9, %v413_v36, %v723_v22  ;;  %v615_v11 = vshll.u32 %v6961_v17, 16  ;;  %p6620_p3 = por %p6619_p13, %p6618_p10 }
  0x8b   : > { %4516 = vmatmul.mubr.bf16.vlgmr.msra.gmra.mrb[0].mxu1 %v6450_v0  ;;  %v1064_v41 = vor.u32 %v1063_v32, %v1059_v31  ;;  %v1013_v49 = vld [vmem:[#allocation2 + $0xa4] sm:$0x1]  ;;  %v1336_v50 = vshrl.u32 %v1011_v42, 16  ;;  %v1339_v51 = vshll.u32 %v1011_v42, 16  ;;  %v422_v52 = vsel %vm6911_vm8, %v414_v37, %v421_v39  ;;  %725 = vst [vmem:[#allocation2 + $0x18] sm:$0xf] %v724_v53 }
  0x8c   : > { %5941 = vmatpush3.bf16.msra.mxu1 %v6453_v1  ;;  %v1055_v54 = vrot.slane %v1054_v40, 4  ;;  %v1345_v56 = vshll.u32 %v1012_v48, 16  ;;  %v1349_v57 = vshrl.u32 %v1012_v48, 16  ;;  %726 = vst [vmem:[#allocation2 + $0x1c] sm:$0xf] %v422_v52  ;;  %v1355_v60 = vshll.u32 %v1013_v49, 16  ;;  %p6621_p7 = pnand %p6620_p3, %p6614_p8 }
  0x8d   : > { %5942 = vmatprep.subr.bf16.mxu1 %v6455_v5  ;;  %v1065_v55 = vrot.slane %v1064_v41, 4  ;;  %v1338_v58 = vrot.slane %v1336_v50, 4  ;;  %v1341_v59 = vrot.slane %v1339_v51, 5  ;;  %v728_v62 = vsel %vm6923_vm10, %v423_v45, %v727_v33  ;;  %v6463_v5 = vld [vmem:[#allocation7 + $0x98] sm:$0xff]   ;;  %v6458_v21 = vld [vmem:[#allocation2 + $0x9c] sm:$0xff]  }
  0x8e   : > { %v1060_v63 = vsel %vm6905_vm7, %v1055_v54, %v1059_v31  ;;  %v1347_v1 = vrot.slane %v1345_v56, 5  ;;  %v1351_v2 = vrot.slane %v1349_v57, 4  ;;  %729 = vst [vmem:[#allocation2 + $0x20] sm:$0x1] %v728_v62  ;;  %v614_v6 = vrot.slane %v612_v46, 7  ;;  %v6469_v39 = vld [vmem:[#allocation7 + $0xe8] sm:$0xff]  }
  0x8f   : > { %v1070_v0 = vsel %vm6905_vm7, %v1065_v55, %v1069_v34  ;;  %v1342_v4 = vor.u32 %v1341_v59, %v1338_v58  ;;  %v1357_v10 = vrot.slane %v1355_v60, 5  ;;  %v620_v12 = vshrl.u32 %v6963_v27, 16  ;;  %v6470_v46 = vld [vmem:[#allocation7 + $0xa8] sm:$0xff]   ;;  %v6474_v56 = vld [vmem:[#allocation7 + $0x150] sm:$0xff]  }
  0x90   : > { %5943 = vmatpush3.bf16.msra.mxu1 %v6456_v13  ;;  %v5540_v3 = vcombine.low %v1060_v63, %v1070_v0  ;;  %v1352_v9 = vor.u32 %v1351_v2, %v1347_v1  ;;  %v6467_v13 = vld [vmem:[#allocation7 + $0xe0] sm:$0xff]   ;;  %v618_v16 = vrot.slane %v614_v6, 4  ;;  %v623_v18 = vshll.u32 %v6963_v27, 16  ;;  %6056 = vmatprep.subr.bf16.mxu0 %v6474_v56 }
  0x91   : > { %5944 = vmatprep.subr.bf16.mxu1 %v6459_v24  ;;  %v1343_v15 = vrot.slane %v1342_v4, 4  ;;  %v622_v22 = vrot.slane %v620_v12, 7  ;;  %v811_v24 = vld [vmem:[#allocation2 + $0xb0] sm:$0x1]  ;;  %v6983_v26 = vpack.c.bf16 %v220_v7, %v220_v7  ;;  %v6985_v17 = vpack.c.bf16 %v221_v8, %v221_v8  ;;  %v6476_v4 = vld [vmem:[#allocation7 + $0x110] sm:$0xff]  }
  0x92   : > { %4427 = vmatprep.mubr.bf16.mxu0 %v5540_v3  ;;  %v1353_v20 = vrot.slane %v1352_v9, 4  ;;  %v978_v29 = vld [vmem:[#allocation2 + $0x18] sm:$0xf]  ;;  %v617_v32 = vor.u32 %v615_v11, %v614_v6  ;;  %v6989_v27 = vpack.c.bf16 %v244_v14, %v244_v14  ;;  %v6991_v33 = vpack.c.bf16 %v245_v19, %v245_v19  ;;  %v6475_v3 = vld [vmem:[#allocation7 + $0xb0] sm:$0xff]   ;;  %6057 = vmatpush3.bf16.msra.mxu0 %v6476_v4 }
  0x93   : > { %4428 = vmatmul.mubr.bf16.gmra.mrb[4].mxu0 %v6457_v61  ;;  %v1348_v28 = vsel %vm6905_vm7, %v1343_v15, %v1347_v1  ;;  %v979_v31 = vld [vmem:[#allocation2 + $0x1c] sm:$0xf]  ;;  %v1075_v36 = vshll.u32 %v978_v29, 16  ;;  %v627_v45 = vrot.slane %v622_v22, 4  ;;  %v425_v59 = vshrl.u32 %v6983_v26, 16  ;;  %v6473_v61 = vld [vmem:[#allocation7 + $0xf0] sm:$0xff]  }
  0x94   : > { %5945 = vmatpush3.bf16.msra.mxu1 %v6460_v35  ;;  %v1358_v34 = vsel %vm6905_vm7, %v1353_v20, %v1357_v10  ;;  %v1072_v35 = vshrl.u32 %v978_v29, 16  ;;  %v1081_v37 = vshll.u32 %v979_v31, 16  ;;  %v1085_v42 = vshrl.u32 %v979_v31, 16  ;;  %v730_v1 = vld [vmem:[#allocation2 + $0x24] sm:$0xf] }
  0x95   : > { %5946 = vmatprep.subr.bf16.mxu1 %v6461_v43  ;;  %v5552_v40 = vcombine.low %v1348_v28, %v1358_v34  ;;  %v980_v41 = vld [vmem:[#allocation2 + $0x20] sm:$0x1]  ;;  %v625_v43 = vor.u32 %v623_v18, %v622_v22  ;;  %v1077_v49 = vrot.slane %v1075_v36, 5  ;;  %v808_v54 = vsel %vm6917_vm9, %v617_v32, %v807_v23  ;;  %v734_v7 = vld [vmem:[#allocation2 + $0x2c] sm:$0x1] }
  0x96   : > { %v1074_v48 = vrot.slane %v1072_v35, 4  ;;  %v1083_v50 = vrot.slane %v1081_v37, 5  ;;  %v1091_v51 = vshll.u32 %v980_v41, 16  ;;  %v1087_v52 = vrot.slane %v1085_v42, 4  ;;  %809 = vst [vmem:[#allocation2 + $0xa8] sm:$0xf] %v808_v54 }
  0x97   : > { %4523 = vmatprep.mubr.bf16.mxu1 %v5552_v40  ;;  %v626_v53 = vsel %vm6911_vm8, %v618_v16, %v625_v43  ;;  %v812_v55 = vsel %vm6923_vm10, %v627_v45, %v811_v24  ;;  %v428_v60 = vshll.u32 %v6983_v26, 16  ;;  %v433_v63 = vshrl.u32 %v6985_v17, 16  ;;  %v814_v10 = vld [vmem:[#allocation2 + $0xb4] sm:$0xf]  ;;  %v6465_v16 = vld [vmem:[#allocation2 + $0x18] sm:$0xff]   ;;  %v222_v26 = vld [vmem:[%s6891_s9 + $0x30] sm:$0xff] }
  0x98   : > { %5947 = vmatpush3.bf16.msra.mxu1 %v6463_v5  ;;  %v1078_v57 = vor.u32 %v1077_v49, %v1074_v48  ;;  %v1093_v58 = vrot.slane %v1091_v51, 5  ;;  %810 = vst [vmem:[#allocation2 + $0xac] sm:$0xf] %v626_v53  ;;  %813 = vst [vmem:[#allocation2 + $0xb0] sm:$0x1] %v812_v55  ;;  %v1088_v62 = vor.u32 %v1087_v52, %v1083_v50  ;;  %v436_v0 = vshll.u32 %v6985_v17, 16 }
  0x99   : > { %5948 = vmatprep.subr.bf16.mxu1 %v6467_v13  ;;  %4524 = vmatmul.mubr.bf16.gmra.mrb[4].mxu1 %v6458_v21  ;;  %v629_v2 = vshrl.u32 %v6989_v27, 16  ;;  %v427_v6 = vrot.slane %v425_v59, 7  ;;  %v632_v8 = vshll.u32 %v6989_v27, 16  ;;  %v637_v9 = vshrl.u32 %v6991_v33, 16  ;;  %v6477_v21 = vld [vmem:[#allocation7 + $0xf8] sm:$0xff]   ;;  %v6481_v59 = vld [vmem:[#allocation7 + $0x1c0] sm:$0xff]  }
  0x9a   : > { %v1079_v5 = vrot.slane %v1078_v57, 4  ;;  %v1089_v11 = vrot.slane %v1088_v62, 4  ;;  %v435_v12 = vrot.slane %v433_v63, 7  ;;  %v640_v14 = vshll.u32 %v6991_v33, 16  ;;  %v818_v32 = vld [vmem:[#allocation2 + $0xbc] sm:$0x1] }
  0x9b   : > { %v631_v13 = vrot.slane %v629_v2, 7  ;;  %v430_v18 = vor.u32 %v428_v60, %v427_v6  ;;  %v431_v19 = vrot.slane %v427_v6, 4  ;;  %v639_v20 = vrot.slane %v637_v9, 7  ;;  %v6478_v27 = vld [vmem:[#allocation7 + $0xb8] sm:$0xff]  }
  0x9c   : > { %5949 = vmatpush3.bf16.msra.mxu1 %v6468_v25  ;;  %v1084_v15 = vsel %vm6905_vm7, %v1079_v5, %v1083_v50  ;;  %v1094_v22 = vsel %vm6905_vm7, %v1089_v11, %v1093_v58  ;;  %v438_v23 = vor.u32 %v436_v0, %v435_v12  ;;  %v440_v24 = vrot.slane %v435_v12, 4  ;;  %v223_v33 = vld [vmem:[%s6891_s9 + $0x38] sm:$0xff] }
  0x9d   : > { %5950 = vmatprep.subr.bf16.mxu1 %v6469_v39  ;;  %v634_v25 = vor.u32 %v632_v8, %v631_v13  ;;  %v5541_v17 = vcombine.low %v1084_v15, %v1094_v22  ;;  %v731_v28 = vsel %vm6917_vm9, %v430_v18, %v730_v1  ;;  %v635_v29 = vrot.slane %v631_v13, 4  ;;  %v1014_v34 = vld [vmem:[#allocation2 + $0xa8] sm:$0xf] }
  0x9e   : > { %v642_v31 = vor.u32 %v640_v14, %v639_v20  ;;  %v439_v37 = vsel %vm6911_vm8, %v431_v19, %v438_v23  ;;  %732 = vst [vmem:[#allocation2 + $0x24] sm:$0xf] %v731_v28  ;;  %v735_v39 = vsel %vm6923_vm10, %v440_v24, %v734_v7  ;;  %v5801_v41 = vpack.c.bf16 %v222_v26, %v222_v26 }
  0x9f   : > { %v1015_v35 = vld [vmem:[#allocation2 + $0xac] sm:$0xf]  ;;  %v1016_v36 = vld [vmem:[#allocation2 + $0xb0] sm:$0x1]  ;;  %v815_v40 = vsel %vm6917_vm9, %v634_v25, %v814_v10  ;;  %4435 = vmatprep.mubr.bf16.mxu0 %v5541_v17  ;;  %v1360_v42 = vshrl.u32 %v1014_v34, 16  ;;  %v1363_v43 = vshll.u32 %v1014_v34, 16  ;;  %v7025_v51 = vpack.c.bf16 %v223_v33, %v223_v33 }
  0xa0   : > { %5951 = vmatpush3.bf16.msra.mxu1 %v6470_v46  ;;  %v1369_v45 = vshll.u32 %v1015_v35, 16  ;;  %v1373_v46 = vshrl.u32 %v1015_v35, 16  ;;  %733 = vst [vmem:[#allocation2 + $0x28] sm:$0xf] %v439_v37  ;;  %736 = vst [vmem:[#allocation2 + $0x2c] sm:$0x1] %v735_v39  ;;  %4436 = vmatmul.mubr.bf16.gmra.mrb[8].mxu0 %v6465_v16  ;;  %v643_v49 = vsel %vm6911_vm8, %v635_v29, %v642_v31 }
  0xa1   : > { %5952 = vmatprep.subr.bf16.mxu1 %v6473_v61  ;;  %816 = vst [vmem:[#allocation2 + $0xb4] sm:$0xf] %v815_v40  ;;  %v1379_v48 = vshll.u32 %v1016_v36, 16  ;;  %v644_v50 = vrot.slane %v639_v20, 4  ;;  %v1362_v52 = vrot.slane %v1360_v42, 4  ;;  %v1365_v53 = vrot.slane %v1363_v43, 5 }
  0xa2   : > { %v1371_v54 = vrot.slane %v1369_v45, 5  ;;  %v1375_v55 = vrot.slane %v1373_v46, 4  ;;  %817 = vst [vmem:[#allocation2 + $0xb8] sm:$0xf] %v643_v49  ;;  %v442_v57 = vshrl.u32 %v5801_v41, 16  ;;  %v445_v58 = vshll.u32 %v5801_v41, 16 }
  0xa3   : > { %v819_v56 = vsel %vm6923_vm10, %v644_v50, %v818_v32  ;;  %v1366_v60 = vor.u32 %v1365_v53, %v1362_v52  ;;  %v1381_v62 = vrot.slane %v1379_v48, 5  ;;  %v450_v0 = vshrl.u32 %v7025_v51, 16  ;;  %v6466_v4 = vld [vmem:[#allocation2 + $0xa8] sm:$0xff]   ;;  %v7038_v16 = vld [vmem:[#allocation2 + $0x4] sm:$0xf]  ;;  %v6483_v39 = vld [vmem:[#allocation7 + $0x158] sm:$0xff]  }
  0xa4   : > { %5953 = vmatpush3.bf16.msra.mxu1 %v6475_v3  ;;  %v1376_v61 = vor.u32 %v1375_v55, %v1371_v54  ;;  %820 = vst [vmem:[#allocation2 + $0xbc] sm:$0x1] %v819_v56  ;;  %v7029_v63 = vrot.slane %v442_v57, 7  ;;  %v453_v1 = vshll.u32 %v7025_v51, 16  ;;  %v737_v17 = vld [vmem:[#allocation2 + $0x30] sm:$0xf]  ;;  %6058 = vmatprep.subr.bf16.mxu0 %v6483_v39 }
  0xa5   : > { %5954 = vmatprep.subr.bf16.mxu1 %v6477_v21  ;;  %v1367_v2 = vrot.slane %v1366_v60, 4  ;;  %v981_v5 = vld [vmem:[#allocation2 + $0x24] sm:$0xf]  ;;  %v1487_v37 = vld [vmem:[#allocation2] sm:$0xe]  ;;  %v1588_v45 = vrot.slane %v7038_v16, 5 }
  0xa6   : > { %v1377_v3 = vrot.slane %v1376_v61, 4  ;;  %v1096_v8 = vshrl.u32 %v981_v5, 16  ;;  %v1099_v9 = vshll.u32 %v981_v5, 16  ;;  %v447_v10 = vor.u32 %v445_v58, %v7029_v63  ;;  %v741_v43 = vld [vmem:[#allocation2 + $0x38] sm:$0x1]  ;;  %v6484_v53 = vld [vmem:[#allocation7 + $0x118] sm:$0xff]  }
  0xa7   : > { %v982_v6 = vld [vmem:[#allocation2 + $0x28] sm:$0xf]  ;;  %v983_v7 = vld [vmem:[#allocation2 + $0x2c] sm:$0x1]  ;;  %v1372_v11 = vsel %vm6905_vm7, %v1367_v2, %v1371_v54  ;;  %v448_v50 = vrot.slane %v7029_v63, 4  ;;  %v452_v51 = vrot.slane %v450_v0, 7  ;;  %6059 = vmatpush3.bf16.msra.mxu0 %v6484_v53 }
  0xa8   : > { %5955 = vmatpush3.bf16.msra.mxu1 %v6478_v27  ;;  %v1382_v12 = vsel %vm6905_vm7, %v1377_v3, %v1381_v62  ;;  %v1105_v13 = vshll.u32 %v982_v6, 16  ;;  %v1109_v14 = vshrl.u32 %v982_v6, 16  ;;  %v1017_v15 = vld [vmem:[#allocation2 + $0xb4] sm:$0xf]  ;;  %v1098_v19 = vrot.slane %v1096_v8, 4  ;;  %v6471_v49 = vld [vmem:[#allocation2 + $0x24] sm:$0xff]  }
  0xa9   : > { %6164 = vmatprep.subr.bf16.mxu1 %v6481_v59  ;;  %v5553_v18 = vcombine.low %v1372_v11, %v1382_v12  ;;  %v1101_v20 = vrot.slane %v1099_v9, 5  ;;  %v1115_v21 = vshll.u32 %v983_v7, 16  ;;  %v1018_v22 = vld [vmem:[#allocation2 + $0xb8] sm:$0xf]  ;;  %v1384_v25 = vshrl.u32 %v1017_v15, 16  ;;  %v6479_v8 = vld [vmem:[#allocation2 + $0xc] sm:$0xff]  }
  0xaa   : > { %v1107_v23 = vrot.slane %v1105_v13, 5  ;;  %v1111_v24 = vrot.slane %v1109_v14, 4  ;;  %v1387_v26 = vshll.u32 %v1017_v15, 16  ;;  %v1393_v32 = vshll.u32 %v1018_v22, 16  ;;  %v1489_v52 = vld [vmem:[#allocation2 + $0x8] sm:$0x1] }
  0xab   : > { %4531 = vmatprep.mubr.bf16.mxu1 %v5553_v18  ;;  %v1102_v28 = vor.u32 %v1101_v20, %v1098_v19  ;;  %v1117_v29 = vrot.slane %v1115_v21, 5  ;;  %v1019_v31 = vld [vmem:[#allocation2 + $0xbc] sm:$0x1]  ;;  %v1397_v27 = vshrl.u32 %v1018_v22, 16  ;;  %v1386_v34 = vrot.slane %v1384_v25, 4  ;;  %v6472_v5 = vld [vmem:[#allocation2 + $0xb4] sm:$0xff]  }
  0xac   : > { %4532 = vmatmul.mubr.bf16.gmra.mrb[8].mxu1 %v6466_v4  ;;  %v1112_v33 = vor.u32 %v1111_v24, %v1107_v23  ;;  %v1389_v35 = vrot.slane %v1387_v26, 5  ;;  %v1403_v36 = vshll.u32 %v1019_v31, 16  ;;  %v1395_v41 = vrot.slane %v1393_v32, 5  ;;  %v224_v58 = vld [vmem:[%s6891_s9 + $0x40] sm:$0xff]  ;;  %v225_v9 = vld [vmem:[%s6891_s9 + $0x48] sm:$0xff]  ;;  %v226_v20 = vld [vmem:[%s6891_s9 + $0x50] sm:$0xff] }
  0xad   : > { %v1103_v40 = vrot.slane %v1102_v28, 4  ;;  %v1399_v42 = vrot.slane %v1397_v27, 4  ;;  %v738_v57 = vsel %vm6917_vm9, %v447_v10, %v737_v17  ;;  %v455_v61 = vor.u32 %v453_v1, %v452_v51  ;;  %v7064_v18 = vld [vmem:[#allocation2 + $0xc] sm:$0xe]  ;;  %v7066_v19 = vld [vmem:[#allocation2 + $0x10] sm:$0xf] }
  0xae   : > { %v1113_v46 = vrot.slane %v1112_v33, 4  ;;  %v1390_v48 = vor.u32 %v1389_v35, %v1386_v34  ;;  %v1405_v56 = vrot.slane %v1403_v36, 5  ;;  %v457_v62 = vrot.slane %v452_v51, 4  ;;  %739 = vst [vmem:[#allocation2 + $0x30] sm:$0xf] %v738_v57 }
  0xaf   : > { %v1108_v54 = vsel %vm6905_vm7, %v1103_v40, %v1107_v23  ;;  %v1400_v55 = vor.u32 %v1399_v42, %v1395_v41  ;;  %v5555_v2 = vrot.slane %v1487_v37, 9  ;;  %v5803_v3 = vpack.c.bf16 %v224_v58, %v224_v58  ;;  %v7069_v24 = vld [vmem:[#allocation2 + $0x14] sm:$0x1]  ;;  %v744_v26 = vld [vmem:[#allocation2 + $0x3c] sm:$0xf] }
  0xb0   : > { %v1118_v59 = vsel %vm6905_vm7, %v1113_v46, %v1117_v29  ;;  %v1391_v60 = vrot.slane %v1390_v48, 4  ;;  %v456_v6 = vsel %vm6911_vm8, %v448_v50, %v455_v61  ;;  %v742_v7 = vsel %vm6923_vm10, %v457_v62, %v741_v43  ;;  %v227_v29 = vld [vmem:[%s6891_s9 + $0x58] sm:$0xff]  ;;  %v748_v36 = vld [vmem:[#allocation2 + $0x44] sm:$0x1]  ;;  %v6489_v42 = vld [vmem:[#allocation7 + $0x160] sm:$0xff]  }
  0xb1   : > { %v5542_v63 = vcombine.low %v1108_v54, %v1118_v59  ;;  %v1401_v0 = vrot.slane %v1400_v55, 4  ;;  %v1590_v1 = vrot.slane %v1588_v45, 4  ;;  %740 = vst [vmem:[#allocation2 + $0x34] sm:$0xf] %v456_v6  ;;  %743 = vst [vmem:[#allocation2 + $0x38] sm:$0x1] %v742_v7  ;;  %v5804_v13 = vpack.c.bf16 %v225_v9, %v225_v9  ;;  %6060 = vmatprep.subr.bf16.mxu0 %v6489_v42 }
  0xb2   : > { %v1396_v4 = vsel %vm6905_vm7, %v1391_v60, %v1395_v41  ;;  %v1591_v12 = vrot.slane %v1489_v52, 5  ;;  %v459_v14 = vshrl.u32 %v5803_v3, 16  ;;  %v462_v16 = vshll.u32 %v5803_v3, 16  ;;  %v6482_v54 = vld [vmem:[#allocation7 + $0x180] sm:$0xff]  }
  0xb3   : > { %4443 = vmatprep.mubr.bf16.mxu0 %v5542_v63  ;;  %v1406_v10 = vsel %vm6905_vm7, %v1401_v0, %v1405_v56  ;;  %v467_v22 = vshrl.u32 %v5804_v13, 16  ;;  %v470_v23 = vshll.u32 %v5804_v13, 16  ;;  %v1589_v25 = vsel %vm7060_vm13, %v5555_v2, %v1588_v45  ;;  %v6485_v60 = vld [vmem:[#allocation2 + $0x18] sm:$0xff]   ;;  %v751_v0 = vld [vmem:[#allocation2 + $0x48] sm:$0xf] }
  0xb4   : > { %v5554_v15 = vcombine.low %v1396_v4, %v1406_v10  ;;  %4444 = vmatmul.mubr.bf16.gmra.mrb[12].mxu0 %v6471_v49  ;;  %v461_v21 = vrot.slane %v459_v14, 7  ;;  %v5556_v17 = vrot.slane %v7064_v18, 9  ;;  %v1595_v28 = vrot.slane %v7066_v19, 5  ;;  %v1493_v2 = vld [vmem:[#allocation2 + $0x18] sm:$0xe]  ;;  %v6490_v4 = vld [vmem:[#allocation7 + $0x1c8] sm:$0xff]  }
  0xb5   : > { %v5805_v31 = vpack.c.bf16 %v226_v20, %v226_v20  ;;  %v984_v32 = vld [vmem:[#allocation2 + $0x30] sm:$0xf]  ;;  %v1592_v27 = vsel %vm7060_vm13, %v1590_v1, %v1591_v12  ;;  %v469_v35 = vrot.slane %v467_v22, 7  ;;  %v1598_v41 = vrot.slane %v7069_v24, 5  ;;  %v1494_v3 = vld [vmem:[#allocation2 + $0x1c] sm:$0xf] }
  0xb6   : > { %4539 = vmatprep.mubr.bf16.mxu1 %v5554_v15  ;;  %v464_v33 = vor.u32 %v462_v16, %v461_v21  ;;  %v465_v34 = vrot.slane %v461_v21, 4  ;;  %v1120_v37 = vshrl.u32 %v984_v32, 16  ;;  %v1123_v39 = vshll.u32 %v984_v32, 16  ;;  %v1495_v1 = vld [vmem:[#allocation2 + $0x20] sm:$0x1] }
  0xb7   : > { %4540 = vmatmul.mubr.bf16.gmra.mrb[12].mxu1 %v6472_v5  ;;  %v1597_v40 = vrot.slane %v1595_v28, 4  ;;  %v472_v43 = vor.u32 %v470_v23, %v469_v35  ;;  %v474_v45 = vrot.slane %v469_v35, 4  ;;  %v476_v48 = vshrl.u32 %v5805_v31, 16  ;;  %v755_v22 = vld [vmem:[#allocation2 + $0x50] sm:$0x1] }
  0xb8   : > { %4580 = vmatprep.mubr.bf16.mxu1 %v6479_v8  ;;  %v745_v46 = vsel %vm6917_vm9, %v464_v33, %v744_v26  ;;  %v985_v49 = vld [vmem:[#allocation2 + $0x34] sm:$0xf]  ;;  %v986_v50 = vld [vmem:[#allocation2 + $0x38] sm:$0x1]  ;;  %v1122_v51 = vrot.slane %v1120_v37, 4  ;;  %v1125_v52 = vrot.slane %v1123_v39, 5  ;;  %v5571_v53 = vcombine.low %v1589_v25, %v1592_v27 }
  0xb9   : > { %746 = vst [vmem:[#allocation2 + $0x3c] sm:$0xf] %v745_v46  ;;  %v5806_v55 = vpack.c.bf16 %v227_v29, %v227_v29  ;;  %v1129_v56 = vshll.u32 %v985_v49, 16  ;;  %v1133_v57 = vshrl.u32 %v985_v49, 16  ;;  %v1139_v58 = vshll.u32 %v986_v50, 16  ;;  %v6492_v46 = vld [vmem:[#allocation7 + $0x188] sm:$0xff]  }
  0xba   : > { %v473_v59 = vsel %vm6911_vm8, %v465_v34, %v472_v43  ;;  %v1126_v61 = vor.u32 %v1125_v52, %v1122_v51  ;;  %v749_v62 = vsel %vm6923_vm10, %v474_v45, %v748_v36  ;;  %v478_v63 = vrot.slane %v476_v48, 7  ;;  %v6491_v34 = vld [vmem:[#allocation7 + $0x120] sm:$0xff]   ;;  %v6480_v36 = vld [vmem:[#allocation2 + $0x30] sm:$0xff]  }
  0xbb   : > { %747 = vst [vmem:[#allocation2 + $0x40] sm:$0xf] %v473_v59  ;;  %v1131_v5 = vrot.slane %v1129_v56, 5  ;;  %v1135_v6 = vrot.slane %v1133_v57, 4  ;;  %v1141_v7 = vrot.slane %v1139_v58, 5  ;;  %v479_v8 = vshll.u32 %v5805_v31, 16  ;;  %6061 = vmatpush3.bf16.msra.mxu0 %v6491_v34 }
  0xbc   : > { %750 = vst [vmem:[#allocation2 + $0x44] sm:$0x1] %v749_v62  ;;  %v1127_v9 = vrot.slane %v1126_v61, 4  ;;  %v482_v10 = vrot.slane %v478_v63, 4  ;;  %v484_v12 = vshrl.u32 %v5806_v55, 16  ;;  %v487_v13 = vshll.u32 %v5806_v55, 16 }
  0xbd   : > { %v1136_v14 = vor.u32 %v1135_v6, %v1131_v5  ;;  %v481_v15 = vor.u32 %v479_v8, %v478_v63  ;;  %v5557_v16 = vrot.slane %v1493_v2, 9  ;;  %v1602_v18 = vrot.slane %v1494_v3, 5  ;;  %v228_v56 = vld [vmem:[%s6891_s9 + $0x60] sm:$0xff]  ;;  %v229_v57 = vld [vmem:[%s6891_s9 + $0x68] sm:$0xff] }
  0xbe   : > { %v1596_v19 = vsel %vm7060_vm13, %v5556_v17, %v1595_v28  ;;  %v1599_v20 = vsel %vm7060_vm13, %v1597_v40, %v1598_v41  ;;  %v486_v21 = vrot.slane %v484_v12, 7  ;;  %v1605_v23 = vrot.slane %v1495_v1, 5  ;;  %v6487_v28 = vld [vmem:[#allocation2 + $0x24] sm:$0xff]  }
  0xbf   : > { %4581 = vmatmul.mubr.bf16.vlgmr.msra.gmra.mrb[16].mxu1 %v5571_v53  ;;  %v1132_v24 = vsel %vm6905_vm7, %v1127_v9, %v1131_v5  ;;  %v1137_v25 = vrot.slane %v1136_v14, 4  ;;  %v752_v29 = vsel %vm6917_vm9, %v481_v15, %v751_v0  ;;  %v1604_v31 = vrot.slane %v1602_v18, 4  ;;  %v1496_v63 = vld [vmem:[#allocation2 + $0x24] sm:$0xe]  ;;  %v1497_v9 = vld [vmem:[#allocation2 + $0x28] sm:$0xf] }
  0xc0   : > { %6165 = vmatpush3.bf16.msra.mxu1 %v6482_v54  ;;  %4588 = vmatprep.mubr.bf16.mxu1 %v6485_v60  ;;  %v987_v26 = vld [vmem:[#allocation2 + $0x3c] sm:$0xf]  ;;  %v489_v33 = vor.u32 %v487_v13, %v486_v21  ;;  %v491_v17 = vrot.slane %v486_v21, 4  ;;  %753 = vst [vmem:[#allocation2 + $0x48] sm:$0xf] %v752_v29  ;;  %v5572_v39 = vcombine.low %v1596_v19, %v1599_v20  ;;  %v5558_v19 = vrot.slane %v1496_v63, 9 }
  0xc1   : > { %6166 = vmatprep.subr.bf16.mxu1 %v6490_v4  ;;  %v1144_v32 = vshrl.u32 %v987_v26, 16  ;;  %v1147_v27 = vshll.u32 %v987_v26, 16  ;;  %v1142_v35 = vsel %vm6905_vm7, %v1137_v25, %v1141_v7  ;;  %v1603_v54 = vsel %vm7060_vm13, %v5557_v16, %v1602_v18  ;;  %v758_v16 = vld [vmem:[#allocation2 + $0x54] sm:$0xf]  ;;  %v6496_v34 = vld [vmem:[#allocation7 + $0x128] sm:$0xff]  }
  0xc2   : > { %v988_v37 = vld [vmem:[#allocation2 + $0x40] sm:$0xf]  ;;  %v5543_v40 = vcombine.low %v1132_v24, %v1142_v35  ;;  %v490_v50 = vsel %vm6911_vm8, %v482_v10, %v489_v33  ;;  %v756_v51 = vsel %vm6923_vm10, %v491_v17, %v755_v22  ;;  %v1606_v55 = vsel %vm7060_vm13, %v1604_v31, %v1605_v23  ;;  %v6493_v18 = vld [vmem:[#allocation2 + $0x30] sm:$0xff]   ;;  %v762_v23 = vld [vmem:[#allocation2 + $0x5c] sm:$0x1] }
  0xc3   : > { %v989_v41 = vld [vmem:[#allocation2 + $0x44] sm:$0x1]  ;;  %v1146_v42 = vrot.slane %v1144_v32, 4  ;;  %v1149_v43 = vrot.slane %v1147_v27, 5  ;;  %v1153_v45 = vshll.u32 %v988_v37, 16  ;;  %v1157_v48 = vshrl.u32 %v988_v37, 16 }
  0xc4   : > { %v1163_v49 = vshll.u32 %v989_v41, 16  ;;  %4451 = vmatprep.mubr.bf16.mxu0 %v5543_v40  ;;  %754 = vst [vmem:[#allocation2 + $0x4c] sm:$0xf] %v490_v50  ;;  %757 = vst [vmem:[#allocation2 + $0x50] sm:$0x1] %v756_v51  ;;  %6167 = vmatpush3.bf16.msra.mxu1 %v6492_v46  ;;  %v5807_v59 = vpack.c.bf16 %v228_v56, %v228_v56  ;;  %v5808_v60 = vpack.c.bf16 %v229_v57, %v229_v57  ;;  %v6495_v10 = vld [vmem:[#allocation7 + $0x168] sm:$0xff]  }
  0xc5   : > { %v1150_v52 = vor.u32 %v1149_v43, %v1146_v42  ;;  %v1155_v53 = vrot.slane %v1153_v45, 5  ;;  %4452 = vmatmul.mubr.bf16.gmra.mrb[16].mxu0 %v6480_v36  ;;  %v1159_v58 = vrot.slane %v1157_v48, 4  ;;  %v5573_v3 = vcombine.low %v1603_v54, %v1606_v55  ;;  %v6486_v13 = vld [vmem:[#allocation2 + $0x3c] sm:$0xff]   ;;  %6062 = vmatprep.subr.bf16.mxu0 %v6495_v10  ;;  %v1498_v32 = vld [vmem:[#allocation2 + $0x2c] sm:$0x1]  ;;  %v231_v46 = vld [vmem:[%s6891_s9 + $0x78] sm:$0xff] }
  0xc6   : > { %v1165_v62 = vrot.slane %v1163_v49, 5  ;;  %v493_v4 = vshrl.u32 %v5807_v59, 16  ;;  %v496_v5 = vshll.u32 %v5807_v59, 16  ;;  %v501_v1 = vshrl.u32 %v5808_v60, 16  ;;  %v230_v40 = vld [vmem:[%s6891_s9 + $0x70] sm:$0xff]  ;;  %6063 = vmatpush3.bf16.msra.mxu0 %v6496_v34  ;;  %v6497_v55 = vld [vmem:[#allocation2 + $0x3c] sm:$0xff]  }
  0xc7   : > { %4589 = vmatmul.mubr.bf16.gmra.mrb[20].mxu1 %v5572_v39  ;;  %v1151_v61 = vrot.slane %v1150_v52, 4  ;;  %v1160_v0 = vor.u32 %v1159_v58, %v1155_v53  ;;  %v990_v2 = vld [vmem:[#allocation2 + $0x48] sm:$0xf]  ;;  %v504_v15 = vshll.u32 %v5808_v60, 16  ;;  %v1609_v24 = vrot.slane %v1497_v9, 5 }
  0xc8   : > { %4596 = vmatprep.mubr.bf16.mxu1 %v6487_v28  ;;  %v1168_v7 = vshrl.u32 %v990_v2, 16  ;;  %v1171_v8 = vshll.u32 %v990_v2, 16  ;;  %v495_v14 = vrot.slane %v493_v4, 7  ;;  %v503_v22 = vrot.slane %v501_v1, 7  ;;  %v1499_v59 = vld [vmem:[#allocation2 + $0x30] sm:$0xe] }
  0xc9   : > { %v1156_v6 = vsel %vm6905_vm7, %v1151_v61, %v1155_v53  ;;  %v1161_v12 = vrot.slane %v1160_v0, 4  ;;  %v1610_v52 = vsel %vm7060_vm13, %v5558_v19, %v1609_v24  ;;  %v1611_v53 = vrot.slane %v1609_v24, 4  ;;  %v1500_v60 = vld [vmem:[#allocation2 + $0x34] sm:$0xf]  ;;  %v1501_v61 = vld [vmem:[#allocation2 + $0x38] sm:$0x1] }
  0xca   : > { %v1170_v20 = vrot.slane %v1168_v7, 4  ;;  %v1173_v21 = vrot.slane %v1171_v8, 5  ;;  %v498_v31 = vor.u32 %v496_v5, %v495_v14  ;;  %v499_v36 = vrot.slane %v495_v14, 4  ;;  %v6499_v4 = vld [vmem:[#allocation7 + $0x1d0] sm:$0xff]   ;;  %v232_v19 = vld [vmem:[%s6891_s9 + $0x80] sm:$0xff] }
  0xcb   : > { %v1166_v25 = vsel %vm6905_vm7, %v1161_v12, %v1165_v62  ;;  %v991_v26 = vld [vmem:[#allocation2 + $0x4c] sm:$0xf]  ;;  %v992_v29 = vld [vmem:[#allocation2 + $0x50] sm:$0x1]  ;;  %v506_v37 = vor.u32 %v504_v15, %v503_v22  ;;  %v508_v39 = vrot.slane %v503_v22, 4  ;;  %v1612_v54 = vrot.slane %v1498_v32, 5  ;;  %6168 = vmatprep.subr.bf16.mxu1 %v6499_v4 }
  0xcc   : > { %v5544_v27 = vcombine.low %v1156_v6, %v1166_v25  ;;  %v1174_v33 = vor.u32 %v1173_v21, %v1170_v20  ;;  %v1177_v17 = vshll.u32 %v991_v26, 16  ;;  %v1181_v28 = vshrl.u32 %v991_v26, 16  ;;  %v6488_v63 = vld [vmem:[#allocation2 + $0x48] sm:$0xff]   ;;  %v233_v20 = vld [vmem:[%s6891_s9 + $0x88] sm:$0xff] }
  0xcd   : > { %v1187_v35 = vshll.u32 %v992_v29, 16  ;;  %v759_v45 = vsel %vm6917_vm9, %v498_v31, %v758_v16  ;;  %v507_v49 = vsel %vm6911_vm8, %v499_v36, %v506_v37  ;;  %v763_v50 = vsel %vm6923_vm10, %v508_v39, %v762_v23  ;;  %v6500_v1 = vld [vmem:[#allocation7 + $0x190] sm:$0xff]   ;;  %v765_v16 = vld [vmem:[#allocation2 + $0x60] sm:$0xf] }
  0xce   : > { %4459 = vmatprep.mubr.bf16.mxu0 %v5544_v27  ;;  %v1175_v41 = vrot.slane %v1174_v33, 4  ;;  %v1179_v42 = vrot.slane %v1177_v17, 5  ;;  %v1183_v43 = vrot.slane %v1181_v28, 4  ;;  %760 = vst [vmem:[#allocation2 + $0x54] sm:$0xf] %v759_v45  ;;  %v5809_v57 = vpack.c.bf16 %v230_v40, %v230_v40  ;;  %6169 = vmatpush3.bf16.msra.mxu1 %v6500_v1 }
  0xcf   : > { %4597 = vmatmul.mubr.bf16.gmra.mrb[24].mxu1 %v5573_v3  ;;  %4460 = vmatmul.mubr.bf16.gmra.mrb[20].mxu0 %v6486_v13  ;;  %v1189_v48 = vrot.slane %v1187_v35, 5  ;;  %761 = vst [vmem:[#allocation2 + $0x58] sm:$0xf] %v507_v49  ;;  %764 = vst [vmem:[#allocation2 + $0x5c] sm:$0x1] %v763_v50  ;;  %v5810_v58 = vpack.c.bf16 %v231_v46, %v231_v46  ;;  %v1613_v0 = vsel %vm7060_vm13, %v1611_v53, %v1612_v54 }
  0xd0   : > { %4604 = vmatprep.mubr.bf16.mxu1 %v6493_v18  ;;  %v1184_v51 = vor.u32 %v1183_v43, %v1179_v42  ;;  %v1180_v56 = vsel %vm6905_vm7, %v1175_v41, %v1179_v42  ;;  %v5559_v2 = vrot.slane %v1499_v59, 9  ;;  %v1616_v3 = vrot.slane %v1500_v60, 5  ;;  %v769_v22 = vld [vmem:[#allocation2 + $0x68] sm:$0x1]  ;;  %v1502_v53 = vld [vmem:[#allocation2 + $0x3c] sm:$0xe] }
  0xd1   : > { %v5574_v5 = vcombine.low %v1610_v52, %v1613_v0  ;;  %v510_v6 = vshrl.u32 %v5809_v57, 16  ;;  %v513_v7 = vshll.u32 %v5809_v57, 16  ;;  %v518_v8 = vshrl.u32 %v5810_v58, 16  ;;  %v6501_v41 = vld [vmem:[#allocation2 + $0x48] sm:$0xff]   ;;  %v1503_v54 = vld [vmem:[#allocation2 + $0x40] sm:$0xf] }
  0xd2   : > { %v1185_v62 = vrot.slane %v1184_v51, 4  ;;  %v521_v10 = vshll.u32 %v5810_v58, 16  ;;  %v1618_v12 = vrot.slane %v1616_v3, 4  ;;  %v1619_v18 = vrot.slane %v1501_v61, 5  ;;  %v1504_v59 = vld [vmem:[#allocation2 + $0x44] sm:$0x1] }
  0xd3   : > { %v512_v14 = vrot.slane %v510_v6, 7  ;;  %v520_v15 = vrot.slane %v518_v8, 7  ;;  %v1617_v23 = vsel %vm7060_vm13, %v5559_v2, %v1616_v3  ;;  %v5811_v24 = vpack.c.bf16 %v232_v19, %v232_v19  ;;  %v6504_v60 = vld [vmem:[#allocation7 + $0x130] sm:$0xff]  }
  0xd4   : > { %v1190_v9 = vsel %vm6905_vm7, %v1185_v62, %v1189_v48  ;;  %v5812_v25 = vpack.c.bf16 %v233_v20, %v233_v20  ;;  %v1620_v35 = vsel %vm7060_vm13, %v1618_v12, %v1619_v18  ;;  %v6503_v48 = vld [vmem:[#allocation7 + $0x170] sm:$0xff]   ;;  %v5560_v0 = vrot.slane %v1502_v53, 9  ;;  %v235_v18 = vld [vmem:[%s6891_s9 + $0x98] sm:$0xff] }
  0xd5   : > { %v5545_v13 = vcombine.low %v1180_v56, %v1190_v9  ;;  %v993_v21 = vld [vmem:[#allocation2 + $0x54] sm:$0xf]  ;;  %v515_v27 = vor.u32 %v513_v7, %v512_v14  ;;  %v523_v33 = vor.u32 %v521_v10, %v520_v15  ;;  %v516_v39 = vrot.slane %v512_v14, 4  ;;  %6064 = vmatprep.subr.bf16.mxu0 %v6503_v48  ;;  %v234_v9 = vld [vmem:[%s6891_s9 + $0x90] sm:$0xff] }
  0xd6   : > { %v994_v26 = vld [vmem:[#allocation2 + $0x58] sm:$0xf]  ;;  %v995_v29 = vld [vmem:[#allocation2 + $0x5c] sm:$0x1]  ;;  %v1192_v31 = vshrl.u32 %v993_v21, 16  ;;  %v1195_v32 = vshll.u32 %v993_v21, 16  ;;  %v5575_v52 = vcombine.low %v1617_v23, %v1620_v35  ;;  %6065 = vmatpush3.bf16.msra.mxu0 %v6504_v60 }
  0xd7   : > { %4605 = vmatmul.mubr.bf16.gmra.mrb[28].mxu1 %v5574_v5  ;;  %4467 = vmatprep.mubr.bf16.mxu0 %v5545_v13  ;;  %v1201_v17 = vshll.u32 %v994_v26, 16  ;;  %v1205_v28 = vshrl.u32 %v994_v26, 16  ;;  %v1211_v34 = vshll.u32 %v995_v29, 16  ;;  %v525_v40 = vrot.slane %v520_v15, 4  ;;  %v6494_v12 = vld [vmem:[#allocation2 + $0x54] sm:$0xff]  }
  0xd8   : > { %4612 = vmatprep.mubr.bf16.mxu1 %v6497_v55  ;;  %4468 = vmatmul.mubr.bf16.gmra.mrb[24].mxu0 %v6488_v63  ;;  %v1194_v36 = vrot.slane %v1192_v31, 4  ;;  %v1197_v37 = vrot.slane %v1195_v32, 5  ;;  %v766_v46 = vsel %vm6917_vm9, %v515_v27, %v765_v16  ;;  %v524_v50 = vsel %vm6911_vm8, %v516_v39, %v523_v33  ;;  %v772_v63 = vld [vmem:[#allocation2 + $0x6c] sm:$0xf]  ;;  %v776_v16 = vld [vmem:[#allocation2 + $0x74] sm:$0x1] }
  0xd9   : > { %v1203_v42 = vrot.slane %v1201_v17, 5  ;;  %v1207_v43 = vrot.slane %v1205_v28, 4  ;;  %v1213_v45 = vrot.slane %v1211_v34, 5  ;;  %767 = vst [vmem:[#allocation2 + $0x60] sm:$0xf] %v766_v46  ;;  %v770_v51 = vsel %vm6923_vm10, %v525_v40, %v769_v22  ;;  %v6505_v31 = vld [vmem:[#allocation2 + $0x54] sm:$0xff]  }
  0xda   : > { %v1198_v49 = vor.u32 %v1197_v37, %v1194_v36  ;;  %768 = vst [vmem:[#allocation2 + $0x64] sm:$0xf] %v524_v50  ;;  %771 = vst [vmem:[#allocation2 + $0x68] sm:$0x1] %v770_v51  ;;  %v527_v56 = vshrl.u32 %v5811_v24, 16  ;;  %v530_v57 = vshll.u32 %v5811_v24, 16  ;;  %v5813_v22 = vpack.c.bf16 %v234_v9, %v234_v9 }
  0xdb   : > { %v1208_v55 = vor.u32 %v1207_v43, %v1203_v42  ;;  %v535_v58 = vshrl.u32 %v5812_v25, 16  ;;  %v538_v62 = vshll.u32 %v5812_v25, 16  ;;  %v1623_v2 = vrot.slane %v1503_v54, 5  ;;  %v7153_v34 = vld [vmem:[#allocation2 + $0x48] sm:$0xe]  ;;  %v6507_v54 = vld [vmem:[#allocation7 + $0x1d8] sm:$0xff]  }
  0xdc   : > { %v1199_v61 = vrot.slane %v1198_v49, 4  ;;  %v529_v4 = vrot.slane %v527_v56, 7  ;;  %v1626_v6 = vrot.slane %v1504_v59, 5  ;;  %v5814_v29 = vpack.c.bf16 %v235_v18, %v235_v18  ;;  %v1507_v49 = vld [vmem:[#allocation2 + $0x50] sm:$0x1]  ;;  %6170 = vmatprep.subr.bf16.mxu1 %v6507_v54 }
  0xdd   : > { %v1209_v3 = vrot.slane %v1208_v55, 4  ;;  %v537_v5 = vrot.slane %v535_v58, 7  ;;  %v1624_v8 = vsel %vm7060_vm13, %v5560_v0, %v1623_v2  ;;  %v1625_v1 = vrot.slane %v1623_v2, 4  ;;  %v6508_v59 = vld [vmem:[#allocation7 + $0x198] sm:$0xff]   ;;  %v1509_v54 = vld [vmem:[#allocation2 + $0x58] sm:$0xf] }
  0xde   : > { %v1204_v7 = vsel %vm6905_vm7, %v1199_v61, %v1203_v42  ;;  %v532_v13 = vor.u32 %v530_v57, %v529_v4  ;;  %v533_v14 = vrot.slane %v529_v4, 4  ;;  %v1506_v42 = vld [vmem:[#allocation2 + $0x4c] sm:$0xf]  ;;  %v547_v46 = vshll.u32 %v5813_v22, 16  ;;  %6171 = vmatpush3.bf16.msra.mxu1 %v6508_v59 }
  0xdf   : > { %4613 = vmatmul.mubr.bf16.gmra.mrb[32].mxu1 %v5575_v52  ;;  %v1214_v10 = vsel %vm6905_vm7, %v1209_v3, %v1213_v45  ;;  %v540_v15 = vor.u32 %v538_v62, %v537_v5  ;;  %v542_v20 = vrot.slane %v537_v5, 4  ;;  %v1627_v21 = vsel %vm7060_vm13, %v1625_v1, %v1626_v6  ;;  %v779_v62 = vld [vmem:[#allocation2 + $0x78] sm:$0xf] }
  0xe0   : > { %4620 = vmatprep.mubr.bf16.mxu1 %v6501_v41  ;;  %v5546_v19 = vcombine.low %v1204_v7, %v1214_v10  ;;  %v996_v23 = vld [vmem:[#allocation2 + $0x60] sm:$0xf]  ;;  %v773_v25 = vsel %vm6917_vm9, %v532_v13, %v772_v63  ;;  %v5576_v26 = vcombine.low %v1624_v8, %v1627_v21  ;;  %v544_v41 = vshrl.u32 %v5813_v22, 16  ;;  %v6509_v13 = vld [vmem:[#allocation7 + $0x178] sm:$0xff]  }
  0xe1   : > { %v541_v24 = vsel %vm6911_vm8, %v533_v14, %v540_v15  ;;  %v997_v32 = vld [vmem:[#allocation2 + $0x64] sm:$0xf]  ;;  %v998_v27 = vld [vmem:[#allocation2 + $0x68] sm:$0x1]  ;;  %v1216_v33 = vshrl.u32 %v996_v23, 16  ;;  %v1219_v17 = vshll.u32 %v996_v23, 16  ;;  %v777_v28 = vsel %vm6923_vm10, %v542_v20, %v776_v16  ;;  %6066 = vmatprep.subr.bf16.mxu0 %v6509_v13 }
  0xe2   : > { %4475 = vmatprep.mubr.bf16.mxu0 %v5546_v19  ;;  %774 = vst [vmem:[#allocation2 + $0x6c] sm:$0xf] %v773_v25  ;;  %775 = vst [vmem:[#allocation2 + $0x70] sm:$0xf] %v541_v24  ;;  %v1225_v35 = vshll.u32 %v997_v32, 16  ;;  %v1229_v36 = vshrl.u32 %v997_v32, 16 }
  0xe3   : > { %4476 = vmatmul.mubr.bf16.gmra.mrb[28].mxu0 %v6494_v12  ;;  %v1235_v37 = vshll.u32 %v998_v27, 16  ;;  %778 = vst [vmem:[#allocation2 + $0x74] sm:$0x1] %v777_v28  ;;  %v1218_v39 = vrot.slane %v1216_v33, 4  ;;  %v1221_v40 = vrot.slane %v1219_v17, 5  ;;  %v552_v48 = vshrl.u32 %v5814_v29, 16 }
  0xe4   : > { %v1227_v43 = vrot.slane %v1225_v35, 5  ;;  %v1231_v45 = vrot.slane %v1229_v36, 4  ;;  %v546_v52 = vrot.slane %v544_v41, 7  ;;  %v555_v53 = vshll.u32 %v5814_v29, 16  ;;  %v6498_v0 = vld [vmem:[#allocation2 + $0x60] sm:$0xff]   ;;  %v6510_v23 = vld [vmem:[#allocation7 + $0x138] sm:$0xff]  }
  0xe5   : > { %v1222_v50 = vor.u32 %v1221_v40, %v1218_v39  ;;  %v1237_v51 = vrot.slane %v1235_v37, 5  ;;  %v554_v56 = vrot.slane %v552_v48, 7  ;;  %v5561_v57 = vrot.slane %v7153_v34, 9  ;;  %v783_v12 = vld [vmem:[#allocation2 + $0x80] sm:$0x1]  ;;  %v236_v29 = vld [vmem:[%s6891_s9 + $0xa0] sm:$0xff]  ;;  %6067 = vmatpush3.bf16.msra.mxu0 %v6510_v23 }
  0xe6   : > { %v1232_v55 = vor.u32 %v1231_v45, %v1227_v43  ;;  %v1630_v58 = vrot.slane %v1506_v42, 5  ;;  %v550_v61 = vrot.slane %v546_v52, 4  ;;  %v549_v4 = vor.u32 %v547_v46, %v546_v52  ;;  %v237_v33 = vld [vmem:[%s6891_s9 + $0xa8] sm:$0xff]  ;;  %v2436_v23 = vld [vmem:[#allocation2 + $0x14] sm:$0x1] }
  0xe7   : > { %4621 = vmatmul.mubr.bf16.gmra.mrb[36].mxu1 %v5576_v26  ;;  %v1223_v60 = vrot.slane %v1222_v50, 4  ;;  %v557_v5 = vor.u32 %v555_v53, %v554_v56  ;;  %v1633_v6 = vrot.slane %v1507_v49, 5  ;;  %v559_v25 = vrot.slane %v554_v56, 4  ;;  %v6511_v42 = vld [vmem:[#allocation2 + $0x60] sm:$0xff]   ;;  %v1508_v50 = vld [vmem:[#allocation2 + $0x54] sm:$0xe] }
  0xe8   : > { %4628 = vmatprep.mubr.bf16.mxu1 %v6505_v31  ;;  %v1233_v63 = vrot.slane %v1232_v55, 4  ;;  %v780_v26 = vsel %vm6917_vm9, %v549_v4, %v779_v62  ;;  %v1631_v32 = vsel %vm7060_vm13, %v5561_v57, %v1630_v58  ;;  %v1632_v27 = vrot.slane %v1630_v58, 4  ;;  %v786_v53 = vld [vmem:[#allocation2 + $0x84] sm:$0xf] }
  0xe9   : > { %v999_v2 = vld [vmem:[#allocation2 + $0x6c] sm:$0xf]  ;;  %v1000_v3 = vld [vmem:[#allocation2 + $0x70] sm:$0xf]  ;;  %v1228_v7 = vsel %vm6905_vm7, %v1223_v60, %v1227_v43  ;;  %v558_v18 = vsel %vm6911_vm8, %v550_v61, %v557_v5  ;;  %781 = vst [vmem:[#allocation2 + $0x78] sm:$0xf] %v780_v26  ;;  %v5815_v17 = vpack.c.bf16 %v236_v29, %v236_v29  ;;  %v784_v35 = vsel %vm6923_vm10, %v559_v25, %v783_v12 }
  0xea   : > { %v1001_v8 = vld [vmem:[#allocation2 + $0x74] sm:$0x1]  ;;  %v1240_v1 = vshrl.u32 %v999_v2, 16  ;;  %v1243_v9 = vshll.u32 %v999_v2, 16  ;;  %v1249_v10 = vshll.u32 %v1000_v3, 16  ;;  %v1238_v14 = vsel %vm6905_vm7, %v1233_v63, %v1237_v51  ;;  %v6502_v45 = vld [vmem:[#allocation2 + $0x6c] sm:$0xff]  }
  0xeb   : > { %v1253_v15 = vshrl.u32 %v1000_v3, 16  ;;  %v1259_v16 = vshll.u32 %v1001_v8, 16  ;;  %v5547_v19 = vcombine.low %v1228_v7, %v1238_v14  ;;  %782 = vst [vmem:[#allocation2 + $0x7c] sm:$0xf] %v558_v18  ;;  %v5816_v36 = vpack.c.bf16 %v237_v33, %v237_v33  ;;  %785 = vst [vmem:[#allocation2 + $0x80] sm:$0x1] %v784_v35 }
  0xec   : > { %v1242_v20 = vrot.slane %v1240_v1, 4  ;;  %v1245_v21 = vrot.slane %v1243_v9, 5  ;;  %v1251_v22 = vrot.slane %v1249_v10, 5  ;;  %v1634_v39 = vsel %vm7060_vm13, %v1632_v27, %v1633_v6  ;;  %v1510_v2 = vld [vmem:[#allocation2 + $0x5c] sm:$0x1]  ;;  %v6513_v29 = vld [vmem:[#allocation2 + $0x6c] sm:$0xff]  }
  0xed   : > { %v1255_v24 = vrot.slane %v1253_v15, 4  ;;  %4483 = vmatprep.mubr.bf16.mxu0 %v5547_v19  ;;  %v1261_v34 = vrot.slane %v1259_v16, 5  ;;  %v561_v40 = vshrl.u32 %v5815_v17, 16  ;;  %v564_v41 = vshll.u32 %v5815_v17, 16  ;;  %v2434_v10 = vld [vmem:[#allocation2 + $0xc] sm:$0xe] }
  0xee   : > { %v1246_v31 = vor.u32 %v1245_v21, %v1242_v20  ;;  %4484 = vmatmul.mubr.bf16.gmra.mrb[32].mxu0 %v6498_v0  ;;  %v5577_v46 = vcombine.low %v1631_v32, %v1634_v39  ;;  %v569_v48 = vshrl.u32 %v5816_v36, 16  ;;  %v572_v49 = vshll.u32 %v5816_v36, 16  ;;  %v790_v0 = vld [vmem:[#allocation2 + $0x8c] sm:$0x1]  ;;  %v2435_v18 = vld [vmem:[#allocation2 + $0x10] sm:$0xf] }
  0xef   : > { %v1256_v28 = vor.u32 %v1255_v24, %v1251_v22  ;;  %v563_v52 = vrot.slane %v561_v40, 7  ;;  %v5562_v55 = vrot.slane %v1508_v50, 9  ;;  %v1637_v59 = vrot.slane %v1509_v54, 5  ;;  %v6514_v24 = vld [vmem:[#allocation7 + $0x1e0] sm:$0xff]   ;;  %v1511_v27 = vld [vmem:[#allocation2 + $0x60] sm:$0xe] }
  0xf0   : > { %v1247_v37 = vrot.slane %v1246_v31, 4  ;;  %4629 = vmatmul.mubr.bf16.gmra.mrb[40].mxu1 %v5577_v46  ;;  %v571_v58 = vrot.slane %v569_v48, 7  ;;  %v1002_v3 = vld [vmem:[#allocation2 + $0x78] sm:$0xf]  ;;  %v1640_v26 = vrot.slane %v1510_v2, 5  ;;  %v5619_v31 = vrot.slane %v2434_v10, 9  ;;  %6172 = vmatprep.subr.bf16.mxu1 %v6514_v24 }
  0xf1   : > { %v1257_v43 = vrot.slane %v1256_v28, 4  ;;  %v566_v63 = vor.u32 %v564_v41, %v563_v52  ;;  %4636 = vmatprep.mubr.bf16.mxu1 %v6511_v42  ;;  %v567_v4 = vrot.slane %v563_v52, 4  ;;  %v1638_v6 = vsel %vm7060_vm13, %v5562_v55, %v1637_v59  ;;  %v7184_v33 = vld [vmem:[#allocation7 + $0x200] sm:$0xff]   ;;  %v1512_v36 = vld [vmem:[#allocation2 + $0x64] sm:$0xf] }
  0xf2   : > { %v1252_v51 = vsel %vm6905_vm7, %v1247_v37, %v1251_v22  ;;  %v1003_v57 = vld [vmem:[#allocation2 + $0x7c] sm:$0xf]  ;;  %v574_v5 = vor.u32 %v572_v49, %v571_v58  ;;  %v1264_v7 = vshrl.u32 %v1002_v3, 16  ;;  %v1267_v8 = vshll.u32 %v1002_v3, 16  ;;  %v1004_v12 = vld [vmem:[#allocation2 + $0x80] sm:$0x1]  ;;  %6300 = vmatprep.subr.bf16.mxu0 %v7184_v33 }
  0xf3   : > { %v1262_v56 = vsel %vm6905_vm7, %v1257_v43, %v1261_v34  ;;  %v1273_v61 = vshll.u32 %v1003_v57, 16  ;;  %v1277_v62 = vshrl.u32 %v1003_v57, 16  ;;  %v576_v14 = vrot.slane %v571_v58, 4  ;;  %v6516_v37 = vld [vmem:[#allocation7 + $0x1a0] sm:$0xff]   ;;  %v1513_v41 = vld [vmem:[#allocation2 + $0x68] sm:$0x1] }
  0xf4   : > { %v5548_v60 = vcombine.low %v1252_v51, %v1262_v56  ;;  %v575_v13 = vsel %vm6911_vm8, %v567_v4, %v574_v5  ;;  %v787_v15 = vsel %vm6917_vm9, %v566_v63, %v786_v53  ;;  %v1639_v16 = vrot.slane %v1637_v59, 4  ;;  %v1922_v43 = vld [vmem:[#allocation2 + $0xc] sm:$0xf]  ;;  %v1923_v50 = vld [vmem:[#allocation2 + $0x10] sm:$0xf]  ;;  %6173 = vmatpush3.bf16.msra.mxu1 %v6516_v37  ;;  %v6506_v51 = vld [vmem:[#allocation2 + $0x78] sm:$0xff]  }
  0xf5   : > { %v1275_v1 = vrot.slane %v1273_v61, 5  ;;  %v1279_v9 = vrot.slane %v1277_v62, 4  ;;  %v1266_v19 = vrot.slane %v1264_v7, 4  ;;  %v1269_v20 = vrot.slane %v1267_v8, 5  ;;  %788 = vst [vmem:[#allocation2 + $0x84] sm:$0xf] %v787_v15 }
  0xf6   : > { %4491 = vmatprep.mubr.bf16.mxu0 %v5548_v60  ;;  %v1283_v22 = vshll.u32 %v1004_v12, 16  ;;  %789 = vst [vmem:[#allocation2 + $0x88] sm:$0xf] %v575_v13  ;;  %v791_v25 = vsel %vm6923_vm10, %v576_v14, %v790_v0  ;;  %v2532_v32 = vrot.slane %v2435_v18, 5  ;;  %v2535_v35 = vrot.slane %v2436_v23, 5  ;;  %v6519_v57 = vld [vmem:[#allocation7 + $0x1e8] sm:$0xff]  }
  0xf7   : > { %4492 = vmatmul.mubr.bf16.gmra.mrb[36].mxu0 %v6502_v45  ;;  %v1280_v21 = vor.u32 %v1279_v9, %v1275_v1  ;;  %v1270_v17 = vor.u32 %v1269_v20, %v1266_v19  ;;  %792 = vst [vmem:[#allocation2 + $0x8c] sm:$0x1] %v791_v25  ;;  %v1641_v39 = vsel %vm7060_vm13, %v1639_v16, %v1640_v26  ;;  %v5563_v42 = vrot.slane %v1511_v27, 9  ;;  %v1924_v0 = vld [vmem:[#allocation2 + $0x14] sm:$0x1]  ;;  %v6517_v10 = vld [vmem:[#allocation2 + $0x78] sm:$0xff]  }
  0xf8   : > { %v1285_v34 = vrot.slane %v1283_v22, 5  ;;  %v2534_v40 = vrot.slane %v2532_v32, 4  ;;  %v5578_v48 = vcombine.low %v1638_v6, %v1641_v39  ;;  %v1644_v49 = vrot.slane %v1512_v36, 5  ;;  %6174 = vmatprep.subr.bf16.mxu1 %v6519_v57 }
  0xf9   : > { %v1281_v28 = vrot.slane %v1280_v21, 4  ;;  %v1271_v45 = vrot.slane %v1270_v17, 4  ;;  %v1647_v52 = vrot.slane %v1513_v41, 5  ;;  %v1971_v53 = vshrl.u32 %v1922_v43, 16 }
  0xfa   : > { %v1974_v54 = vshll.u32 %v1922_v43, 16  ;;  %4637 = vmatmul.mubr.bf16.gmra.mrb[44].mxu1 %v5578_v48  ;;  %v1646_v56 = vrot.slane %v1644_v49, 4  ;;  %v7195_v61 = vsel %vm7060_vm13, %v5619_v31, %v2532_v32  ;;  %v7199_v62 = vsel %vm7060_vm13, %v2534_v40, %v2535_v35  ;;  %v2438_v31 = vld [vmem:[#allocation2 + $0x1c] sm:$0xf]  ;;  %v1514_v40 = vld [vmem:[#allocation2 + $0x6c] sm:$0xe] }
  0xfb   : > { %v1286_v46 = vsel %vm6905_vm7, %v1281_v28, %v1285_v34  ;;  %v1276_v55 = vsel %vm6905_vm7, %v1271_v45, %v1275_v1  ;;  %4644 = vmatprep.mubr.bf16.mxu1 %v6513_v29  ;;  %v1645_v63 = vsel %vm7060_vm13, %v5563_v42, %v1644_v49  ;;  %v1973_v8 = vrot.slane %v1971_v53, 4  ;;  %v2437_v29 = vld [vmem:[#allocation2 + $0x18] sm:$0xe]  ;;  %v2439_v34 = vld [vmem:[#allocation2 + $0x20] sm:$0x1] }
  0xfc   : > { %v5549_v58 = vcombine.low %v1276_v55, %v1286_v46  ;;  %v1005_v59 = vld [vmem:[#allocation2 + $0x84] sm:$0xf]  ;;  %v1648_v7 = vsel %vm7060_vm13, %v1646_v56, %v1647_v52  ;;  %v1976_v1 = vrot.slane %v1974_v54, 5  ;;  %v1980_v9 = vshll.u32 %v1923_v50, 16  ;;  %v1515_v46 = vld [vmem:[#allocation2 + $0x70] sm:$0xf] }
  0xfd   : > { %v1006_v60 = vld [vmem:[#allocation2 + $0x88] sm:$0xf]  ;;  %v1288_v2 = vshrl.u32 %v1005_v59, 16  ;;  %v1291_v3 = vshll.u32 %v1005_v59, 16  ;;  %v5579_v18 = vcombine.low %v1645_v63, %v1648_v7  ;;  %v1984_v23 = vshrl.u32 %v1923_v50, 16 }
  0xfe   : > { %v1297_v4 = vshll.u32 %v1006_v60, 16  ;;  %v1301_v5 = vshrl.u32 %v1006_v60, 16  ;;  %4499 = vmatprep.mubr.bf16.mxu0 %v5549_v58  ;;  %v1007_v6 = vld [vmem:[#allocation2 + $0x8c] sm:$0x1]  ;;  %v1977_v19 = vor.u32 %v1976_v1, %v1973_v8  ;;  %v1982_v20 = vrot.slane %v1980_v9, 5  ;;  %v6512_v43 = vld [vmem:[#allocation2 + $0x84] sm:$0xff]  }
  0xff   : > { %4500 = vmatmul.mubr.bf16.gmra.mrb[40].mxu0 %v6506_v51  ;;  %v1290_v12 = vrot.slane %v1288_v2, 4  ;;  %v1293_v13 = vrot.slane %v1291_v3, 5  ;;  %v1307_v16 = vshll.u32 %v1007_v6, 16  ;;  %v1990_v24 = vshll.u32 %v1924_v0, 16  ;;  %v1516_v48 = vld [vmem:[#allocation2 + $0x74] sm:$0x1] }
 0x100   : > { %v1299_v14 = vrot.slane %v1297_v4, 5  ;;  %v1303_v15 = vrot.slane %v1301_v5, 4  ;;  %v1978_v26 = vrot.slane %v1977_v19, 4  ;;  %v5635_v17 = vcombine.low %v7195_v61, %v7199_v62  ;;  %v1925_v54 = vld [vmem:[#allocation2 + $0x18] sm:$0xf]  ;;  %v6518_v2 = vld [vmem:[#allocation2 + $0x84] sm:$0xff]  }
 0x101   : > { %v1294_v21 = vor.u32 %v1293_v13, %v1290_v12  ;;  %v1309_v25 = vrot.slane %v1307_v16, 5  ;;  %v1986_v28 = vrot.slane %v1984_v23, 4  ;;  %v1992_v35 = vrot.slane %v1990_v24, 5  ;;  %v1926_v55 = vld [vmem:[#allocation2 + $0x1c] sm:$0xf] }
 0x102   : > { %v1304_v22 = vor.u32 %v1303_v15, %v1299_v14  ;;  %4645 = vmatmul.mubr.bf16.gmra.mrb[48].mxu1 %v5579_v18  ;;  %v5620_v36 = vrot.slane %v2437_v29, 9  ;;  %v2539_v37 = vrot.slane %v2438_v31, 5  ;;  %v2542_v39 = vrot.slane %v2439_v34, 5  ;;  %v1927_v58 = vld [vmem:[#allocation2 + $0x20] sm:$0x1] }
 0x103   : > { %v1295_v32 = vrot.slane %v1294_v21, 4  ;;  %4652 = vmatprep.mubr.bf16.mxu1 %v6517_v10  ;;  %v1987_v45 = vor.u32 %v1986_v28, %v1982_v20  ;;  %v5564_v49 = vrot.slane %v1514_v40, 9  ;;  %v1983_v51 = vsel %vm6905_vm7, %v1978_v26, %v1982_v20  ;;  %v2440_v7 = vld [vmem:[#allocation2 + $0x24] sm:$0xe]  ;;  %v2441_v8 = vld [vmem:[#allocation2 + $0x28] sm:$0xf] }
 0x104   : > { %v1305_v27 = vrot.slane %v1304_v22, 4  ;;  %v2541_v52 = vrot.slane %v2539_v37, 4  ;;  %v1651_v53 = vrot.slane %v1515_v46, 5  ;;  %v1654_v57 = vrot.slane %v1516_v48, 5  ;;  %v2442_v13 = vld [vmem:[#allocation2 + $0x2c] sm:$0x1] }
 0x105   : > { %v1300_v41 = vsel %vm6905_vm7, %v1295_v32, %v1299_v14  ;;  %v1988_v56 = vrot.slane %v1987_v45, 4  ;;  %v1995_v59 = vshrl.u32 %v1925_v54, 16  ;;  %v1998_v60 = vshll.u32 %v1925_v54, 16  ;;  %v1517_v14 = vld [vmem:[#allocation2 + $0x78] sm:$0xe]  ;;  %v6520_v28 = vld [vmem:[#allocation7 + $0x208] sm:$0xff]  }
 0x106   : > { %v1310_v42 = vsel %vm6905_vm7, %v1305_v27, %v1309_v25  ;;  %v2540_v61 = vsel %vm7060_vm13, %v5620_v36, %v2539_v37  ;;  %v1652_v62 = vsel %vm7060_vm13, %v5564_v49, %v1651_v53  ;;  %v1653_v63 = vrot.slane %v1651_v53, 4  ;;  %v1518_v20 = vld [vmem:[#allocation2 + $0x7c] sm:$0xf]  ;;  %v1519_v21 = vld [vmem:[#allocation2 + $0x80] sm:$0x1] }
 0x107   : > { %v5550_v50 = vcombine.low %v1300_v41, %v1310_v42  ;;  %v2004_v0 = vshll.u32 %v1926_v55, 16  ;;  %v1993_v3 = vsel %vm6905_vm7, %v1988_v56, %v1992_v35  ;;  %v2543_v4 = vsel %vm7060_vm13, %v2541_v52, %v2542_v39  ;;  %v1928_v26 = vld [vmem:[#allocation2 + $0x24] sm:$0xf]  ;;  %v1930_v37 = vld [vmem:[#allocation2 + $0x2c] sm:$0x1] }
 0x108   : > { %v1997_v5 = vrot.slane %v1995_v59, 4  ;;  %v2000_v6 = vrot.slane %v1998_v60, 5  ;;  %v5603_v1 = vcombine.low %v1983_v51, %v1993_v3  ;;  %v1655_v9 = vsel %vm7060_vm13, %v1653_v63, %v1654_v57  ;;  %v6521_v48 = vld [vmem:[#allocation7 + $0x1a8] sm:$0xff]  }
 0x109   : > { %4507 = vmatprep.mubr.bf16.mxu0 %v5550_v50  ;;  %v2006_v10 = vrot.slane %v2004_v0, 5  ;;  %v2008_v12 = vshrl.u32 %v1926_v55, 16  ;;  %v5580_v15 = vcombine.low %v1652_v62, %v1655_v9  ;;  %v2014_v18 = vshll.u32 %v1927_v58, 16  ;;  %6175 = vmatpush3.bf16.msra.mxu1 %v6521_v48  ;;  %v2443_v62 = vld [vmem:[#allocation2 + $0x30] sm:$0xe]  ;;  %v6525_v48 = vld [vmem:[#allocation7 + $0x210] sm:$0xff]  }
 0x10a   : > { %4508 = vmatmul.mubr.bf16.gmra.mrb[44].mxu0 %v6512_v43  ;;  %v2001_v16 = vor.u32 %v2000_v6, %v1997_v5  ;;  %v5621_v19 = vrot.slane %v2440_v7, 9  ;;  %v2546_v23 = vrot.slane %v2441_v8, 5  ;;  %v2549_v24 = vrot.slane %v2442_v13, 5  ;;  %v2445_v0 = vld [vmem:[#allocation2 + $0x38] sm:$0x1] }
 0x10b   : > { %4741 = vmatprep.mubr.bf16.mxu0 %v5635_v17  ;;  %v2010_v22 = vrot.slane %v2008_v12, 4  ;;  %v5565_v25 = vrot.slane %v1517_v14, 9  ;;  %4653 = vmatmul.mubr.bf16.gmra.mrb[52].mxu1 %v5580_v15  ;;  %v2016_v31 = vrot.slane %v2014_v18, 5  ;;  %v1658_v32 = vrot.slane %v1518_v20, 5  ;;  %v1929_v17 = vld [vmem:[#allocation2 + $0x28] sm:$0xf] }
 0x10c   : > { %v2002_v29 = vrot.slane %v2001_v16, 4  ;;  %v1661_v27 = vrot.slane %v1519_v21, 5  ;;  %v5636_v34 = vcombine.low %v2540_v61, %v2543_v4  ;;  %4660 = vmatprep.mubr.bf16.mxu1 %v6518_v2  ;;  %v2548_v36 = vrot.slane %v2546_v23, 4  ;;  %v6522_v61 = vld [vmem:[#allocation2 + $0x90] sm:$0xff]   ;;  %v1520_v8 = vld [vmem:[#allocation2 + $0x84] sm:$0xe] }
 0x10d   : > { %v2011_v35 = vor.u32 %v2010_v22, %v2006_v10  ;;  %v2019_v39 = vshrl.u32 %v1928_v26, 16  ;;  %v1659_v40 = vsel %vm7060_vm13, %v5565_v25, %v1658_v32  ;;  %v1660_v41 = vrot.slane %v1658_v32, 4  ;;  %v1522_v12 = vld [vmem:[#allocation2 + $0x8c] sm:$0x1]  ;;  %v1931_v20 = vld [vmem:[#allocation2 + $0x30] sm:$0xf] }
 0x10e   : > { %v2022_v42 = vshll.u32 %v1928_v26, 16  ;;  %v2028_v46 = vshll.u32 %v1929_v17, 16  ;;  %v2007_v49 = vsel %vm6905_vm7, %v2002_v29, %v2006_v10  ;;  %v2032_v52 = vshrl.u32 %v1929_v17, 16  ;;  %v6524_v15 = vld [vmem:[#allocation7 + $0x1f0] sm:$0xff]   ;;  %v1932_v21 = vld [vmem:[#allocation2 + $0x34] sm:$0xf] }
 0x10f   : > { %v2012_v43 = vrot.slane %v2011_v35, 4  ;;  %v2021_v45 = vrot.slane %v2019_v39, 4  ;;  %v1662_v50 = vsel %vm7060_vm13, %v1660_v41, %v1661_v27  ;;  %v2038_v56 = vshll.u32 %v1930_v37, 16  ;;  %v1933_v25 = vld [vmem:[#allocation2 + $0x38] sm:$0x1]  ;;  %v6523_v29 = vld [vmem:[#allocation2 + $0x9c] sm:$0xff]   ;;  %6176 = vmatprep.subr.bf16.mxu1 %v6524_v15 }
 0x110   : > { %v2024_v51 = vrot.slane %v2022_v42, 5  ;;  %v5581_v54 = vcombine.low %v1659_v40, %v1662_v50  ;;  %v2030_v55 = vrot.slane %v2028_v46, 5  ;;  %v2547_v57 = vsel %vm7060_vm13, %v5621_v19, %v2546_v23  ;;  %v2447_v39 = vld [vmem:[#allocation2 + $0x40] sm:$0xf]  ;;  %v2448_v40 = vld [vmem:[#allocation2 + $0x44] sm:$0x1] }
 0x111   : > { %v2017_v53 = vsel %vm6905_vm7, %v2012_v43, %v2016_v31  ;;  %v2550_v58 = vsel %vm7060_vm13, %v2548_v36, %v2549_v24  ;;  %v2034_v60 = vrot.slane %v2032_v52, 4  ;;  %v2040_v63 = vrot.slane %v2038_v56, 5  ;;  %v1523_v46 = vld [vmem:[#allocation2 + $0x90] sm:$0xe]  ;;  %v1525_v56 = vld [vmem:[#allocation2 + $0x98] sm:$0x1] }
 0x112   : > { %4742 = vmatmul.mubr.bf16.vlgmr.msra.gmra.mrb[48].mxu0 %v5603_v1  ;;  %v2025_v59 = vor.u32 %v2024_v51, %v2021_v45  ;;  %v5622_v2 = vrot.slane %v2443_v62, 9  ;;  %v5604_v4 = vcombine.low %v2007_v49, %v2017_v53  ;;  %v2556_v7 = vrot.slane %v2445_v0, 5  ;;  %v1521_v1 = vld [vmem:[#allocation2 + $0x88] sm:$0xf]  ;;  %v1524_v53 = vld [vmem:[#allocation2 + $0x94] sm:$0xf] }
 0x113   : > { %6301 = vmatpush3.bf16.msra.mxu0 %v7184_v33  ;;  %4749 = vmatprep.mubr.bf16.mxu0 %v5636_v34  ;;  %v2444_v33 = vld [vmem:[#allocation2 + $0x34] sm:$0xf]  ;;  %v2035_v6 = vor.u32 %v2034_v60, %v2030_v55  ;;  %v5637_v9 = vcombine.low %v2547_v57, %v2550_v58  ;;  %v5566_v13 = vrot.slane %v1520_v8, 9  ;;  %v1665_v14 = vrot.slane %v1521_v1, 5  ;;  %v1935_v0 = vld [vmem:[#allocation2 + $0x40] sm:$0xf] }
 0x114   : > { %6302 = vmatprep.subr.bf16.mxu0 %v6520_v28  ;;  %v2553_v3 = vrot.slane %v2444_v33, 5  ;;  %4661 = vmatmul.mubr.bf16.gmra.mrb[56].mxu1 %v5581_v54  ;;  %v2026_v5 = vrot.slane %v2025_v59, 4  ;;  %v1668_v19 = vrot.slane %v1522_v12, 5  ;;  %v2043_v26 = vshrl.u32 %v1931_v20, 16  ;;  %v6526_v59 = vld [vmem:[#allocation7 + $0x1b0] sm:$0xff]  }
 0x115   : > { %4668 = vmatprep.mubr.bf16.mxu1 %v6522_v61  ;;  %v2036_v18 = vrot.slane %v2035_v6, 4  ;;  %v1666_v23 = vsel %vm7060_vm13, %v5566_v13, %v1665_v14  ;;  %v1667_v24 = vrot.slane %v1665_v14, 4  ;;  %v2046_v27 = vshll.u32 %v1931_v20, 16  ;;  %6177 = vmatpush3.bf16.msra.mxu1 %v6526_v59  ;;  %v6529_v14 = vld [vmem:[#allocation7 + $0x1f8] sm:$0xff]  }
 0x116   : > { %v2555_v10 = vrot.slane %v2553_v3, 4  ;;  %v2031_v16 = vsel %vm6905_vm7, %v2026_v5, %v2030_v55  ;;  %v2554_v22 = vsel %vm7060_vm13, %v5622_v2, %v2553_v3  ;;  %v2052_v17 = vshll.u32 %v1932_v21, 16  ;;  %v1936_v5 = vld [vmem:[#allocation2 + $0x44] sm:$0x1]  ;;  %6178 = vmatprep.subr.bf16.mxu1 %v6529_v14 }
 0x117   : > { %6303 = vmatpush3.bf16.msra.mxu0 %v6520_v28  ;;  %v2041_v31 = vsel %vm6905_vm7, %v2036_v18, %v2040_v63  ;;  %v2446_v28 = vld [vmem:[#allocation2 + $0x3c] sm:$0xe]  ;;  %v1669_v35 = vsel %vm7060_vm13, %v1667_v24, %v1668_v19  ;;  %v2045_v36 = vrot.slane %v2043_v26, 4  ;;  %v2056_v37 = vshrl.u32 %v1932_v21, 16  ;;  %v2449_v26 = vld [vmem:[#allocation2 + $0x48] sm:$0xe] }
 0x118   : > { %v2557_v32 = vsel %vm7060_vm13, %v2555_v10, %v2556_v7  ;;  %v5605_v34 = vcombine.low %v2031_v16, %v2041_v31  ;;  %v5582_v41 = vcombine.low %v1666_v23, %v1669_v35  ;;  %v2048_v42 = vrot.slane %v2046_v27, 5  ;;  %6304 = vmatprep.subr.bf16.mxu0 %v6525_v48  ;;  %v1934_v63 = vld [vmem:[#allocation2 + $0x3c] sm:$0xf]  ;;  %v2451_v27 = vld [vmem:[#allocation2 + $0x50] sm:$0x1] }
 0x119   : > { %v2054_v43 = vrot.slane %v2052_v17, 5  ;;  %v2062_v45 = vshll.u32 %v1933_v25, 16  ;;  %v2058_v49 = vrot.slane %v2056_v37, 4  ;;  %v5623_v50 = vrot.slane %v2446_v28, 9  ;;  %v1526_v37 = vld [vmem:[#allocation2 + $0x9c] sm:$0xe] }
 0x11a   : > { %4750 = vmatmul.mubr.bf16.gmra.mrb[52].mxu0 %v5604_v4  ;;  %v2560_v51 = vrot.slane %v2447_v39, 5  ;;  %v2563_v52 = vrot.slane %v2448_v40, 5  ;;  %v2049_v54 = vor.u32 %v2048_v42, %v2045_v36  ;;  %v5567_v57 = vrot.slane %v1523_v46, 9  ;;  %v1527_v39 = vld [vmem:[#allocation2 + $0xa0] sm:$0xf] }
 0x11b   : > { %4757 = vmatprep.mubr.bf16.mxu0 %v5637_v9  ;;  %v2064_v55 = vrot.slane %v2062_v45, 5  ;;  %v1672_v58 = vrot.slane %v1524_v53, 5  ;;  %v5638_v60 = vcombine.low %v2554_v22, %v2557_v32  ;;  %v2059_v61 = vor.u32 %v2058_v49, %v2054_v43  ;;  %6305 = vmatpush3.bf16.msra.mxu0 %v6525_v48  ;;  %v6527_v9 = vld [vmem:[#allocation2 + $0xa8] sm:$0xff]  }
 0x11c   : > { %4669 = vmatmul.mubr.bf16.gmra.mrb[60].mxu1 %v5582_v41  ;;  %v2562_v62 = vrot.slane %v2560_v51, 4  ;;  %v1675_v33 = vrot.slane %v1525_v56, 5  ;;  %v2050_v2 = vrot.slane %v2049_v54, 4  ;;  %v2067_v6 = vshrl.u32 %v1934_v63, 16  ;;  %v1937_v46 = vld [vmem:[#allocation2 + $0x48] sm:$0xf] }
 0x11d   : > { %4676 = vmatprep.mubr.bf16.mxu1 %v6523_v29  ;;  %v1673_v3 = vsel %vm7060_vm13, %v5567_v57, %v1672_v58  ;;  %v1674_v4 = vrot.slane %v1672_v58, 4  ;;  %v2060_v7 = vrot.slane %v2059_v61, 4  ;;  %v2070_v8 = vshll.u32 %v1934_v63, 16  ;;  %v2450_v29 = vld [vmem:[#allocation2 + $0x4c] sm:$0xf]  ;;  %v6530_v57 = vld [vmem:[#allocation7 + $0x218] sm:$0xff]  }
 0x11e   : > { %v2076_v1 = vshll.u32 %v1935_v0, 16  ;;  %v2055_v10 = vsel %vm6905_vm7, %v2050_v2, %v2054_v43  ;;  %v2069_v13 = vrot.slane %v2067_v6, 4  ;;  %v2561_v20 = vsel %vm7060_vm13, %v5623_v50, %v2560_v51  ;;  %v1528_v43 = vld [vmem:[#allocation2 + $0xa4] sm:$0x1]  ;;  %v1938_v51 = vld [vmem:[#allocation2 + $0x4c] sm:$0xf]  ;;  %6306 = vmatprep.subr.bf16.mxu0 %v6530_v57 }
 0x11f   : > { %v1676_v12 = vsel %vm7060_vm13, %v1674_v4, %v1675_v33  ;;  %v2065_v15 = vsel %vm6905_vm7, %v2060_v7, %v2064_v55  ;;  %v2072_v18 = vrot.slane %v2070_v8, 5  ;;  %v2564_v21 = vsel %vm7060_vm13, %v2562_v62, %v2563_v52  ;;  %v1939_v52 = vld [vmem:[#allocation2 + $0x50] sm:$0x1]  ;;  %v6528_v62 = vld [vmem:[#allocation2 + $0xb4] sm:$0xff]   ;;  %6307 = vmatpush3.bf16.msra.mxu0 %v6530_v57 }
 0x120   : > { %v5583_v16 = vcombine.low %v1673_v3, %v1676_v12  ;;  %v2078_v19 = vrot.slane %v2076_v1, 5  ;;  %v2080_v22 = vshrl.u32 %v1935_v0, 16  ;;  %v2086_v23 = vshll.u32 %v1936_v5, 16  ;;  %v2452_v33 = vld [vmem:[#allocation2 + $0x54] sm:$0xe] }
 0x121   : > { %v5606_v24 = vcombine.low %v2055_v10, %v2065_v15  ;;  %v2073_v25 = vor.u32 %v2072_v18, %v2069_v13  ;;  %v5624_v17 = vrot.slane %v2449_v26, 9  ;;  %v2567_v28 = vrot.slane %v2450_v29, 5  ;;  %v2453_v4 = vld [vmem:[#allocation2 + $0x58] sm:$0xf]  ;;  %v6531_v5 = vld [vmem:[#allocation7 + $0x1b8] sm:$0xff]  }
 0x122   : > { %4758 = vmatmul.mubr.bf16.gmra.mrb[56].mxu0 %v5605_v34  ;;  %v2082_v31 = vrot.slane %v2080_v22, 4  ;;  %v2088_v32 = vrot.slane %v2086_v23, 5  ;;  %v5639_v34 = vcombine.low %v2561_v20, %v2564_v21  ;;  %v2570_v36 = vrot.slane %v2451_v27, 5  ;;  %v1529_v10 = vld [vmem:[#allocation2 + $0xa8] sm:$0xe]  ;;  %6179 = vmatpush3.bf16.msra.mxu1 %v6531_v5 }
 0x123   : > { %4765 = vmatprep.mubr.bf16.mxu0 %v5638_v60  ;;  %v2074_v35 = vrot.slane %v2073_v25, 4  ;;  %v7262_v41 = vsel %vm7060_vm13, %v5624_v17, %v2567_v28  ;;  %v2569_v42 = vrot.slane %v2567_v28, 4  ;;  %v5568_v45 = vrot.slane %v1526_v37, 9  ;;  %v1531_v18 = vld [vmem:[#allocation2 + $0xb0] sm:$0x1] }
 0x124   : > { %4677 = vmatmul.mubr.bf16.gmra.mrb[64].mxu1 %v5583_v16  ;;  %v2083_v40 = vor.u32 %v2082_v31, %v2078_v19  ;;  %v1679_v49 = vrot.slane %v1527_v39, 5  ;;  %v1682_v50 = vrot.slane %v1528_v43, 5  ;;  %v2091_v55 = vshrl.u32 %v1937_v46, 16  ;;  %v1530_v16 = vld [vmem:[#allocation2 + $0xac] sm:$0xf] }
 0x125   : > { %4684 = vmatprep.mubr.bf16.mxu1 %v6527_v9  ;;  %v2079_v48 = vsel %vm6905_vm7, %v2074_v35, %v2078_v19  ;;  %v2571_v54 = vsel %vm7060_vm13, %v2569_v42, %v2570_v36  ;;  %v2094_v56 = vshll.u32 %v1937_v46, 16  ;;  %v2100_v61 = vshll.u32 %v1938_v51, 16  ;;  %v2454_v9 = vld [vmem:[#allocation2 + $0x5c] sm:$0x1]  ;;  %v1940_v23 = vld [vmem:[#allocation2 + $0x54] sm:$0xf] }
 0x126   : > { %v2084_v53 = vrot.slane %v2083_v40, 4  ;;  %v5640_v58 = vcombine.low %v7262_v41, %v2571_v54  ;;  %v1680_v59 = vsel %vm7060_vm13, %v5568_v45, %v1679_v49  ;;  %v1681_v60 = vrot.slane %v1679_v49, 4  ;;  %v1941_v31 = vld [vmem:[#allocation2 + $0x58] sm:$0xf]  ;;  %v1942_v27 = vld [vmem:[#allocation2 + $0x5c] sm:$0x1] }
 0x127   : > { %v2093_v0 = vrot.slane %v2091_v55, 4  ;;  %v2096_v2 = vrot.slane %v2094_v56, 5  ;;  %v2104_v3 = vshrl.u32 %v1938_v51, 16  ;;  %v2102_v8 = vrot.slane %v2100_v61, 5  ;;  %v247_v45 = vld [vmem:[%s6891_s9 + $0xf8] sm:$0xff]  ;;  %v6534_v51 = vld [vmem:[#allocation7 + $0x220] sm:$0xff]  }
 0x128   : > { %v2089_v63 = vsel %vm6905_vm7, %v2084_v53, %v2088_v32  ;;  %v1683_v7 = vsel %vm7060_vm13, %v1681_v60, %v1682_v50  ;;  %v2110_v1 = vshll.u32 %v1939_v52, 16  ;;  %v5625_v15 = vrot.slane %v2452_v33, 9  ;;  %v2455_v60 = vld [vmem:[#allocation2 + $0x60] sm:$0xe]  ;;  %v2456_v61 = vld [vmem:[#allocation2 + $0x64] sm:$0xf]  ;;  %6308 = vmatprep.subr.bf16.mxu0 %v6534_v51 }
 0x129   : > { %v5607_v6 = vcombine.low %v2079_v48, %v2089_v63  ;;  %v5584_v12 = vcombine.low %v1680_v59, %v1683_v7  ;;  %v2097_v13 = vor.u32 %v2096_v2, %v2093_v0  ;;  %v2106_v14 = vrot.slane %v2104_v3, 4  ;;  %v2457_v63 = vld [vmem:[#allocation2 + $0x68] sm:$0x1]  ;;  %6309 = vmatpush3.bf16.msra.mxu0 %v6534_v51  ;;  %v1532_v7 = vld [vmem:[#allocation2 + $0xb4] sm:$0xe] }
 0x12a   : > { %4766 = vmatmul.mubr.bf16.gmra.mrb[60].mxu0 %v5606_v24  ;;  %v2112_v19 = vrot.slane %v2110_v1, 5  ;;  %v2574_v20 = vrot.slane %v2453_v4, 5  ;;  %v2577_v21 = vrot.slane %v2454_v9, 5  ;;  %v5569_v22 = vrot.slane %v1529_v10, 9  ;;  %v2867_v51 = vld [vmem:[#allocation2 + $0x18] sm:$0xf] }
 0x12b   : > { %4773 = vmatprep.mubr.bf16.mxu0 %v5639_v34  ;;  %v2098_v24 = vrot.slane %v2097_v13, 4  ;;  %v2107_v25 = vor.u32 %v2106_v14, %v2102_v8  ;;  %v1686_v26 = vrot.slane %v1530_v16, 5  ;;  %v1689_v29 = vrot.slane %v1531_v18, 5  ;;  %v246_v34 = vld [vmem:[%s6891_s9 + $0xf0] sm:$0xff]  ;;  %v1533_v13 = vld [vmem:[#allocation2 + $0xb8] sm:$0xf] }
 0x12c   : > { %4685 = vmatmul.mubr.bf16.gmra.mrb[68].mxu1 %v5584_v12  ;;  %v2576_v32 = vrot.slane %v2574_v20, 4  ;;  %v2115_v17 = vshrl.u32 %v1940_v23, 16  ;;  %v2118_v28 = vshll.u32 %v1940_v23, 16  ;;  %v2575_v40 = vsel %vm7060_vm13, %v5625_v15, %v2574_v20  ;;  %v1534_v14 = vld [vmem:[#allocation2 + $0xbc] sm:$0x1] }
 0x12d   : > { %4692 = vmatprep.mubr.bf16.mxu1 %v6528_v62  ;;  %v2103_v35 = vsel %vm6905_vm7, %v2098_v24, %v2102_v8  ;;  %v2108_v36 = vrot.slane %v2107_v25, 4  ;;  %v1687_v37 = vsel %vm7060_vm13, %v5569_v22, %v1686_v26  ;;  %v1688_v39 = vrot.slane %v1686_v26, 4  ;;  %v6537_v8 = vld [vmem:[#allocation7 + $0x228] sm:$0xff]  }
 0x12e   : > { %v2117_v41 = vrot.slane %v2115_v17, 4  ;;  %v2120_v42 = vrot.slane %v2118_v28, 5  ;;  %v2124_v43 = vshll.u32 %v1941_v31, 16  ;;  %v2578_v48 = vsel %vm7060_vm13, %v2576_v32, %v2577_v21  ;;  %v821_v18 = vld [vmem:[#allocation2 + $0xc0] sm:$0xf]  ;;  %6310 = vmatprep.subr.bf16.mxu0 %v6537_v8 }
 0x12f   : > { %v2113_v46 = vsel %vm6905_vm7, %v2108_v36, %v2112_v19  ;;  %v1690_v49 = vsel %vm7060_vm13, %v1688_v39, %v1689_v29  ;;  %v2128_v50 = vshrl.u32 %v1941_v31, 16  ;;  %v2134_v57 = vshll.u32 %v1942_v27, 16  ;;  %v1943_v25 = vld [vmem:[#allocation2 + $0x60] sm:$0xf]  ;;  %6311 = vmatpush3.bf16.msra.mxu0 %v6537_v8  ;;  %v1944_v27 = vld [vmem:[#allocation2 + $0x64] sm:$0xf] }
 0x130   : > { %v5608_v52 = vcombine.low %v2103_v35, %v2113_v46  ;;  %v5585_v53 = vcombine.low %v1687_v37, %v1690_v49  ;;  %v2121_v54 = vor.u32 %v2120_v42, %v2117_v41  ;;  %v2126_v55 = vrot.slane %v2124_v43, 5  ;;  %v1945_v36 = vld [vmem:[#allocation2 + $0x68] sm:$0x1]  ;;  %v2458_v37 = vld [vmem:[#allocation2 + $0x6c] sm:$0xe] }
 0x131   : > { %v2130_v56 = vrot.slane %v2128_v50, 4  ;;  %v5826_v59 = vpack.c.bf16 %v247_v45, %v247_v45  ;;  %v5641_v62 = vcombine.low %v2575_v40, %v2578_v48  ;;  %v5626_v0 = vrot.slane %v2455_v60, 9  ;;  %v2459_v43 = vld [vmem:[#allocation2 + $0x70] sm:$0xf]  ;;  %v2460_v45 = vld [vmem:[#allocation2 + $0x74] sm:$0x1] }
 0x132   : > { %4774 = vmatmul.mubr.bf16.gmra.mrb[64].mxu0 %v5607_v6  ;;  %v2122_v33 = vrot.slane %v2121_v54, 4  ;;  %v2581_v2 = vrot.slane %v2456_v61, 5  ;;  %v2136_v4 = vrot.slane %v2134_v57, 5  ;;  %v2584_v20 = vrot.slane %v2457_v63, 5  ;;  %v2869_v60 = vld [vmem:[#allocation2 + $0x20] sm:$0x1] }
 0x133   : > { %4781 = vmatprep.mubr.bf16.mxu0 %v5640_v58  ;;  %v5825_v58 = vpack.c.bf16 %v246_v34, %v246_v34  ;;  %v2131_v3 = vor.u32 %v2130_v56, %v2126_v55  ;;  %v654_v9 = vshrl.u32 %v5826_v59, 16  ;;  %v657_v10 = vshll.u32 %v5826_v59, 16  ;;  %v2868_v56 = vld [vmem:[#allocation2 + $0x1c] sm:$0xf] }
 0x134   : > { %4693 = vmatmul.mubr.bf16.gmra.mrb[72].mxu1 %v5585_v53  ;;  %v2127_v1 = vsel %vm6905_vm7, %v2122_v33, %v2126_v55  ;;  %v2582_v12 = vsel %vm7060_vm13, %v5626_v0, %v2581_v2  ;;  %v2583_v19 = vrot.slane %v2581_v2, 4  ;;  %v5570_v22 = vrot.slane %v1532_v7, 9  ;;  %v1946_v0 = vld [vmem:[#allocation2 + $0x6c] sm:$0xf] }
 0x135   : > { %v646_v5 = vshrl.u32 %v5825_v58, 16  ;;  %v649_v6 = vshll.u32 %v5825_v58, 16  ;;  %v2132_v15 = vrot.slane %v2131_v3, 4  ;;  %v7293_v21 = vrot.slane %v654_v9, 7  ;;  %v1947_v9 = vld [vmem:[#allocation2 + $0x70] sm:$0xf] }
 0x136   : > { %v1693_v23 = vrot.slane %v1533_v13, 5  ;;  %v1696_v24 = vrot.slane %v1534_v14, 5  ;;  %v2585_v32 = vsel %vm7060_vm13, %v2583_v19, %v2584_v20  ;;  %v2139_v42 = vshrl.u32 %v1943_v25, 16 }
 0x137   : > { %v648_v16 = vrot.slane %v646_v5, 7  ;;  %v2137_v26 = vsel %vm6905_vm7, %v2132_v15, %v2136_v4  ;;  %v659_v28 = vor.u32 %v657_v10, %v7293_v21  ;;  %v661_v34 = vrot.slane %v7293_v21, 4  ;;  %v6543_v10 = vld [vmem:[#allocation7 + $0x238] sm:$0xff]  }
 0x138   : > { %v5609_v17 = vcombine.low %v2127_v1, %v2137_v26  ;;  %v5642_v35 = vcombine.low %v2582_v12, %v2585_v32  ;;  %v7305_v40 = vsel %vm7060_vm13, %v5570_v22, %v1693_v23  ;;  %v1695_v41 = vrot.slane %v1693_v23, 4 }
 0x139   : > { %v651_v29 = vor.u32 %v649_v6, %v648_v16  ;;  %v652_v31 = vrot.slane %v648_v16, 4  ;;  %v2142_v48 = vshll.u32 %v1943_v25, 16  ;;  %v2148_v49 = vshll.u32 %v1944_v27, 16  ;;  %v1948_v16 = vld [vmem:[#allocation2 + $0x74] sm:$0x1] }
 0x13a   : > { %4782 = vmatmul.mubr.bf16.gmra.mrb[68].mxu0 %v5608_v52  ;;  %v2152_v50 = vshrl.u32 %v1944_v27, 16  ;;  %v6540_v52 = vld [vmem:[#allocation7 + $0x230] sm:$0xff]   ;;  %v1697_v44 = vsel %vm7060_vm13, %v1695_v41, %v1696_v24  ;;  %v2141_v53 = vrot.slane %v2139_v42, 4  ;;  %v2158_v54 = vshll.u32 %v1945_v36, 16  ;;  %v2462_v36 = vld [vmem:[#allocation2 + $0x7c] sm:$0xf] }
 0x13b   : > { %4789 = vmatprep.mubr.bf16.mxu0 %v5641_v62  ;;  %v822_v39 = vsel %vm6917_vm9, %v651_v29, %v821_v18  ;;  %v660_v46 = vsel %vm6911_vm8, %v652_v31, %v659_v28  ;;  %v5627_v55 = vrot.slane %v2458_v37, 9  ;;  %v5586_v57 = vcombine.low %v7305_v40, %v1697_v44  ;;  %6312 = vmatprep.subr.bf16.mxu0 %v6540_v52  ;;  %v2461_v31 = vld [vmem:[#allocation2 + $0x78] sm:$0xe]  ;;  %v2463_v42 = vld [vmem:[#allocation2 + $0x80] sm:$0x1] }
 0x13c   : > { %823 = vst [vmem:[#allocation2 + $0xc0] sm:$0xf] %v822_v39  ;;  %824 = vst [vmem:[#allocation2 + $0xc4] sm:$0xf] %v660_v46  ;;  %v2144_v58 = vrot.slane %v2142_v48, 5  ;;  %v2150_v59 = vrot.slane %v2148_v49, 5  ;;  %6313 = vmatpush3.bf16.msra.mxu0 %v6540_v52 }
 0x13d   : > { %v2154_v38 = vrot.slane %v2152_v50, 4  ;;  %v2160_v61 = vrot.slane %v2158_v54, 5  ;;  %v2588_v62 = vrot.slane %v2459_v43, 5  ;;  %v2591_v33 = vrot.slane %v2460_v45, 5  ;;  %6314 = vmatprep.subr.bf16.mxu0 %v6543_v10  ;;  %v2870_v49 = vld [vmem:[#allocation2 + $0x24] sm:$0xf] }
 0x13e   : > { %v2916_v63 = vshrl.u32 %v2867_v51, 16  ;;  %v2145_v2 = vor.u32 %v2144_v58, %v2141_v53  ;;  %v2919_v4 = vshll.u32 %v2867_v51, 16  ;;  %v2925_v5 = vshll.u32 %v2868_v56, 16  ;;  %v2871_v53 = vld [vmem:[#allocation2 + $0x28] sm:$0xf] }
 0x13f   : > { %v2155_v3 = vor.u32 %v2154_v38, %v2150_v59  ;;  %v2589_v6 = vsel %vm7060_vm13, %v5627_v55, %v2588_v62  ;;  %v2590_v7 = vrot.slane %v2588_v62, 4  ;;  %v2929_v1 = vshrl.u32 %v2868_v56, 16  ;;  %v2872_v38 = vld [vmem:[#allocation2 + $0x2c] sm:$0x1] }
 0x140   : > { %v2918_v8 = vrot.slane %v2916_v63, 4  ;;  %v2146_v12 = vrot.slane %v2145_v2, 4  ;;  %v2921_v14 = vrot.slane %v2919_v4, 5  ;;  %v2927_v15 = vrot.slane %v2925_v5, 5  ;;  %6315 = vmatpush3.bf16.msra.mxu0 %v6543_v10  ;;  %v1949_v63 = vld [vmem:[#allocation2 + $0x78] sm:$0xf] }
 0x141   : > { %v2156_v13 = vrot.slane %v2155_v3, 4  ;;  %v2592_v18 = vsel %vm7060_vm13, %v2590_v7, %v2591_v33  ;;  %v2931_v19 = vrot.slane %v2929_v1, 4  ;;  %v2935_v20 = vshll.u32 %v2869_v60, 16 }
 0x142   : > { %4790 = vmatmul.mubr.bf16.gmra.mrb[72].mxu0 %v5609_v17  ;;  %v2163_v22 = vshrl.u32 %v1946_v0, 16  ;;  %v2151_v24 = vsel %vm6905_vm7, %v2146_v12, %v2150_v59  ;;  %v5643_v26 = vcombine.low %v2589_v6, %v2592_v18  ;;  %v2922_v29 = vor.u32 %v2921_v14, %v2918_v8 }
 0x143   : > { %4797 = vmatprep.mubr.bf16.mxu0 %v5642_v35  ;;  %v6532_v23 = vld [vmem:[#allocation2 + $0xc0] sm:$0xff]   ;;  %v2161_v25 = vsel %vm6905_vm7, %v2156_v13, %v2160_v61  ;;  %v2932_v17 = vor.u32 %v2931_v19, %v2927_v15  ;;  %v2937_v28 = vrot.slane %v2935_v20, 5  ;;  %v2166_v39 = vshll.u32 %v1946_v0, 16 }
 0x144   : > { %v5610_v27 = vcombine.low %v2151_v24, %v2161_v25  ;;  %v2165_v35 = vrot.slane %v2163_v22, 4  ;;  %4700 = vmatprep.mubr.bf16.mxu1 %v6532_v23  ;;  %v2923_v37 = vrot.slane %v2922_v29, 4  ;;  %v2172_v40 = vshll.u32 %v1947_v9, 16  ;;  %v2464_v23 = vld [vmem:[#allocation2 + $0x84] sm:$0xe] }
 0x145   : > { %v2176_v41 = vshrl.u32 %v1947_v9, 16  ;;  %4701 = vmatmul.mubr.bf16.gmra.mrb[76].mxu1 %v5586_v57  ;;  %v2933_v43 = vrot.slane %v2932_v17, 4  ;;  %v2182_v45 = vshll.u32 %v1948_v16, 16  ;;  %v5628_v46 = vrot.slane %v2461_v31, 9  ;;  %v6533_v57 = vld [vmem:[#allocation2 + $0x18] sm:$0xff]  }
 0x146   : > { %v2595_v48 = vrot.slane %v2462_v36, 5  ;;  %v2928_v50 = vsel %vm6905_vm7, %v2923_v37, %v2927_v15  ;;  %v2168_v51 = vrot.slane %v2166_v39, 5  ;;  %v2174_v52 = vrot.slane %v2172_v40, 5  ;;  %v1950_v9 = vld [vmem:[#allocation2 + $0x7c] sm:$0xf] }
 0x147   : > { %v2178_v44 = vrot.slane %v2176_v41, 4  ;;  %v2938_v55 = vsel %vm6905_vm7, %v2933_v43, %v2937_v28  ;;  %v2184_v56 = vrot.slane %v2182_v45, 5  ;;  %v2598_v33 = vrot.slane %v2463_v42, 5  ;;  %v1951_v16 = vld [vmem:[#allocation2 + $0x80] sm:$0x1] }
 0x148   : > { %v2596_v58 = vsel %vm7060_vm13, %v5628_v46, %v2595_v48  ;;  %v2597_v59 = vrot.slane %v2595_v48, 4  ;;  %v5667_v60 = vcombine.low %v2928_v50, %v2938_v55  ;;  %v2169_v61 = vor.u32 %v2168_v51, %v2165_v35  ;;  %v2465_v31 = vld [vmem:[#allocation2 + $0x88] sm:$0xf]  ;;  %v2873_v37 = vld [vmem:[#allocation2 + $0x30] sm:$0xf] }
 0x149   : > { %v2179_v62 = vor.u32 %v2178_v44, %v2174_v52  ;;  %v2940_v2 = vshrl.u32 %v2870_v49, 16  ;;  %v2943_v3 = vshll.u32 %v2870_v49, 16  ;;  %v2949_v4 = vshll.u32 %v2871_v53, 16  ;;  %v2874_v43 = vld [vmem:[#allocation2 + $0x34] sm:$0xf]  ;;  %v6535_v50 = vld [vmem:[#allocation2 + $0x24] sm:$0xff]  }
 0x14a   : > { %4798 = vmatmul.mubr.bf16.gmra.mrb[76].mxu0 %v5610_v27  ;;  %v2953_v5 = vshrl.u32 %v2871_v53, 16  ;;  %4902 = vmatprep.mubr.bf16.mxu1 %v5667_v60  ;;  %v2170_v6 = vrot.slane %v2169_v61, 4  ;;  %v2599_v8 = vsel %vm7060_vm13, %v2597_v59, %v2598_v33  ;;  %v2959_v1 = vshll.u32 %v2872_v38, 16  ;;  %v2466_v27 = vld [vmem:[#allocation2 + $0x8c] sm:$0x1] }
 0x14b   : > { %4805 = vmatprep.mubr.bf16.mxu0 %v5643_v26  ;;  %v2180_v7 = vrot.slane %v2179_v62, 4  ;;  %v5644_v12 = vcombine.low %v2596_v58, %v2599_v8  ;;  %v2942_v13 = vrot.slane %v2940_v2, 4  ;;  %v2945_v14 = vrot.slane %v2943_v3, 5  ;;  %v2875_v51 = vld [vmem:[#allocation2 + $0x38] sm:$0x1] }
 0x14c   : > { %v2951_v15 = vrot.slane %v2949_v4, 5  ;;  %v2175_v18 = vsel %vm6905_vm7, %v2170_v6, %v2174_v52  ;;  %v2955_v20 = vrot.slane %v2953_v5, 4  ;;  %v2961_v22 = vrot.slane %v2959_v1, 5  ;;  %v1952_v33 = vld [vmem:[#allocation2 + $0x84] sm:$0xf] }
 0x14d   : > { %v2185_v19 = vsel %vm6905_vm7, %v2180_v7, %v2184_v56  ;;  %4903 = vmatmul.mubr.bf16.vlgmr.msra.gmra.mrb[80].mxu1 %v6533_v57  ;;  %v2946_v25 = vor.u32 %v2945_v14, %v2942_v13  ;;  %v2187_v26 = vshrl.u32 %v1949_v63, 16  ;;  %v2190_v29 = vshll.u32 %v1949_v63, 16  ;;  %v1953_v5 = vld [vmem:[#allocation2 + $0x88] sm:$0xf] }
 0x14e   : > { %v5611_v24 = vcombine.low %v2175_v18, %v2185_v19  ;;  %v2956_v17 = vor.u32 %v2955_v20, %v2951_v15  ;;  %v2196_v28 = vshll.u32 %v1950_v9, 16  ;;  %v2200_v35 = vshrl.u32 %v1950_v9, 16  ;;  %v1954_v9 = vld [vmem:[#allocation2 + $0x8c] sm:$0x1]  ;;  %v2468_v18 = vld [vmem:[#allocation2 + $0x94] sm:$0xf] }
 0x14f   : > { %v2206_v36 = vshll.u32 %v1951_v16, 16  ;;  %v2947_v39 = vrot.slane %v2946_v25, 4  ;;  %v2189_v40 = vrot.slane %v2187_v26, 4  ;;  %v2192_v41 = vrot.slane %v2190_v29, 5  ;;  %v2469_v19 = vld [vmem:[#allocation2 + $0x98] sm:$0x1] }
 0x150   : > { %v5629_v42 = vrot.slane %v2464_v23, 9  ;;  %v2957_v45 = vrot.slane %v2956_v17, 4  ;;  %v2198_v46 = vrot.slane %v2196_v28, 5  ;;  %v2202_v48 = vrot.slane %v2200_v35, 4  ;;  %v2876_v26 = vld [vmem:[#allocation2 + $0x3c] sm:$0xf] }
 0x151   : > { %v2208_v49 = vrot.slane %v2206_v36, 5  ;;  %v2952_v52 = vsel %vm6905_vm7, %v2947_v39, %v2951_v15  ;;  %v2193_v44 = vor.u32 %v2192_v41, %v2189_v40  ;;  %v2602_v53 = vrot.slane %v2465_v31, 5  ;;  %v2877_v35 = vld [vmem:[#allocation2 + $0x40] sm:$0xf] }
 0x152   : > { %4806 = vmatmul.mubr.bf16.gmra.mrb[80].mxu0 %v5611_v24  ;;  %v2605_v55 = vrot.slane %v2466_v27, 5  ;;  %v2962_v56 = vsel %vm6905_vm7, %v2957_v45, %v2961_v22  ;;  %v2203_v57 = vor.u32 %v2202_v48, %v2198_v46  ;;  %v2964_v58 = vshrl.u32 %v2873_v37, 16 }
 0x153   : > { %4813 = vmatprep.mubr.bf16.mxu0 %v5644_v12  ;;  %v2967_v59 = vshll.u32 %v2873_v37, 16  ;;  %v5668_v38 = vcombine.low %v2952_v52, %v2962_v56  ;;  %v2194_v60 = vrot.slane %v2193_v44, 4  ;;  %v2603_v61 = vsel %vm7060_vm13, %v5629_v42, %v2602_v53  ;;  %v2467_v12 = vld [vmem:[#allocation2 + $0x90] sm:$0xe] }
 0x154   : > { %v2604_v62 = vrot.slane %v2602_v53, 4  ;;  %v2204_v63 = vrot.slane %v2203_v57, 4  ;;  %v2966_v2 = vrot.slane %v2964_v58, 4  ;;  %v2973_v4 = vshll.u32 %v2874_v43, 16 }
 0x155   : > { %v2969_v3 = vrot.slane %v2967_v59, 5  ;;  %4910 = vmatprep.mubr.bf16.mxu1 %v5668_v38  ;;  %v2199_v6 = vsel %vm6905_vm7, %v2194_v60, %v2198_v46  ;;  %v2977_v8 = vshrl.u32 %v2874_v43, 16  ;;  %v2983_v1 = vshll.u32 %v2875_v51, 16  ;;  %v2878_v60 = vld [vmem:[#allocation2 + $0x44] sm:$0x1] }
 0x156   : > { %v7320_v32 = vpop.f32.mrb[0].mxu0  ;;  %v2606_v7 = vsel %vm7060_vm13, %v2604_v62, %v2605_v55  ;;  %v2209_v13 = vsel %vm6905_vm7, %v2204_v63, %v2208_v49  ;;  %4911 = vmatmul.mubr.bf16.gmra.mrb[84].mxu1 %v6535_v50  ;;  %v2975_v16 = vrot.slane %v2973_v4, 5  ;;  %v2211_v25 = vshrl.u32 %v1952_v33, 16  ;;  %v6536_v55 = vld [vmem:[#allocation2 + $0x30] sm:$0xff]  }
 0x157   : > { %v7324_v54 = vpop.f32.mrb[1].mxu0  ;;  %v5645_v14 = vcombine.low %v2603_v61, %v2606_v7  ;;  %v2970_v15 = vor.u32 %v2969_v3, %v2966_v2  ;;  %v5612_v22 = vcombine.low %v2199_v6, %v2209_v13  ;;  %v2979_v23 = vrot.slane %v2977_v8, 4  ;;  %v1955_v62 = vld [vmem:[#allocation2 + $0x90] sm:$0xf]  ;;  %v1956_v4 = vld [vmem:[#allocation2 + $0x94] sm:$0xf] }
 0x158   : > { %v7330_v0 = vpop.f32.mrb[2].mxu0  ;;  %v2985_v24 = vrot.slane %v2983_v1, 5  ;;  %v2214_v27 = vshll.u32 %v1952_v33, 16  ;;  %v2220_v17 = vshll.u32 %v1953_v5, 16  ;;  %v2224_v28 = vshrl.u32 %v1953_v5, 16 }
 0x159   : > { %v7334_v10 = vpop.f32.mrb[3].mxu0  ;;  %v2971_v31 = vrot.slane %v2970_v15, 4  ;;  %v2980_v36 = vor.u32 %v2979_v23, %v2975_v16  ;;  %v2213_v37 = vrot.slane %v2211_v25, 4  ;;  %v2230_v39 = vshll.u32 %v1954_v9, 16  ;;  %v1957_v9 = vld [vmem:[#allocation2 + $0x98] sm:$0x1] }
 0x15a   : > { %4814 = vmatmul.mubr.bf16.gmra.mrb[84].mxu0 %v5612_v22  ;;  %v5630_v40 = vrot.slane %v2467_v12, 9  ;;  %v2216_v43 = vrot.slane %v2214_v27, 5  ;;  %v2222_v45 = vrot.slane %v2220_v17, 5  ;;  %v2226_v46 = vrot.slane %v2224_v28, 4  ;;  %v2879_v27 = vld [vmem:[#allocation2 + $0x48] sm:$0xf] }
 0x15b   : > { %4821 = vmatprep.mubr.bf16.mxu0 %v5645_v14  ;;  %v2976_v42 = vsel %vm6905_vm7, %v2971_v31, %v2975_v16  ;;  %v2981_v49 = vrot.slane %v2980_v36, 4  ;;  %v2232_v50 = vrot.slane %v2230_v39, 5  ;;  %v2609_v51 = vrot.slane %v2468_v18, 5  ;;  %v2470_v18 = vld [vmem:[#allocation2 + $0x9c] sm:$0xe] }
 0x15c   : > { %v2612_v52 = vrot.slane %v2469_v19, 5  ;;  %v2217_v44 = vor.u32 %v2216_v43, %v2213_v37  ;;  %v2227_v53 = vor.u32 %v2226_v46, %v2222_v45  ;;  %v2988_v56 = vshrl.u32 %v2876_v26, 16  ;;  %v2471_v19 = vld [vmem:[#allocation2 + $0xa0] sm:$0xf]  ;;  %v2472_v31 = vld [vmem:[#allocation2 + $0xa4] sm:$0x1] }
 0x15d   : > { %v2991_v57 = vshll.u32 %v2876_v26, 16  ;;  %v2986_v58 = vsel %vm6905_vm7, %v2981_v49, %v2985_v24  ;;  %v2610_v59 = vsel %vm7060_vm13, %v5630_v40, %v2609_v51  ;;  %v2611_v38 = vrot.slane %v2609_v51, 4 }
 0x15e   : > { %v7352_v20 = vpop.f32.mrb[0].mxu1  ;;  %v2997_v61 = vshll.u32 %v2877_v35, 16  ;;  %v5669_v33 = vcombine.low %v2976_v42, %v2986_v58  ;;  %v2218_v63 = vrot.slane %v2217_v44, 4  ;;  %v2228_v2 = vrot.slane %v2227_v53, 4  ;;  %v6538_v58 = vld [vmem:[#allocation2 + $0x3c] sm:$0xff]  }
 0x15f   : > { %v7354_v29 = vpop.f32.mrb[1].mxu1  ;;  %v2990_v3 = vrot.slane %v2988_v56, 4  ;;  %v2613_v6 = vsel %vm7060_vm13, %v2611_v38, %v2612_v52  ;;  %v2993_v7 = vrot.slane %v2991_v57, 5  ;;  %v3001_v1 = vshrl.u32 %v2877_v35, 16  ;;  %v2880_v38 = vld [vmem:[#allocation2 + $0x4c] sm:$0xf] }
 0x160   : > { %v7356_v41 = vpop.f32.mrb[2].mxu1  ;;  %v2999_v8 = vrot.slane %v2997_v61, 5  ;;  %4918 = vmatprep.mubr.bf16.mxu1 %v5669_v33  ;;  %v2223_v13 = vsel %vm6905_vm7, %v2218_v63, %v2222_v45  ;;  %v2233_v14 = vsel %vm6905_vm7, %v2228_v2, %v2232_v50  ;;  %v5646_v15 = vcombine.low %v2610_v59, %v2613_v6  ;;  %v2881_v63 = vld [vmem:[#allocation2 + $0x50] sm:$0x1] }
 0x161   : > { %v7360_v48 = vpop.f32.mrb[3].mxu1  ;;  %v3007_v16 = vshll.u32 %v2878_v60, 16  ;;  %v5613_v23 = vcombine.low %v2223_v13, %v2233_v14  ;;  %4919 = vmatmul.mubr.bf16.gmra.mrb[88].mxu1 %v6536_v55  ;;  %v2994_v24 = vor.u32 %v2993_v7, %v2990_v3  ;;  %v3003_v25 = vrot.slane %v3001_v1, 4  ;;  %v1958_v3 = vld [vmem:[#allocation2 + $0x9c] sm:$0xf] }
 0x162   : > { %v2235_v26 = vshrl.u32 %v1955_v62, 16  ;;  %v2238_v28 = vshll.u32 %v1955_v62, 16  ;;  %v2244_v35 = vshll.u32 %v1956_v4, 16  ;;  %v2248_v36 = vshrl.u32 %v1956_v4, 16  ;;  %v1959_v1 = vld [vmem:[#allocation2 + $0xa0] sm:$0xf] }
 0x163   : > { %v3009_v17 = vrot.slane %v3007_v16, 5  ;;  %4822 = vmatmul.mubr.bf16.gmra.mrb[88].mxu0 %v5613_v23  ;;  %v2995_v37 = vrot.slane %v2994_v24, 4  ;;  %v3004_v39 = vor.u32 %v3003_v25, %v2999_v8  ;;  %v2254_v42 = vshll.u32 %v1957_v9, 16 }
 0x164   : > { %v2237_v40 = vrot.slane %v2235_v26, 4  ;;  %4829 = vmatprep.mubr.bf16.mxu0 %v5646_v15  ;;  %v2240_v45 = vrot.slane %v2238_v28, 5  ;;  %v2246_v46 = vrot.slane %v2244_v35, 5  ;;  %v2250_v49 = vrot.slane %v2248_v36, 4 }
 0x165   : > { %v5631_v50 = vrot.slane %v2470_v18, 9  ;;  %v3000_v51 = vsel %vm6905_vm7, %v2995_v37, %v2999_v8  ;;  %v3005_v52 = vrot.slane %v3004_v39, 4  ;;  %v2256_v44 = vrot.slane %v2254_v42, 5  ;;  %v1960_v18 = vld [vmem:[#allocation2 + $0xa4] sm:$0x1] }
 0x166   : > { %v7366_v5 = vpop.f32.mrb[4].mxu0  ;;  %v2616_v53 = vrot.slane %v2471_v19, 5  ;;  %v2241_v56 = vor.u32 %v2240_v45, %v2237_v40  ;;  %v2251_v57 = vor.u32 %v2250_v49, %v2246_v46  ;;  %v2619_v59 = vrot.slane %v2472_v31, 5  ;;  %v2473_v31 = vld [vmem:[#allocation2 + $0xa8] sm:$0xe] }
 0x167   : > { %v7370_v12 = vpop.f32.mrb[5].mxu0  ;;  %v3012_v60 = vshrl.u32 %v2879_v27, 16  ;;  %v3010_v61 = vsel %vm6905_vm7, %v3005_v52, %v3009_v17  ;;  %v3015_v2 = vshll.u32 %v2879_v27, 16  ;;  %v3021_v15 = vshll.u32 %v2880_v38, 16  ;;  %v2474_v37 = vld [vmem:[#allocation2 + $0xac] sm:$0xf] }
 0x168   : > { %v7376_v22 = vpop.f32.mrb[6].mxu0  ;;  %v2617_v62 = vsel %vm7060_vm13, %v5631_v50, %v2616_v53  ;;  %v2618_v33 = vrot.slane %v2616_v53, 4  ;;  %v5670_v4 = vcombine.low %v3000_v51, %v3010_v61  ;;  %v2242_v6 = vrot.slane %v2241_v56, 4  ;;  %v2475_v49 = vld [vmem:[#allocation2 + $0xb0] sm:$0x1] }
 0x169   : > { %v2252_v7 = vrot.slane %v2251_v57, 4  ;;  %v3014_v8 = vrot.slane %v3012_v60, 4  ;;  %v3017_v14 = vrot.slane %v3015_v2, 5  ;;  %v3025_v16 = vshrl.u32 %v2880_v38, 16  ;;  %v7392_v19 = vpop.f32.mrb[7].mxu0 }
 0x16a   : > { %v2620_v13 = vsel %vm7060_vm13, %v2618_v33, %v2619_v59  ;;  %4926 = vmatprep.mubr.bf16.mxu1 %v5670_v4  ;;  %v2247_v23 = vsel %vm6905_vm7, %v2242_v6, %v2246_v46  ;;  %v3031_v26 = vshll.u32 %v2881_v63, 16  ;;  %v3023_v35 = vrot.slane %v3021_v15, 5  ;;  %v2883_v38 = vld [vmem:[#allocation2 + $0x58] sm:$0xf] }
 0x16b   : > { %v2257_v24 = vsel %vm6905_vm7, %v2252_v7, %v2256_v44  ;;  %v5647_v25 = vcombine.low %v2617_v62, %v2620_v13  ;;  %4927 = vmatmul.mubr.bf16.gmra.mrb[92].mxu1 %v6538_v58  ;;  %v3018_v28 = vor.u32 %v3017_v14, %v3014_v8  ;;  %v3027_v36 = vrot.slane %v3025_v16, 4  ;;  %v2882_v44 = vld [vmem:[#allocation2 + $0x54] sm:$0xf]  ;;  %v2884_v14 = vld [vmem:[#allocation2 + $0x5c] sm:$0x1] }
 0x16c   : > { %v7378_v43 = vpop.f32.mrb[4].mxu1  ;;  %v5614_v17 = vcombine.low %v2247_v23, %v2257_v24  ;;  %v3033_v39 = vrot.slane %v3031_v26, 5  ;;  %v2259_v40 = vshrl.u32 %v1958_v3, 16  ;;  %v2262_v42 = vshll.u32 %v1958_v3, 16  ;;  %v6539_v3 = vld [vmem:[#allocation2 + $0x48] sm:$0xff]  }
 0x16d   : > { %v7382_v55 = vpop.f32.mrb[5].mxu1  ;;  %v2268_v45 = vshll.u32 %v1959_v1, 16  ;;  %v3019_v46 = vrot.slane %v3018_v28, 4  ;;  %v3028_v50 = vor.u32 %v3027_v36, %v3023_v35  ;;  %v2272_v51 = vshrl.u32 %v1959_v1, 16 }
 0x16e   : > { %v7388_v9 = vpop.f32.mrb[6].mxu1  ;;  %4830 = vmatmul.mubr.bf16.gmra.mrb[92].mxu0 %v5614_v17  ;;  %v2278_v52 = vshll.u32 %v1960_v18, 16  ;;  %v2261_v56 = vrot.slane %v2259_v40, 4  ;;  %v2264_v57 = vrot.slane %v2262_v42, 5  ;;  %v5632_v59 = vrot.slane %v2473_v31, 9 }
 0x16f   : > { %v7398_v27 = vpop.f32.mrb[7].mxu1  ;;  %4837 = vmatprep.mubr.bf16.mxu0 %v5647_v25  ;;  %v2270_v58 = vrot.slane %v2268_v45, 5  ;;  %v3024_v60 = vsel %vm6905_vm7, %v3019_v46, %v3023_v35  ;;  %v3029_v61 = vrot.slane %v3028_v50, 4  ;;  %v2274_v62 = vrot.slane %v2272_v51, 4  ;;  %v1961_v18 = vld [vmem:[#allocation2 + $0xa8] sm:$0xf] }
 0x170   : > { %v2280_v33 = vrot.slane %v2278_v52, 5  ;;  %v2265_v2 = vor.u32 %v2264_v57, %v2261_v56  ;;  %v2623_v4 = vrot.slane %v2474_v37, 5  ;;  %v2626_v6 = vrot.slane %v2475_v49, 5  ;;  %v1962_v31 = vld [vmem:[#allocation2 + $0xac] sm:$0xf] }
 0x171   : > { %v3036_v7 = vshrl.u32 %v2882_v44, 16  ;;  %v3034_v1 = vsel %vm6905_vm7, %v3029_v61, %v3033_v39  ;;  %v2275_v13 = vor.u32 %v2274_v62, %v2270_v58  ;;  %v3039_v15 = vshll.u32 %v2882_v44, 16  ;;  %v1963_v50 = vld [vmem:[#allocation2 + $0xb0] sm:$0x1]  ;;  %v2476_v52 = vld [vmem:[#allocation2 + $0xb4] sm:$0xe] }
 0x172   : > { %v3045_v16 = vshll.u32 %v2883_v38, 16  ;;  %v5671_v23 = vcombine.low %v3024_v60, %v3034_v1  ;;  %v2266_v24 = vrot.slane %v2265_v2, 4  ;;  %v2624_v25 = vsel %vm7060_vm13, %v5632_v59, %v2623_v4  ;;  %v2477_v60 = vld [vmem:[#allocation2 + $0xb8] sm:$0xf] }
 0x173   : > { %v7400_v53 = vpop.f32.mrb[8].mxu0  ;;  %v2625_v26 = vrot.slane %v2623_v4, 4  ;;  %v2276_v17 = vrot.slane %v2275_v13, 4  ;;  %v3038_v28 = vrot.slane %v3036_v7, 4  ;;  %v3041_v35 = vrot.slane %v3039_v15, 5 }
 0x174   : > { %v7404_v63 = vpop.f32.mrb[9].mxu0  ;;  %v3047_v36 = vrot.slane %v3045_v16, 5  ;;  %4934 = vmatprep.mubr.bf16.mxu1 %v5671_v23  ;;  %v2271_v37 = vsel %vm6905_vm7, %v2266_v24, %v2270_v58  ;;  %v3049_v40 = vshrl.u32 %v2883_v38, 16  ;;  %v3055_v42 = vshll.u32 %v2884_v14, 16  ;;  %v2885_v13 = vld [vmem:[#allocation2 + $0x60] sm:$0xf] }
 0x175   : > { %v7406_v8 = vpop.f32.mrb[10].mxu0  ;;  %v2627_v39 = vsel %vm7060_vm13, %v2625_v26, %v2626_v6  ;;  %v2281_v45 = vsel %vm6905_vm7, %v2276_v17, %v2280_v33  ;;  %4935 = vmatmul.mubr.bf16.gmra.mrb[96].mxu1 %v6539_v3  ;;  %v3042_v46 = vor.u32 %v3041_v35, %v3038_v28  ;;  %v2283_v51 = vshrl.u32 %v1961_v18, 16  ;;  %v2478_v33 = vld [vmem:[#allocation2 + $0xbc] sm:$0x1]  ;;  %v2886_v24 = vld [vmem:[#allocation2 + $0x64] sm:$0xf] }
 0x176   : > { %v5648_v49 = vcombine.low %v2624_v25, %v2627_v39  ;;  %v5615_v56 = vcombine.low %v2271_v37, %v2281_v45  ;;  %v3051_v57 = vrot.slane %v3049_v40, 4  ;;  %v3057_v59 = vrot.slane %v3055_v42, 5  ;;  %v7426_v25 = vpop.f32.mrb[11].mxu0  ;;  %v2887_v35 = vld [vmem:[#allocation2 + $0x68] sm:$0x1] }
 0x177   : > { %v2286_v58 = vshll.u32 %v1961_v18, 16  ;;  %v3043_v38 = vrot.slane %v3042_v46, 4  ;;  %v2285_v62 = vrot.slane %v2283_v51, 4  ;;  %v2292_v2 = vshll.u32 %v1962_v31, 16 }
 0x178   : > { %v2296_v4 = vshrl.u32 %v1962_v31, 16  ;;  %4838 = vmatmul.mubr.bf16.gmra.mrb[96].mxu0 %v5615_v56  ;;  %v3052_v3 = vor.u32 %v3051_v57, %v3047_v36  ;;  %v2302_v7 = vshll.u32 %v1963_v50, 16  ;;  %v5633_v1 = vrot.slane %v2476_v52, 9  ;;  %v6541_v50 = vld [vmem:[#allocation2 + $0x54] sm:$0xff]  }
 0x179   : > { %v2288_v6 = vrot.slane %v2286_v58, 5  ;;  %4845 = vmatprep.mubr.bf16.mxu0 %v5648_v49  ;;  %v3048_v15 = vsel %vm6905_vm7, %v3043_v38, %v3047_v36  ;;  %v2294_v16 = vrot.slane %v2292_v2, 5  ;;  %v2630_v23 = vrot.slane %v2477_v60, 5  ;;  %v1964_v36 = vld [vmem:[#allocation2 + $0xb4] sm:$0xf] }
 0x17a   : > { %v2298_v18 = vrot.slane %v2296_v4, 4  ;;  %v3053_v26 = vrot.slane %v3052_v3, 4  ;;  %v2304_v17 = vrot.slane %v2302_v7, 5  ;;  %v2633_v28 = vrot.slane %v2478_v33, 5  ;;  %v1965_v38 = vld [vmem:[#allocation2 + $0xb8] sm:$0xf] }
 0x17b   : > { %v2289_v31 = vor.u32 %v2288_v6, %v2285_v62  ;;  %v2631_v40 = vsel %vm7060_vm13, %v5633_v1, %v2630_v23  ;;  %v2632_v42 = vrot.slane %v2630_v23, 4  ;;  %v3060_v45 = vshrl.u32 %v2885_v13, 16  ;;  %v1966_v7 = vld [vmem:[#allocation2 + $0xbc] sm:$0x1] }
 0x17c   : > { %v2299_v39 = vor.u32 %v2298_v18, %v2294_v16  ;;  %v3058_v49 = vsel %vm6905_vm7, %v3053_v26, %v3057_v59  ;;  %v3063_v51 = vshll.u32 %v2885_v13, 16  ;;  %v3069_v52 = vshll.u32 %v2886_v24, 16 }
 0x17d   : > { %v2290_v46 = vrot.slane %v2289_v31, 4  ;;  %v5672_v56 = vcombine.low %v3048_v15, %v3058_v49  ;;  %v2634_v58 = vsel %vm7060_vm13, %v2632_v42, %v2633_v28  ;;  %v3062_v60 = vrot.slane %v3060_v45, 4  ;;  %v825_v31 = vld [vmem:[#allocation2 + $0xc8] sm:$0x1] }
 0x17e   : > { %v2300_v57 = vrot.slane %v2299_v39, 4  ;;  %v5649_v2 = vcombine.low %v2631_v40, %v2634_v58  ;;  %v3065_v4 = vrot.slane %v3063_v51, 5  ;;  %v3071_v33 = vrot.slane %v3069_v52, 5  ;;  %v2480_v51 = vld [vmem:[#allocation2 + $0xc4] sm:$0xf] }
 0x17f   : > { %v7418_v44 = vpop.f32.mrb[8].mxu1  ;;  %v2295_v62 = vsel %vm6905_vm7, %v2290_v46, %v2294_v16  ;;  %4942 = vmatprep.mubr.bf16.mxu1 %v5672_v56  ;;  %v3073_v3 = vshrl.u32 %v2886_v24, 16  ;;  %v3079_v6 = vshll.u32 %v2887_v35, 16  ;;  %v2307_v1 = vshrl.u32 %v1964_v36, 16  ;;  %v2479_v35 = vld [vmem:[#allocation2 + $0xc0] sm:$0xe] }
 0x180   : > { %v7420_v61 = vpop.f32.mrb[9].mxu1  ;;  %v2305_v59 = vsel %vm6905_vm7, %v2300_v57, %v2304_v17  ;;  %4943 = vmatmul.mubr.bf16.gmra.mrb[100].mxu1 %v6541_v50  ;;  %v3066_v18 = vor.u32 %v3065_v4, %v3062_v60  ;;  %v2310_v23 = vshll.u32 %v1964_v36, 16  ;;  %v2316_v26 = vshll.u32 %v1965_v38, 16  ;;  %v2888_v52 = vld [vmem:[#allocation2 + $0x6c] sm:$0xf] }
 0x181   : > { %v7422_v14 = vpop.f32.mrb[10].mxu1  ;;  %v5616_v15 = vcombine.low %v2295_v62, %v2305_v59  ;;  %v3075_v16 = vrot.slane %v3073_v3, 4  ;;  %v3081_v28 = vrot.slane %v3079_v6, 5  ;;  %v2309_v39 = vrot.slane %v2307_v1, 4  ;;  %v2889_v62 = vld [vmem:[#allocation2 + $0x70] sm:$0xf] }
 0x182   : > { %v7428_v37 = vpop.f32.mrb[11].mxu1  ;;  %v2320_v40 = vshrl.u32 %v1965_v38, 16  ;;  %v3067_v42 = vrot.slane %v3066_v18, 4  ;;  %v2312_v45 = vrot.slane %v2310_v23, 5  ;;  %v2318_v17 = vrot.slane %v2316_v26, 5 }
 0x183   : > { %4846 = vmatmul.mubr.bf16.gmra.mrb[100].mxu0 %v5616_v15  ;;  %v2326_v24 = vshll.u32 %v1966_v7, 16  ;;  %v3076_v49 = vor.u32 %v3075_v16, %v3071_v33  ;;  %v7444_v50 = vadd.f32 %v7324_v54, %v7320_v32  ;;  %v7448_v36 = vadd.f32 %v7354_v29, %v7352_v20  ;;  %v6542_v20 = vld [vmem:[#allocation2 + $0x60] sm:$0xff]  }
 0x184   : > { %4853 = vmatprep.mubr.bf16.mxu0 %v5649_v2  ;;  %v2322_v46 = vrot.slane %v2320_v40, 4  ;;  %v3072_v57 = vsel %vm6905_vm7, %v3067_v42, %v3071_v33  ;;  %v2313_v58 = vor.u32 %v2312_v45, %v2309_v39  ;;  %v7456_v38 = vadd.f32 %v7334_v10, %v7330_v0  ;;  %v2890_v33 = vld [vmem:[#allocation2 + $0x74] sm:$0x1]  ;;  %v1967_v7 = vld [vmem:[#allocation2 + $0xc0] sm:$0xf] }
 0x185   : > { %8273 = vst [vmem:[#allocation16_spill] sm:$0xff] %v7448_v36  ;;  %v2328_v60 = vrot.slane %v2326_v24, 5  ;;  %v3077_v54 = vrot.slane %v3076_v49, 4  ;;  %v7462_v29 = vadd.f32 %v7360_v48, %v7356_v41  ;;  %v826_v4 = vsel %vm6923_vm10, %v661_v34, %v825_v31  ;;  %v1968_v18 = vld [vmem:[#allocation2 + $0xc4] sm:$0xf] }
 0x186   : > { %v2323_v2 = vor.u32 %v2322_v46, %v2318_v17  ;;  %v2314_v0 = vrot.slane %v2313_v58, 4  ;;  %827 = vst [vmem:[#allocation2 + $0xc8] sm:$0x1] %v826_v4  ;;  %v5634_v10 = vrot.slane %v2479_v35, 9  ;;  %v2637_v3 = vrot.slane %v2480_v51, 5 }
 0x187   : > { %v7440_v13 = vpop.f32.mrb[12].mxu0  ;;  %8274 = vst [vmem:[#allocation17_spill] sm:$0xff] %v7462_v29  ;;  %v3084_v6 = vshrl.u32 %v2888_v52, 16  ;;  %v3082_v1 = vsel %vm6905_vm7, %v3077_v54, %v3081_v28  ;;  %v3087_v41 = vshll.u32 %v2888_v52, 16  ;;  %v3093_v48 = vshll.u32 %v2889_v62, 16 }
 0x188   : > { %v7458_v32 = vpop.f32.mrb[13].mxu0  ;;  %v2324_v15 = vrot.slane %v2323_v2, 4  ;;  %v5673_v47 = vcombine.low %v3072_v57, %v3082_v1  ;;  %v2319_v34 = vsel %vm6905_vm7, %v2314_v0, %v2318_v17  ;;  %v7478_v23 = vsel %vm7060_vm13, %v5634_v10, %v2637_v3 }
 0x189   : > { %v7472_v21 = vpop.f32.mrb[14].mxu0  ;;  %v2639_v26 = vrot.slane %v2637_v3, 4  ;;  %v3086_v28 = vrot.slane %v3084_v6, 4  ;;  %v3089_v39 = vrot.slane %v3087_v41, 5  ;;  %v3095_v40 = vrot.slane %v3093_v48, 5 }
 0x18a   : > { %v7450_v56 = vpop.f32.mrb[12].mxu1  ;;  %v2329_v16 = vsel %vm6905_vm7, %v2324_v15, %v2328_v60  ;;  %v7484_v42 = vpop.f32.mrb[15].mxu0  ;;  %4950 = vmatprep.mubr.bf16.mxu1 %v5673_v47  ;;  %v3097_v24 = vshrl.u32 %v2889_v62, 16  ;;  %v3103_v35 = vshll.u32 %v2890_v33, 16  ;;  %v2331_v17 = vshrl.u32 %v1967_v7, 16 }
 0x18b   : > { %v7468_v59 = vpop.f32.mrb[13].mxu1  ;;  %v5617_v45 = vcombine.low %v2319_v34, %v2329_v16  ;;  %4951 = vmatmul.mubr.bf16.gmra.mrb[104].mxu1 %v6542_v20  ;;  %v3090_v46 = vor.u32 %v3089_v39, %v3086_v28  ;;  %v2334_v51 = vshll.u32 %v1967_v7, 16  ;;  %v2340_v52 = vshll.u32 %v1968_v18, 16  ;;  %v2891_v62 = vld [vmem:[#allocation2 + $0x78] sm:$0xf]  ;;  %v6544_v39 = vld [vmem:[#allocation2 + $0x6c] sm:$0xff]  }
 0x18c   : > { %v7480_v31 = vpop.f32.mrb[14].mxu1  ;;  %v2344_v57 = vshrl.u32 %v1968_v18, 16  ;;  %v3099_v60 = vrot.slane %v3097_v24, 4  ;;  %v3105_v54 = vrot.slane %v3103_v35, 5  ;;  %v2333_v2 = vrot.slane %v2331_v17, 4 }
 0x18d   : > { %v7486_v49 = vpop.f32.mrb[15].mxu1  ;;  %4854 = vmatmul.mubr.bf16.gmra.mrb[104].mxu0 %v5617_v45  ;;  %v7492_v4 = vadd.f32 %v7370_v12, %v7366_v5  ;;  %v2481_v0 = vld [vmem:[#allocation2 + $0xc8] sm:$0x1]  ;;  %v3091_v10 = vrot.slane %v3090_v46, 4  ;;  %v2336_v3 = vrot.slane %v2334_v51, 5  ;;  %v7498_v6 = vadd.f32 %v7382_v55, %v7378_v43 }
 0x18e   : > { %v1969_v20 = vld [vmem:[#allocation2 + $0xc8] sm:$0x1]  ;;  %v7502_v7 = vadd.f32 %v7392_v19, %v7376_v22  ;;  %v2640_v1 = vrot.slane %v2481_v0, 5  ;;  %v3100_v15 = vor.u32 %v3099_v60, %v3095_v40  ;;  %v2342_v41 = vrot.slane %v2340_v52, 5  ;;  %v2892_v43 = vld [vmem:[#allocation2 + $0x7c] sm:$0xf] }
 0x18f   : > { %8275 = vst [vmem:[#allocation18_spill] sm:$0xff] %v7498_v6  ;;  %v2346_v5 = vrot.slane %v2344_v57, 4  ;;  %v3096_v48 = vsel %vm6905_vm7, %v3091_v10, %v3095_v40  ;;  %v2337_v18 = vor.u32 %v2336_v3, %v2333_v2  ;;  %v2350_v47 = vshll.u32 %v1969_v20, 16  ;;  %v2893_v55 = vld [vmem:[#allocation2 + $0x80] sm:$0x1] }
 0x190   : > { %v7510_v34 = vadd.f32 %v7398_v27, %v7388_v9  ;;  %v2641_v22 = vsel %vm7060_vm13, %v2639_v26, %v2640_v1  ;;  %v3101_v19 = vrot.slane %v3100_v15, 4  ;;  %v3108_v45 = vshrl.u32 %v2891_v62, 16  ;;  %v3379_v24 = vld [vmem:[#allocation2 + $0x18] sm:$0xe]  ;;  %v3380_v35 = vld [vmem:[#allocation2 + $0x1c] sm:$0xf] }
 0x191   : > { %v2347_v28 = vor.u32 %v2346_v5, %v2342_v41  ;;  %v5650_v40 = vcombine.low %v7478_v23, %v2641_v22  ;;  %v2338_v17 = vrot.slane %v2337_v18, 4  ;;  %v2352_v46 = vrot.slane %v2350_v47, 5  ;;  %v3381_v9 = vld [vmem:[#allocation2 + $0x20] sm:$0x1]  ;;  %v3382_v3 = vld [vmem:[#allocation2 + $0x24] sm:$0xe] }
 0x192   : > { %v7488_v58 = vpop.f32.mrb[16].mxu1  ;;  %8276 = vst [vmem:[#allocation19_spill] sm:$0xff] %v7510_v34  ;;  %v3111_v51 = vshll.u32 %v2891_v62, 16  ;;  %v3106_v52 = vsel %vm6905_vm7, %v3101_v19, %v3105_v54  ;;  %v3110_v60 = vrot.slane %v3108_v45, 4  ;;  %v3117_v26 = vshll.u32 %v2892_v43, 16 }
 0x193   : > { %v7494_v33 = vpop.f32.mrb[17].mxu1  ;;  %v2348_v57 = vrot.slane %v2347_v28, 4  ;;  %4861 = vmatprep.mubr.bf16.mxu0 %v5650_v40  ;;  %v5674_v0 = vcombine.low %v3096_v48, %v3106_v52  ;;  %v2343_v10 = vsel %vm6905_vm7, %v2338_v17, %v2342_v41  ;;  %v3121_v20 = vshrl.u32 %v2892_v43, 16  ;;  %v3383_v62 = vld [vmem:[#allocation2 + $0x28] sm:$0xf] }
 0x194   : > { %v7504_v12 = vpop.f32.mrb[18].mxu1  ;;  %v3113_v23 = vrot.slane %v3111_v51, 5  ;;  %v3119_v15 = vrot.slane %v3117_v26, 5  ;;  %v3127_v5 = vshll.u32 %v2893_v55, 16  ;;  %v5683_v54 = vrot.slane %v3379_v24, 9 }
 0x195   : > { %v7512_v16 = vpop.f32.mrb[19].mxu1  ;;  %v2353_v1 = vsel %vm6905_vm7, %v2348_v57, %v2352_v46  ;;  %4958 = vmatprep.mubr.bf16.mxu1 %v5674_v0  ;;  %v3123_v19 = vrot.slane %v3121_v20, 4  ;;  %v3477_v48 = vrot.slane %v3380_v35, 5  ;;  %v3384_v28 = vld [vmem:[#allocation2 + $0x2c] sm:$0x1]  ;;  %v3480_v43 = vrot.slane %v3381_v9, 5 }
 0x196   : > { %v5618_v47 = vcombine.low %v2343_v10, %v2353_v1  ;;  %v3114_v22 = vor.u32 %v3113_v23, %v3110_v60  ;;  %4959 = vmatmul.mubr.bf16.gmra.mrb[108].mxu1 %v6544_v39  ;;  %v3129_v41 = vrot.slane %v3127_v5, 5  ;;  %v5684_v40 = vrot.slane %v3382_v3, 9  ;;  %v2894_v52 = vld [vmem:[#allocation2 + $0x84] sm:$0xf]  ;;  %v2895_v57 = vld [vmem:[#allocation2 + $0x88] sm:$0xf] }
 0x197   : > { %v3484_v17 = vrot.slane %v3383_v62, 5  ;;  %v3124_v51 = vor.u32 %v3123_v19, %v3119_v15  ;;  %v3478_v55 = vsel %vm7060_vm13, %v5683_v54, %v3477_v48  ;;  %v3479_v24 = vrot.slane %v3477_v48, 4  ;;  %v2896_v9 = vld [vmem:[#allocation2 + $0x8c] sm:$0x1]  ;;  %v3385_v0 = vld [vmem:[#allocation2 + $0x30] sm:$0xe] }
 0x198   : > { %v7517_v27 = vpop.f32.mrb[16].mxu0  ;;  %4862 = vmatmul.mubr.bf16.gmra.mrb[108].mxu0 %v5618_v47  ;;  %v3115_v46 = vrot.slane %v3114_v22, 4  ;;  %v3487_v26 = vrot.slane %v3384_v28, 5  ;;  %v7537_v39 = vadd.f32 %v7404_v63, %v7400_v53  ;;  %v6545_v3 = vld [vmem:[#allocation2 + $0x78] sm:$0xff]   ;;  %v7545_v62 = vadd.f32 %v7420_v61, %v7418_v44  ;;  %v3386_v54 = vld [vmem:[#allocation2 + $0x34] sm:$0xf] }
 0x199   : > { %v7521_v2 = vpop.f32.mrb[17].mxu0  ;;  %v3485_v35 = vsel %vm7060_vm13, %v5684_v40, %v3484_v17  ;;  %v3486_v60 = vrot.slane %v3484_v17, 4  ;;  %v3125_v23 = vrot.slane %v3124_v51, 4  ;;  %v3481_v20 = vsel %vm7060_vm13, %v3479_v24, %v3480_v43  ;;  %v3387_v47 = vld [vmem:[#allocation2 + $0x38] sm:$0x1] }
 0x19a   : > { %v7527_v18 = vpop.f32.mrb[18].mxu0  ;;  %v3120_v10 = vsel %vm6905_vm7, %v3115_v46, %v3119_v15  ;;  %8277 = vst [vmem:[#allocation20_spill] sm:$0xff] %v7545_v62  ;;  %v7547_v1 = vpop.f32.mrb[20].mxu1  ;;  %v5699_v5 = vcombine.low %v3478_v55, %v3481_v20  ;;  %v7553_v63 = vadd.f32 %v7426_v25, %v7406_v8  ;;  %v7557_v15 = vadd.f32 %v7428_v37, %v7422_v14  ;;  %v3388_v22 = vld [vmem:[#allocation2 + $0x3c] sm:$0xe] }
 0x19b   : > { %v7529_v45 = vpop.f32.mrb[19].mxu0  ;;  %v3488_v53 = vsel %vm7060_vm13, %v3486_v60, %v3487_v26  ;;  %v3130_v44 = vsel %vm6905_vm7, %v3125_v23, %v3129_v41  ;;  %v3132_v19 = vshrl.u32 %v2894_v52, 16  ;;  %v3135_v48 = vshll.u32 %v2894_v52, 16  ;;  %v3389_v28 = vld [vmem:[#allocation2 + $0x40] sm:$0xf]  ;;  %v7563_v17 = vpop.f32.mrb[21].mxu1 }
 0x19c   : > { %8278 = vst [vmem:[#allocation21_spill] sm:$0xff] %v7557_v15  ;;  %v5700_v61 = vcombine.low %v3485_v35, %v3488_v53  ;;  %v3390_v43 = vld [vmem:[#allocation2 + $0x44] sm:$0x1]  ;;  %v5675_v8 = vcombine.low %v3120_v10, %v3130_v44  ;;  %6316 = vmatprep.mubr.bf16.mxu0 %v5699_v5  ;;  %v3141_v25 = vshll.u32 %v2895_v57, 16  ;;  %v3145_v14 = vshrl.u32 %v2895_v57, 16  ;;  %v7567_v51 = vpop.f32.mrb[22].mxu1 }
 0x19d   : > { %v3151_v37 = vshll.u32 %v2896_v9, 16  ;;  %v3134_v55 = vrot.slane %v3132_v19, 4  ;;  %v3137_v41 = vrot.slane %v3135_v48, 5  ;;  %v5685_v24 = vrot.slane %v3385_v0, 9  ;;  %v7571_v60 = vpop.f32.mrb[23].mxu1 }
 0x19e   : > { %v3491_v35 = vrot.slane %v3386_v54, 5  ;;  %4966 = vmatprep.mubr.bf16.mxu1 %v5675_v8  ;;  %v3143_v26 = vrot.slane %v3141_v25, 5  ;;  %v3147_v23 = vrot.slane %v3145_v14, 4  ;;  %v3494_v20 = vrot.slane %v3387_v47, 5  ;;  %v2897_v47 = vld [vmem:[#allocation2 + $0x90] sm:$0xf] }
 0x19f   : > { %v3153_v10 = vrot.slane %v3151_v37, 5  ;;  %4967 = vmatmul.mubr.bf16.gmra.mrb[112].mxu1 %v6545_v3  ;;  %v3138_v9 = vor.u32 %v3137_v41, %v3134_v55  ;;  %v5686_v54 = vrot.slane %v3388_v22, 9  ;;  %v3498_v19 = vrot.slane %v3389_v28, 5  ;;  %v2898_v25 = vld [vmem:[#allocation2 + $0x94] sm:$0xf]  ;;  %v6546_v55 = vld [vmem:[#allocation2 + $0x84] sm:$0xff]  }
 0x1a0   : > { %6317 = vmatmul.mubr.bf16.vlgmr.msra.gmra.mrb[112].mxu0 %v5700_v61  ;;  %v3492_v0 = vsel %vm7060_vm13, %v5685_v24, %v3491_v35  ;;  %v3493_v53 = vrot.slane %v3491_v35, 4  ;;  %v3148_v44 = vor.u32 %v3147_v23, %v3143_v26  ;;  %v3501_v48 = vrot.slane %v3390_v43, 5  ;;  %v2899_v28 = vld [vmem:[#allocation2 + $0x98] sm:$0x1]  ;;  %v3391_v43 = vld [vmem:[#allocation2 + $0x48] sm:$0xe] }
 0x1a1   : > { %v7581_v8 = vadd.f32 %v7458_v32, %v7440_v13  ;;  %v3139_v14 = vrot.slane %v3138_v9, 4  ;;  %v7587_v61 = vadd.f32 %v7468_v59, %v7450_v56  ;;  %v7591_v22 = vadd.f32 %v7484_v42, %v7472_v21  ;;  %v3392_v35 = vld [vmem:[#allocation2 + $0x4c] sm:$0xf]  ;;  %v3393_v23 = vld [vmem:[#allocation2 + $0x50] sm:$0x1] }
 0x1a2   : > { %v7561_v40 = vpop.f32.mrb[20].mxu0  ;;  %v7575_v57 = vpop.f32.mrb[24].mxu1  ;;  %v3495_v3 = vsel %vm7060_vm13, %v3493_v53, %v3494_v20  ;;  %v3149_v13 = vrot.slane %v3148_v44, 4  ;;  %v3499_v41 = vsel %vm7060_vm13, %v5686_v54, %v3498_v19  ;;  %v3500_v24 = vrot.slane %v3498_v19, 4  ;;  %v3394_v20 = vld [vmem:[#allocation2 + $0x54] sm:$0xe] }
 0x1a3   : > { %v7565_v46 = vpop.f32.mrb[21].mxu0  ;;  %8279 = vst [vmem:[#allocation22_spill] sm:$0xff] %v7587_v61  ;;  %v7593_v37 = vpop.f32.mrb[25].mxu1  ;;  %v5701_v32 = vcombine.low %v3492_v0, %v3495_v3  ;;  %v3144_v56 = vsel %vm6905_vm7, %v3139_v14, %v3143_v26  ;;  %v7601_v59 = vadd.f32 %v7486_v49, %v7480_v31  ;;  %v3156_v21 = vshrl.u32 %v2897_v47, 16  ;;  %v3395_v44 = vld [vmem:[#allocation2 + $0x58] sm:$0xf] }
 0x1a4   : > { %v7569_v52 = vpop.f32.mrb[22].mxu0  ;;  %v3159_v42 = vshll.u32 %v2897_v47, 16  ;;  %v3154_v9 = vsel %vm6905_vm7, %v3149_v13, %v3153_v10  ;;  %v3502_v0 = vsel %vm7060_vm13, %v3500_v24, %v3501_v48  ;;  %v3165_v53 = vshll.u32 %v2898_v25, 16  ;;  %v7609_v26 = vpop.f32.mrb[26].mxu1  ;;  %v3396_v3 = vld [vmem:[#allocation2 + $0x5c] sm:$0x1] }
 0x1a5   : > { %v7573_v5 = vpop.f32.mrb[23].mxu0  ;;  %8280 = vst [vmem:[#allocation23_spill] sm:$0xff] %v7601_v59  ;;  %6320 = vmatprep.mubr.bf16.mxu0 %v5701_v32  ;;  %v3169_v54 = vshrl.u32 %v2898_v25, 16  ;;  %v5676_v31 = vcombine.low %v3144_v56, %v3154_v9  ;;  %v5702_v49 = vcombine.low %v3499_v41, %v3502_v0  ;;  %v3158_v14 = vrot.slane %v3156_v21, 4  ;;  %v7613_v61 = vpop.f32.mrb[27].mxu1 }
 0x1a6   : > { %v3161_v47 = vrot.slane %v3159_v42, 5  ;;  %v3167_v10 = vrot.slane %v3165_v53, 5  ;;  %v3175_v32 = vshll.u32 %v2899_v28, 16  ;;  %v5687_v48 = vrot.slane %v3391_v43, 9  ;;  %v3408_v6 = vld [vmem:[#allocation2 + $0x8c] sm:$0x1] }
 0x1a7   : > { %v3171_v13 = vrot.slane %v3169_v54, 4  ;;  %4974 = vmatprep.mubr.bf16.mxu1 %v5676_v31  ;;  %v3505_v15 = vrot.slane %v3392_v35, 5  ;;  %v3508_v62 = vrot.slane %v3393_v23, 5  ;;  %v5688_v56 = vrot.slane %v3394_v20, 9  ;;  %v2900_v35 = vld [vmem:[#allocation2 + $0x9c] sm:$0xf] }
 0x1a8   : > { %6321 = vmatmul.mubr.bf16.gmra.mrb[116].mxu0 %v5702_v49  ;;  %v3162_v25 = vor.u32 %v3161_v47, %v3158_v14  ;;  %4975 = vmatmul.mubr.bf16.gmra.mrb[116].mxu1 %v6546_v55  ;;  %v3177_v42 = vrot.slane %v3175_v32, 5  ;;  %v3512_v9 = vrot.slane %v3395_v44, 5  ;;  %v3515_v0 = vrot.slane %v3396_v3, 5  ;;  %v2901_v23 = vld [vmem:[#allocation2 + $0xa0] sm:$0xf] }
 0x1a9   : > { %v3172_v21 = vor.u32 %v3171_v13, %v3167_v10  ;;  %v3506_v28 = vsel %vm7060_vm13, %v5687_v48, %v3505_v15  ;;  %v3507_v43 = vrot.slane %v3505_v15, 4  ;;  %v7625_v54 = vadd.f32 %v7521_v2, %v7517_v27  ;;  %v2902_v14 = vld [vmem:[#allocation2 + $0xa4] sm:$0x1]  ;;  %v3397_v47 = vld [vmem:[#allocation2 + $0x60] sm:$0xe] }
 0x1aa   : > { %v7619_v34 = vpop.f32.mrb[28].mxu1  ;;  %v3163_v53 = vrot.slane %v3162_v25, 4  ;;  %v3513_v55 = vsel %vm7060_vm13, %v5688_v56, %v3512_v9  ;;  %v3514_v31 = vrot.slane %v3512_v9, 4  ;;  %v5958_v44 = vadd.f32 %v7494_v33, %v7488_v58  ;;  %v3398_v3 = vld [vmem:[#allocation2 + $0x64] sm:$0xf]  ;;  %v6547_v33 = vld [vmem:[#allocation2 + $0x90] sm:$0xff]  }
 0x1ab   : > { %v7607_v19 = vpop.f32.mrb[24].mxu0  ;;  %v3173_v20 = vrot.slane %v3172_v21, 4  ;;  %v3509_v15 = vsel %vm7060_vm13, %v3507_v43, %v3508_v62  ;;  %v7637_v27 = vadd.f32 %v7529_v45, %v7527_v18  ;;  %v5961_v2 = vadd.f32 %v7512_v16, %v7504_v12  ;;  %v3399_v32 = vld [vmem:[#allocation2 + $0x68] sm:$0x1]  ;;  %v3400_v18 = vld [vmem:[#allocation2 + $0x6c] sm:$0xe] }
 0x1ac   : > { %v7611_v59 = vpop.f32.mrb[25].mxu0  ;;  %v3168_v49 = vsel %vm6905_vm7, %v3163_v53, %v3167_v10  ;;  %v5703_v58 = vcombine.low %v3506_v28, %v3509_v15  ;;  %v3516_v10 = vsel %vm7060_vm13, %v3514_v31, %v3515_v0  ;;  %v7646_v62 = vadd.f32 %v5958_v44, %v7444_v50  ;;  %v7648_v45 = vpop.f32.mrb[29].mxu1  ;;  %v3401_v56 = vld [vmem:[#allocation2 + $0x70] sm:$0xf]  ;;  %v3402_v21 = vld [vmem:[#allocation2 + $0x74] sm:$0x1] }
 0x1ad   : > { %v7615_v24 = vpop.f32.mrb[26].mxu0  ;;  %v3178_v13 = vsel %vm6905_vm7, %v3173_v20, %v3177_v42  ;;  %v5704_v12 = vcombine.low %v3513_v55, %v3516_v10  ;;  %v7651_v16 = vadd.f32 %v5961_v2, %v7456_v38  ;;  %v3180_v25 = vshrl.u32 %v2900_v35, 16  ;;  %v7653_v42 = vpop.f32.mrb[30].mxu1 }
 0x1ae   : > { %v7617_v41 = vpop.f32.mrb[27].mxu0  ;;  %v5677_v48 = vcombine.low %v3168_v49, %v3178_v13  ;;  %6324 = vmatprep.mubr.bf16.mxu0 %v5703_v58  ;;  %v3183_v9 = vshll.u32 %v2900_v35, 16  ;;  %v3189_v0 = vshll.u32 %v2901_v23, 16  ;;  %v3193_v53 = vshrl.u32 %v2901_v23, 16  ;;  %v7655_v28 = vpop.f32.mrb[31].mxu1 }
 0x1af   : > { %8281 = vst [vmem:[#allocation24_spill] sm:$0xff] %v7651_v16  ;;  %v3199_v50 = vshll.u32 %v2902_v14, 16  ;;  %v3182_v43 = vrot.slane %v3180_v25, 4  ;;  %v5689_v20 = vrot.slane %v3397_v47, 9  ;;  %v3519_v55 = vrot.slane %v3398_v3, 5 }
 0x1b0   : > { %4982 = vmatprep.mubr.bf16.mxu1 %v5677_v48  ;;  %6325 = vmatmul.mubr.bf16.gmra.mrb[120].mxu0 %v5704_v12  ;;  %v3522_v31 = vrot.slane %v3399_v32, 5  ;;  %v3185_v49 = vrot.slane %v3183_v9, 5  ;;  %v3191_v15 = vrot.slane %v3189_v0, 5  ;;  %v3195_v2 = vrot.slane %v3193_v53, 4  ;;  %v2903_v25 = vld [vmem:[#allocation2 + $0xa8] sm:$0xf] }
 0x1b1   : > { %4983 = vmatmul.mubr.bf16.gmra.mrb[120].mxu1 %v6547_v33  ;;  %v3201_v35 = vrot.slane %v3199_v50, 5  ;;  %v3520_v14 = vsel %vm7060_vm13, %v5689_v20, %v3519_v55  ;;  %v3521_v58 = vrot.slane %v3519_v55, 4  ;;  %v5690_v47 = vrot.slane %v3400_v18, 9  ;;  %v2904_v55 = vld [vmem:[#allocation2 + $0xac] sm:$0xf] }
 0x1b2   : > { %v7659_v44 = vpop.f32.mrb[32].mxu1  ;;  %v3526_v3 = vrot.slane %v3401_v56, 5  ;;  %v3186_v32 = vor.u32 %v3185_v49, %v3182_v43  ;;  %v3196_v48 = vor.u32 %v3195_v2, %v3191_v15  ;;  %v3529_v12 = vrot.slane %v3402_v21, 5  ;;  %v2905_v49 = vld [vmem:[#allocation2 + $0xb0] sm:$0x1] }
 0x1b3   : > { %v7663_v23 = vpop.f32.mrb[33].mxu1  ;;  %v7671_v33 = vadd.f32 %v7565_v46, %v7561_v40  ;;  %v3523_v0 = vsel %vm7060_vm13, %v3521_v58, %v3522_v31  ;;  %v5964_v56 = vadd.f32 %v7563_v17, %v7547_v1  ;;  %v6548_v40 = vld [vmem:[#allocation2 + $0x9c] sm:$0xff]   ;;  %v7685_v46 = vadd.f32 %v7573_v5, %v7569_v52  ;;  %v3403_v58 = vld [vmem:[#allocation2 + $0x78] sm:$0xe] }
 0x1b4   : > { %v3527_v53 = vsel %vm7060_vm13, %v5690_v47, %v3526_v3  ;;  %v3528_v18 = vrot.slane %v3526_v3, 4  ;;  %v7681_v50 = vpop.f32.mrb[34].mxu1  ;;  %v3187_v21 = vrot.slane %v3186_v32, 4  ;;  %v3197_v43 = vrot.slane %v3196_v48, 4  ;;  %v3404_v47 = vld [vmem:[#allocation2 + $0x7c] sm:$0xf] }
 0x1b5   : > { %v5705_v20 = vcombine.low %v3520_v14, %v3523_v0  ;;  %v7690_v2 = vadd.f32 %v5964_v56, %v7492_v4  ;;  %v5967_v1 = vadd.f32 %v7571_v60, %v7567_v51  ;;  %v3204_v17 = vshrl.u32 %v2903_v25, 16  ;;  %v7694_v14 = vpop.f32.mrb[35].mxu1  ;;  %v3405_v48 = vld [vmem:[#allocation2 + $0x80] sm:$0x1]  ;;  %v3406_v4 = vld [vmem:[#allocation2 + $0x84] sm:$0xe] }
 0x1b6   : > { %v7657_v38 = vpop.f32.mrb[28].mxu0  ;;  %v3530_v31 = vsel %vm7060_vm13, %v3528_v18, %v3529_v12  ;;  %v3192_v52 = vsel %vm6905_vm7, %v3187_v21, %v3191_v15  ;;  %v3202_v5 = vsel %vm6905_vm7, %v3197_v43, %v3201_v35  ;;  %v3207_v32 = vshll.u32 %v2903_v25, 16  ;;  %v3407_v56 = vld [vmem:[#allocation2 + $0x88] sm:$0xf] }
 0x1b7   : > { %v7661_v13 = vpop.f32.mrb[29].mxu0  ;;  %8282 = vst [vmem:[#allocation25_spill] sm:$0xff] %v7690_v2  ;;  %6328 = vmatprep.mubr.bf16.mxu0 %v5705_v20  ;;  %v5706_v3 = vcombine.low %v3527_v53, %v3530_v31  ;;  %v5678_v0 = vcombine.low %v3192_v52, %v3202_v5  ;;  %v7703_v51 = vadd.f32 %v5967_v1, %v7502_v7  ;;  %v3206_v60 = vrot.slane %v3204_v17, 4 }
 0x1b8   : > { %v7667_v10 = vpop.f32.mrb[30].mxu0  ;;  %v3213_v18 = vshll.u32 %v2904_v55, 16  ;;  %v3209_v15 = vrot.slane %v3207_v32, 5  ;;  %v3217_v21 = vshrl.u32 %v2904_v55, 16  ;;  %v3223_v29 = vshll.u32 %v2905_v49, 16 }
 0x1b9   : > { %v7673_v9 = vpop.f32.mrb[31].mxu0  ;;  %8283 = vst [vmem:[#allocation26_spill] sm:$0xff] %v7703_v51  ;;  %6329 = vmatmul.mubr.bf16.gmra.mrb[124].mxu0 %v5706_v3  ;;  %v5691_v35 = vrot.slane %v3403_v58, 9  ;;  %4990 = vmatprep.mubr.bf16.mxu1 %v5678_v0  ;;  %v3533_v25 = vrot.slane %v3404_v47, 5  ;;  %v3536_v43 = vrot.slane %v3405_v48, 5  ;;  %v5692_v20 = vrot.slane %v3406_v4, 9 }
 0x1ba   : > { %v7700_v12 = vpop.f32.mrb[36].mxu1  ;;  %v3215_v53 = vrot.slane %v3213_v18, 5  ;;  %4991 = vmatmul.mubr.bf16.gmra.mrb[124].mxu1 %v6548_v40  ;;  %v3210_v31 = vor.u32 %v3209_v15, %v3206_v60  ;;  %v3219_v52 = vrot.slane %v3217_v21, 4  ;;  %v3225_v5 = vrot.slane %v3223_v29, 5  ;;  %v2906_v4 = vld [vmem:[#allocation2 + $0xb4] sm:$0xf] }
 0x1bb   : > { %v3540_v7 = vrot.slane %v3407_v56, 5  ;;  %v7705_v1 = vpop.f32.mrb[37].mxu1  ;;  %v3534_v17 = vsel %vm7060_vm13, %v5691_v35, %v3533_v25  ;;  %v3535_v3 = vrot.slane %v3533_v25, 4  ;;  %v3543_v32 = vrot.slane %v3408_v6, 5  ;;  %v2907_v56 = vld [vmem:[#allocation2 + $0xb8] sm:$0xf] }
 0x1bc   : > { %v7711_v55 = vadd.f32 %v7611_v59, %v7607_v19  ;;  %v7715_v58 = vpop.f32.mrb[38].mxu1  ;;  %v3211_v40 = vrot.slane %v3210_v31, 4  ;;  %v3220_v47 = vor.u32 %v3219_v52, %v3215_v53  ;;  %v5970_v59 = vadd.f32 %v7593_v37, %v7575_v57  ;;  %v2908_v15 = vld [vmem:[#allocation2 + $0xbc] sm:$0x1]  ;;  %v3409_v37 = vld [vmem:[#allocation2 + $0x90] sm:$0xe] }
 0x1bd   : > { %v3541_v29 = vsel %vm7060_vm13, %v5692_v20, %v3540_v7  ;;  %v3542_v48 = vrot.slane %v3540_v7, 4  ;;  %v7721_v60 = vpop.f32.mrb[39].mxu1  ;;  %v3537_v6 = vsel %vm7060_vm13, %v3535_v3, %v3536_v43  ;;  %v7729_v19 = vadd.f32 %v7617_v41, %v7615_v24  ;;  %v6549_v43 = vld [vmem:[#allocation2 + $0xa8] sm:$0xff]   ;;  %v3410_v31 = vld [vmem:[#allocation2 + $0x94] sm:$0xf] }
 0x1be   : > { %v5973_v18 = vadd.f32 %v7613_v61, %v7609_v26  ;;  %v3216_v35 = vsel %vm6905_vm7, %v3211_v40, %v3215_v53  ;;  %v3221_v25 = vrot.slane %v3220_v47, 4  ;;  %v5707_v20 = vcombine.low %v3534_v17, %v3537_v6  ;;  %v3411_v7 = vld [vmem:[#allocation2 + $0x98] sm:$0x1]  ;;  %v3412_v53 = vld [vmem:[#allocation2 + $0x9c] sm:$0xe] }
 0x1bf   : > { %v3544_v57 = vsel %vm7060_vm13, %v3542_v48, %v3543_v32  ;;  %v7742_v61 = vadd.f32 %v5970_v59, %v7537_v39  ;;  %v3228_v52 = vshrl.u32 %v2906_v4, 16  ;;  %v3231_v32 = vshll.u32 %v2906_v4, 16  ;;  %v3413_v48 = vld [vmem:[#allocation2 + $0xa0] sm:$0xf] }
 0x1c0   : > { %v5708_v41 = vcombine.low %v3541_v29, %v3544_v57  ;;  %v7745_v26 = vadd.f32 %v5973_v18, %v7553_v63  ;;  %v3226_v17 = vsel %vm6905_vm7, %v3221_v25, %v3225_v5  ;;  %6332 = vmatprep.mubr.bf16.mxu0 %v5707_v20  ;;  %v3237_v40 = vshll.u32 %v2907_v56, 16  ;;  %v3414_v18 = vld [vmem:[#allocation2 + $0xa4] sm:$0x1] }
 0x1c1   : > { %v7713_v49 = vpop.f32.mrb[32].mxu0  ;;  %8284 = vst [vmem:[#allocation27_spill] sm:$0xff] %v7742_v61  ;;  %v3241_v47 = vshrl.u32 %v2907_v56, 16  ;;  %v5679_v39 = vcombine.low %v3216_v35, %v3226_v17  ;;  %v3230_v6 = vrot.slane %v3228_v52, 4  ;;  %v3247_v63 = vshll.u32 %v2908_v15, 16 }
 0x1c2   : > { %v7719_v0 = vpop.f32.mrb[33].mxu0  ;;  %8285 = vst [vmem:[#allocation28_spill] sm:$0xff] %v7745_v26  ;;  %6333 = vmatmul.mubr.bf16.gmra.mrb[128].mxu0 %v5708_v41  ;;  %v5693_v59 = vrot.slane %v3409_v37, 9  ;;  %v3233_v36 = vrot.slane %v3231_v32, 5  ;;  %v3239_v26 = vrot.slane %v3237_v40, 5  ;;  %v3547_v51 = vrot.slane %v3410_v31, 5 }
 0x1c3   : > { %v7733_v21 = vpop.f32.mrb[34].mxu0  ;;  %v7747_v3 = vpop.f32.mrb[40].mxu1  ;;  %v3243_v61 = vrot.slane %v3241_v47, 4  ;;  %4998 = vmatprep.mubr.bf16.mxu1 %v5679_v39  ;;  %v3249_v4 = vrot.slane %v3247_v63, 5  ;;  %v3550_v56 = vrot.slane %v3411_v7, 5  ;;  %v5694_v25 = vrot.slane %v3412_v53, 9 }
 0x1c4   : > { %v7739_v24 = vpop.f32.mrb[35].mxu0  ;;  %v7751_v29 = vpop.f32.mrb[41].mxu1  ;;  %v3554_v20 = vrot.slane %v3413_v48, 5  ;;  %4999 = vmatmul.mubr.bf16.gmra.mrb[128].mxu1 %v6549_v43  ;;  %v3234_v35 = vor.u32 %v3233_v36, %v3230_v6  ;;  %v3548_v37 = vsel %vm7060_vm13, %v5693_v59, %v3547_v51  ;;  %v3549_v41 = vrot.slane %v3547_v51, 4  ;;  %v6550_v40 = vld [vmem:[#allocation2 + $0xb4] sm:$0xff]  }
 0x1c5   : > { %v7753_v57 = vpop.f32.mrb[42].mxu1  ;;  %v3244_v15 = vor.u32 %v3243_v61, %v3239_v26  ;;  %v3557_v32 = vrot.slane %v3414_v18, 5  ;;  %v7767_v7 = vadd.f32 %v7661_v13, %v7657_v38  ;;  %v5976_v51 = vadd.f32 %v7648_v45, %v7619_v34  ;;  %v2909_v47 = vld [vmem:[#allocation2 + $0xc0] sm:$0xf]  ;;  %v2910_v63 = vld [vmem:[#allocation2 + $0xc4] sm:$0xf] }
 0x1c6   : > { %v7755_v5 = vpop.f32.mrb[43].mxu1  ;;  %v3555_v31 = vsel %vm7060_vm13, %v5694_v25, %v3554_v20  ;;  %v3556_v17 = vrot.slane %v3554_v20, 4  ;;  %v3235_v43 = vrot.slane %v3234_v35, 4  ;;  %v3551_v61 = vsel %vm7060_vm13, %v3549_v41, %v3550_v56  ;;  %v2911_v59 = vld [vmem:[#allocation2 + $0xc8] sm:$0x1] }
 0x1c7   : > { %v3245_v36 = vrot.slane %v3244_v15, 4  ;;  %v5709_v39 = vcombine.low %v3548_v37, %v3551_v61  ;;  %v7781_v38 = vadd.f32 %v7673_v9, %v7667_v10  ;;  %v5979_v13 = vadd.f32 %v7655_v28, %v7653_v42  ;;  %v3415_v18 = vld [vmem:[#allocation2 + $0xa8] sm:$0xe]  ;;  %v3416_v20 = vld [vmem:[#allocation2 + $0xac] sm:$0xf] }
 0x1c8   : > { %v3558_v6 = vsel %vm7060_vm13, %v3556_v17, %v3557_v32  ;;  %v3240_v34 = vsel %vm6905_vm7, %v3235_v43, %v3239_v26  ;;  %v7790_v25 = vadd.f32 %v5976_v51, %v7581_v8  ;;  %v3417_v35 = vld [vmem:[#allocation2 + $0xb0] sm:$0x1]  ;;  %v3418_v10 = vld [vmem:[#allocation2 + $0xb4] sm:$0xe]  ;;  %v3252_v28 = vshrl.u32 %v2909_v47, 16 }
 0x1c9   : > { %v3250_v45 = vsel %vm6905_vm7, %v3245_v36, %v3249_v4  ;;  %v5710_v56 = vcombine.low %v3555_v31, %v3558_v6  ;;  %6336 = vmatprep.mubr.bf16.mxu0 %v5709_v39  ;;  %v7793_v42 = vadd.f32 %v5979_v13, %v7591_v22  ;;  %v3255_v15 = vshll.u32 %v2909_v47, 16  ;;  %v3419_v37 = vld [vmem:[#allocation2 + $0xb8] sm:$0xf]  ;;  %v3420_v41 = vld [vmem:[#allocation2 + $0xbc] sm:$0x1] }
 0x1ca   : > { %v7757_v2 = vpop.f32.mrb[36].mxu0  ;;  %8286 = vst [vmem:[#allocation29_spill] sm:$0xff] %v7790_v25  ;;  %v5680_v9 = vcombine.low %v3240_v34, %v3250_v45  ;;  %v3261_v26 = vshll.u32 %v2910_v63, 16  ;;  %v3265_v17 = vshrl.u32 %v2910_v63, 16  ;;  %v3271_v4 = vshll.u32 %v2911_v59, 16 }
 0x1cb   : > { %v7761_v52 = vpop.f32.mrb[37].mxu0  ;;  %8287 = vst [vmem:[#allocation30_spill] sm:$0xff] %v7793_v42  ;;  %6337 = vmatmul.mubr.bf16.gmra.mrb[132].mxu0 %v5710_v56  ;;  %v5695_v31 = vrot.slane %v3415_v18, 9  ;;  %v3254_v8 = vrot.slane %v3252_v28, 4  ;;  %v3257_v43 = vrot.slane %v3255_v15, 5  ;;  %v3561_v36 = vrot.slane %v3416_v20, 5 }
 0x1cc   : > { %v7769_v53 = vpop.f32.mrb[38].mxu0  ;;  %5006 = vmatprep.mubr.bf16.mxu1 %v5680_v9  ;;  %v3564_v61 = vrot.slane %v3417_v35, 5  ;;  %v3263_v22 = vrot.slane %v3261_v26, 5  ;;  %v3267_v39 = vrot.slane %v3265_v17, 4  ;;  %v3273_v47 = vrot.slane %v3271_v4, 5 }
 0x1cd   : > { %v7775_v48 = vpop.f32.mrb[39].mxu0  ;;  %v7795_v32 = vpop.f32.mrb[44].mxu1  ;;  %5007 = vmatmul.mubr.bf16.gmra.mrb[132].mxu1 %v6550_v40  ;;  %v5696_v6 = vrot.slane %v3418_v10, 9  ;;  %v3258_v34 = vor.u32 %v3257_v43, %v3254_v8  ;;  %v3562_v63 = vsel %vm7060_vm13, %v5695_v31, %v3561_v36  ;;  %v3563_v59 = vrot.slane %v3561_v36, 4  ;;  %v2912_v10 = vld [vmem:[#allocation2 + $0xcc] sm:$0xf] }
 0x1ce   : > { %v7797_v51 = vpop.f32.mrb[45].mxu1  ;;  %v3568_v18 = vrot.slane %v3419_v37, 5  ;;  %v3268_v56 = vor.u32 %v3267_v39, %v3263_v22  ;;  %v3571_v20 = vrot.slane %v3420_v41, 5  ;;  %v7807_v35 = vadd.f32 %v7719_v0, %v7713_v49  ;;  %v2913_v9 = vld [vmem:[#allocation2 + $0xd0] sm:$0xf] }
 0x1cf   : > { %v7799_v13 = vpop.f32.mrb[46].mxu1  ;;  %v5982_v40 = vadd.f32 %v7663_v23, %v7659_v44  ;;  %v3259_v15 = vrot.slane %v3258_v34, 4  ;;  %v3565_v26 = vsel %vm7060_vm13, %v3563_v59, %v3564_v61  ;;  %v2914_v41 = vld [vmem:[#allocation2 + $0xd4] sm:$0x1]  ;;  %v7824_v44 = vadd.f32 %v7739_v24, %v7733_v21  ;;  %v3421_v23 = vld [vmem:[#allocation2 + $0xc0] sm:$0xe] }
 0x1d0   : > { %v7803_v45 = vpop.f32.mrb[47].mxu1  ;;  %v3569_v37 = vsel %vm7060_vm13, %v5696_v6, %v3568_v18  ;;  %v3570_v17 = vrot.slane %v3568_v18, 4  ;;  %v3269_v49 = vrot.slane %v3268_v56, 4  ;;  %v5711_v0 = vcombine.low %v3562_v63, %v3565_v26  ;;  %v3422_v8 = vld [vmem:[#allocation2 + $0xc4] sm:$0xf] }
 0x1d1   : > { %v7820_v31 = vadd.f32 %v5982_v40, %v7625_v54  ;;  %v3264_v36 = vsel %vm6905_vm7, %v3259_v15, %v3263_v22  ;;  %v5985_v39 = vadd.f32 %v7694_v14, %v7681_v50  ;;  %v3276_v6 = vshrl.u32 %v2912_v10, 16  ;;  %v3423_v54 = vld [vmem:[#allocation2 + $0xc8] sm:$0x1]  ;;  %v3424_v34 = vld [vmem:[#allocation2 + $0xcc] sm:$0xe]  ;;  %v6551_v24 = vld [vmem:[#allocation2 + $0xc0] sm:$0xff]  }
 0x1d2   : > { %v7811_v28 = vpop.f32.mrb[40].mxu0  ;;  %v3572_v61 = vsel %vm7060_vm13, %v3570_v17, %v3571_v20  ;;  %v3274_v21 = vsel %vm6905_vm7, %v3269_v49, %v3273_v47  ;;  %6340 = vmatprep.mubr.bf16.mxu0 %v5711_v0  ;;  %v3279_v18 = vshll.u32 %v2912_v10, 16  ;;  %v3285_v56 = vshll.u32 %v2913_v9, 16  ;;  %v3425_v40 = vld [vmem:[#allocation2 + $0xd0] sm:$0xf] }
 0x1d3   : > { %v7817_v4 = vpop.f32.mrb[41].mxu0  ;;  %8288 = vst [vmem:[#allocation31_spill] sm:$0xff] %v7820_v31  ;;  %v5712_v59 = vcombine.low %v3569_v37, %v3572_v61  ;;  %v5681_v15 = vcombine.low %v3264_v36, %v3274_v21  ;;  %v7839_v20 = vadd.f32 %v5985_v39, %v7637_v27  ;;  %v3278_v50 = vrot.slane %v3276_v6, 4  ;;  %v3426_v26 = vld [vmem:[#allocation2 + $0xd4] sm:$0x1] }
 0x1d4   : > { %v7826_v43 = vpop.f32.mrb[42].mxu0  ;;  %v3289_v14 = vshrl.u32 %v2913_v9, 16  ;;  %v3281_v31 = vrot.slane %v3279_v18, 5  ;;  %v3287_v42 = vrot.slane %v3285_v56, 5  ;;  %v3295_v47 = vshll.u32 %v2914_v41, 16 }
 0x1d5   : > { %v5908_v63 = vpop.f32.mrb[43].mxu0  ;;  %v7836_v22 = vpop.f32.mrb[48].mxu1  ;;  %6341 = vmatmul.mubr.bf16.gmra.mrb[136].mxu0 %v5712_v59  ;;  %v5697_v49 = vrot.slane %v3421_v23, 9  ;;  %5014 = vmatprep.mubr.bf16.mxu1 %v5681_v15  ;;  %v3575_v37 = vrot.slane %v3422_v8, 5  ;;  %v3578_v61 = vrot.slane %v3423_v54, 5  ;;  %v5698_v25 = vrot.slane %v3424_v34, 9 }
 0x1d6   : > { %v6005_v17 = vpop.f32.mrb[49].mxu1  ;;  %v3291_v10 = vrot.slane %v3289_v14, 4  ;;  %5015 = vmatmul.mubr.bf16.gmra.mrb[136].mxu1 %v6551_v24  ;;  %v3282_v36 = vor.u32 %v3281_v31, %v3278_v50  ;;  %v3297_v27 = vrot.slane %v3295_v47, 5  ;;  %v3582_v39 = vrot.slane %v3425_v40, 5  ;;  %v6552_v14 = vld [vmem:[#allocation2 + $0xcc] sm:$0xff]  }
 0x1d7   : > { %v6007_v0 = vpop.f32.mrb[50].mxu1  ;;  %v3585_v6 = vrot.slane %v3426_v26, 5  ;;  %v3576_v21 = vsel %vm7060_vm13, %v5697_v49, %v3575_v37  ;;  %v3577_v59 = vrot.slane %v3575_v37, 4  ;;  %v5900_v41 = vadd.f32 %v7761_v52, %v7757_v2 }
 0x1d8   : > { %v6008_v16 = vpop.f32.mrb[51].mxu1  ;;  %v3292_v9 = vor.u32 %v3291_v10, %v3287_v42  ;;  %v3283_v23 = vrot.slane %v3282_v36, 4  ;;  %v3583_v8 = vsel %vm7060_vm13, %v5698_v25, %v3582_v39  ;;  %v3584_v54 = vrot.slane %v3582_v39, 4 }
 0x1d9   : > { %v5988_v34 = vadd.f32 %v7705_v1, %v7700_v12  ;;  %v3579_v18 = vsel %vm7060_vm13, %v3577_v59, %v3578_v61  ;;  %v5903_v56 = vadd.f32 %v7775_v48, %v7769_v53  ;;  %v5991_v40 = vadd.f32 %v7721_v60, %v7715_v58 }
 0x1da   : > { %v3293_v24 = vrot.slane %v3292_v9, 4  ;;  %v3288_v52 = vsel %vm6905_vm7, %v3283_v23, %v3287_v42  ;;  %v5713_v25 = vcombine.low %v3576_v21, %v3579_v18  ;;  %v3586_v15 = vsel %vm7060_vm13, %v3584_v54, %v3585_v6 }
 0x1db   : > { %v7860_v12 = vadd.f32 %v5988_v34, %v7671_v33  ;;  %v5714_v53 = vcombine.low %v3583_v8, %v3586_v15  ;;  %v7865_v48 = vadd.f32 %v5991_v40, %v7685_v46  ;;  %v5906_v58 = vadd.f32 %v7817_v4, %v7811_v28 }
 0x1dc   : > { %v3298_v50 = vsel %vm6905_vm7, %v3293_v24, %v3297_v27  ;;  %6344 = vmatprep.mubr.bf16.mxu0 %v5713_v25  ;;  %v5994_v11 = vadd.f32 %v7751_v29, %v7747_v3  ;;  %v5909_v33 = vadd.f32 %v5908_v63, %v7826_v43  ;;  %v5997_v30 = vadd.f32 %v7755_v5, %v7753_v57 }
 0x1dd   : > { %v5910_v31 = vpop.f32.mrb[44].mxu0  ;;  %v5682_v42 = vcombine.low %v3288_v52, %v3298_v50  ;;  %6345 = vmatmul.mubr.bf16.gmra.mrb[140].mxu0 %v5714_v53  ;;  %v6000_v46 = vadd.f32 %v7797_v51, %v7795_v32  ;;  %v6003_v28 = vadd.f32 %v7803_v45, %v7799_v13  ;;  %v6006_v29 = vadd.f32 %v6005_v17, %v7836_v22 }
 0x1de   : > { %v5911_v2 = vpop.f32.mrb[45].mxu0  ;;  %v6010_v26 = vpop.f32.mrb[52].mxu1  ;;  %v7879_v10 = vadd.f32 %v5994_v11, %v7711_v55  ;;  %v7882_v3 = vadd.f32 %v5997_v30, %v7729_v19  ;;  %v6009_v57 = vadd.f32 %v6008_v16, %v6007_v0  ;;  %v8292_v30 = vld [vmem:[#allocation27_spill] sm:$0xff] }
 0x1df   : > { %v5913_v1 = vpop.f32.mrb[46].mxu0  ;;  %v5912_v47 = vadd.f32 %v5911_v2, %v5910_v31  ;;  %v6011_v4 = vpop.f32.mrb[53].mxu1  ;;  %5022 = vmatprep.mubr.bf16.mxu1 %v5682_v42  ;;  %v7886_v43 = vadd.f32 %v6000_v46, %v7767_v7  ;;  %v7889_v32 = vadd.f32 %v6003_v28, %v7781_v38  ;;  %v7892_v55 = vadd.f32 %v6006_v29, %v7807_v35  ;;  %v8289_v35 = vld [vmem:[#allocation24_spill] sm:$0xff]  ;;  %v8290_v31 = vld [vmem:[#allocation25_spill] sm:$0xff]  ;;  %v8291_v2 = vld [vmem:[#allocation26_spill] sm:$0xff] }
 0x1e0   : > { %v5914_v60 = vpop.f32.mrb[47].mxu0  ;;  %v6013_v5 = vpop.f32.mrb[54].mxu1  ;;  %5023 = vmatmul.mubr.bf16.gmra.mrb[140].mxu1 %v6552_v14  ;;  %v6012_v51 = vadd.f32 %v6011_v4, %v6010_v26  ;;  %v7895_v19 = vadd.f32 %v6009_v57, %v7824_v44  ;;  %v8293_v29 = vld [vmem:[#allocation28_spill] sm:$0xff] }
 0x1e1   : > { %v5915_v49 = vadd.f32 %v5914_v60, %v5913_v1  ;;  %v6014_v13 = vpop.f32.mrb[55].mxu1 }
 0x1e2   : > { %v6015_v63 = vadd.f32 %v6014_v13, %v6013_v5  ;;  %v7897_v16 = vadd.f32 %v6012_v51, %v5900_v41 }
 0x1e4   : > { %v7899_v7 = vadd.f32 %v6015_v63, %v5903_v56 }
 0x1e5   : > { %v6068_v45 = vpop.f32.mrb[48].mxu0 }
 0x1e6   : > { %v6069_v22 = vpop.f32.mrb[49].mxu0 }
 0x1e7   : > { %v6070_v17 = vadd.f32 %v6069_v22, %v6068_v45  ;;  %v6071_v0 = vpop.f32.mrb[50].mxu0  ;;  %v6016_v36 = vpop.f32.mrb[56].mxu1  ;;  %v8294_v45 = vld [vmem:[#allocation16_spill] sm:$0xff] }
 0x1e8   : > { %v6072_v37 = vpop.f32.mrb[51].mxu0  ;;  %v6017_v27 = vpop.f32.mrb[57].mxu1 }
 0x1e9   : > { %v7902_v38 = vadd.f32 %v6070_v17, %v7646_v62  ;;  %v6073_v61 = vadd.f32 %v6072_v37, %v6071_v0  ;;  %v6018_v44 = vadd.f32 %v6017_v27, %v6016_v36  ;;  %v6019_v6 = vpop.f32.mrb[58].mxu1  ;;  %v8295_v37 = vld [vmem:[#allocation17_spill] sm:$0xff] }
 0x1ea   : > { %v6020_v9 = vpop.f32.mrb[59].mxu1  ;;  %v8296_v27 = vld [vmem:[#allocation29_spill] sm:$0xff] }
 0x1eb   : > { %v7905_v39 = vadd.f32 %v6073_v61, %v8289_v35  ;;  %v7907_v59 = vadd.f32 %v6018_v44, %v5906_v58  ;;  %v6021_v41 = vadd.f32 %v6020_v9, %v6019_v6  ;;  %v8297_v6 = vld [vmem:[#allocation30_spill] sm:$0xff] }
 0x1ed   : > { %v6074_v21 = vpop.f32.mrb[52].mxu0  ;;  %v7909_v34 = vadd.f32 %v6021_v41, %v5909_v33 }
 0x1ee   : > { %v6075_v23 = vpop.f32.mrb[53].mxu0 }
 0x1ef   : > { %v6076_v8 = vadd.f32 %v6075_v23, %v6074_v21  ;;  %v6077_v54 = vpop.f32.mrb[54].mxu0  ;;  %v6022_v56 = vpop.f32.mrb[60].mxu1 }
 0x1f0   : > { %v6078_v62 = vpop.f32.mrb[55].mxu0  ;;  %v6023_v40 = vpop.f32.mrb[61].mxu1 }
 0x1f1   : > { %v7912_v24 = vadd.f32 %v6076_v8, %v8290_v31  ;;  %v6079_v18 = vadd.f32 %v6078_v62, %v6077_v54  ;;  %v6024_v25 = vadd.f32 %v6023_v40, %v6022_v56  ;;  %v6025_v15 = vpop.f32.mrb[62].mxu1  ;;  %v8298_v40 = vld [vmem:[#allocation18_spill] sm:$0xff] }
 0x1f2   : > { %v6026_v1 = vpop.f32.mrb[63].mxu1 }
 0x1f3   : > { %v7915_v52 = vadd.f32 %v6079_v18, %v8291_v2  ;;  %v7917_v14 = vadd.f32 %v6024_v25, %v5912_v47  ;;  %v6027_v53 = vadd.f32 %v6026_v1, %v6025_v15  ;;  %v8299_v1 = vld [vmem:[#allocation31_spill] sm:$0xff] }
 0x1f5   : > { %v6080_v50 = vpop.f32.mrb[56].mxu0  ;;  %v7919_v11 = vadd.f32 %v6027_v53, %v5915_v49 }
 0x1f6   : > { %v6081_v58 = vpop.f32.mrb[57].mxu0 }
 0x1f7   : > { %v6082_v60 = vadd.f32 %v6081_v58, %v6080_v50  ;;  %v6083_v42 = vpop.f32.mrb[58].mxu0  ;;  %v6028_v28 = vpop.f32.mrb[64].mxu1  ;;  %v8300_v58 = vld [vmem:[#allocation19_spill] sm:$0xff] }
 0x1f8   : > { %v6084_v33 = vpop.f32.mrb[59].mxu0  ;;  %v6029_v4 = vpop.f32.mrb[65].mxu1 }
 0x1f9   : > { %v7922_v26 = vadd.f32 %v6082_v60, %v8292_v30  ;;  %v6085_v46 = vadd.f32 %v6084_v33, %v6083_v42  ;;  %v6030_v5 = vadd.f32 %v6029_v4, %v6028_v28  ;;  %v6031_v51 = vpop.f32.mrb[66].mxu1 }
 0x1fa   : > { %v6032_v47 = vpop.f32.mrb[67].mxu1 }
 0x1fb   : > { %v7925_v57 = vadd.f32 %v6085_v46, %v8293_v29  ;;  %v7928_v63 = vadd.f32 %v6030_v5, %v8294_v45  ;;  %v6033_v22 = vadd.f32 %v6032_v47, %v6031_v51 }
 0x1fd   : > { %v6086_v13 = vpop.f32.mrb[60].mxu0  ;;  %v7931_v61 = vadd.f32 %v6033_v22, %v8295_v37 }
 0x1fe   : > { %v6087_v49 = vpop.f32.mrb[61].mxu0 }
 0x1ff   : > { %v6088_v17 = vadd.f32 %v6087_v49, %v6086_v13  ;;  %v6089_v0 = vpop.f32.mrb[62].mxu0  ;;  %v6034_v21 = vpop.f32.mrb[68].mxu1  ;;  %v8301_v13 = vld [vmem:[#allocation20_spill] sm:$0xff] }
 0x200   : > { %v6090_v36 = vpop.f32.mrb[63].mxu0  ;;  %v6035_v41 = vpop.f32.mrb[69].mxu1 }
 0x201   : > { %v7934_v35 = vadd.f32 %v6088_v17, %v8296_v27  ;;  %v6091_v44 = vadd.f32 %v6090_v36, %v6089_v0  ;;  %v6036_v8 = vadd.f32 %v6035_v41, %v6034_v21  ;;  %v6037_v54 = vpop.f32.mrb[70].mxu1 }
 0x202   : > { %v6038_v31 = vpop.f32.mrb[71].mxu1 }
 0x203   : > { %v7937_v9 = vadd.f32 %v6091_v44, %v8297_v6  ;;  %v7940_v2 = vadd.f32 %v6036_v8, %v8298_v40  ;;  %v6039_v25 = vadd.f32 %v6038_v31, %v6037_v54 }
 0x205   : > { %v6092_v23 = vpop.f32.mrb[64].mxu0  ;;  %v7946_v60 = vadd.f32 %v6039_v25, %v8300_v58 }
 0x206   : > { %v6093_v62 = vpop.f32.mrb[65].mxu0 }
 0x207   : > { %v6094_v18 = vadd.f32 %v6093_v62, %v6092_v23  ;;  %v6095_v56 = vpop.f32.mrb[66].mxu0  ;;  %v6040_v33 = vpop.f32.mrb[72].mxu1 }
 0x208   : > { %v6096_v15 = vpop.f32.mrb[67].mxu0  ;;  %v6041_v30 = vpop.f32.mrb[73].mxu1 }
 0x209   : > { %v7943_v50 = vadd.f32 %v6094_v18, %v8299_v1  ;;  %v6097_v53 = vadd.f32 %v6096_v15, %v6095_v56  ;;  %v6042_v28 = vadd.f32 %v6041_v30, %v6040_v33  ;;  %v6043_v4 = vpop.f32.mrb[74].mxu1 }
 0x20a   : > { %v6044_v5 = vpop.f32.mrb[75].mxu1 }
 0x20b   : > { %v7949_v42 = vadd.f32 %v6097_v53, %v7839_v20  ;;  %v7952_v45 = vadd.f32 %v6042_v28, %v8301_v13  ;;  %v6045_v22 = vadd.f32 %v6044_v5, %v6043_v4  ;;  %v8302_v20 = vld [vmem:[#allocation21_spill] sm:$0xff]  ;;  %v8303_v53 = vld [vmem:[#allocation22_spill] sm:$0xff] }
 0x20d   : > { %v6098_v46 = vpop.f32.mrb[68].mxu0  ;;  %v7958_v37 = vadd.f32 %v6045_v22, %v8302_v20 }
 0x20e   : > { %v6099_v29 = vpop.f32.mrb[69].mxu0 }
 0x20f   : > { %v6100_v51 = vadd.f32 %v6099_v29, %v6098_v46  ;;  %v6101_v47 = vpop.f32.mrb[70].mxu0 }
 0x210   : > { %v6102_v49 = vpop.f32.mrb[71].mxu0 }
 0x211   : > { %v7955_v17 = vadd.f32 %v6100_v51, %v7860_v12  ;;  %v6103_v0 = vadd.f32 %v6102_v49, %v6101_v47 }
 0x213   : > { %v7961_v36 = vadd.f32 %v6103_v0, %v7865_v48 }
 0x215   : > { %v6104_v27 = vpop.f32.mrb[72].mxu0 }
 0x216   : > { %v6105_v44 = vpop.f32.mrb[73].mxu0 }
 0x217   : > { %v6106_v6 = vadd.f32 %v6105_v44, %v6104_v27  ;;  %v6107_v21 = vpop.f32.mrb[74].mxu0 }
 0x218   : > { %v6108_v41 = vpop.f32.mrb[75].mxu0  ;;  %v6046_v12 = vpop.f32.mrb[76].mxu1 }
 0x219   : > { %v7964_v23 = vadd.f32 %v6106_v6, %v7879_v10  ;;  %v6109_v8 = vadd.f32 %v6108_v41, %v6107_v21  ;;  %v6047_v31 = vpop.f32.mrb[77].mxu1 }
 0x21a   : > { %v6048_v56 = vadd.f32 %v6047_v31, %v6046_v12  ;;  %v6049_v48 = vpop.f32.mrb[78].mxu1 }
 0x21b   : > { %v7967_v54 = vadd.f32 %v6109_v8, %v7882_v3  ;;  %v6050_v15 = vpop.f32.mrb[79].mxu1  ;;  %v8304_v3 = vld [vmem:[#allocation23_spill] sm:$0xff] }
 0x21c   : > { %v7970_v58 = vadd.f32 %v6048_v56, %v8303_v53  ;;  %v6051_v33 = vadd.f32 %v6050_v15, %v6049_v48 }
 0x21d   : > { %v6110_v62 = vpop.f32.mrb[76].mxu0 }
 0x21e   : > { %v6111_v18 = vpop.f32.mrb[77].mxu0  ;;  %v7976_v46 = vadd.f32 %v6051_v33, %v8304_v3 }
 0x21f   : > { %v6112_v40 = vadd.f32 %v6111_v18, %v6110_v62  ;;  %v6113_v25 = vpop.f32.mrb[78].mxu0 }
 0x220   : > { %v6114_v1 = vpop.f32.mrb[79].mxu0  ;;  %v6180_v4 = vpop.f32.mrb[80].mxu1 }
 0x221   : > { %v7973_v10 = vadd.f32 %v6112_v40, %v7886_v43  ;;  %v6115_v30 = vadd.f32 %v6114_v1, %v6113_v25  ;;  %v6181_v29 = vpop.f32.mrb[81].mxu1 }
 0x222   : > { %v6182_v51 = vadd.f32 %v6181_v29, %v6180_v4  ;;  %v6183_v47 = vpop.f32.mrb[82].mxu1 }
 0x223   : > { %v7979_v28 = vadd.f32 %v6115_v30, %v7889_v32  ;;  %v6184_v22 = vpop.f32.mrb[83].mxu1 }
 0x224   : > { %v6185_v20 = vadd.f32 %v6184_v22, %v6183_v47  ;;  %v7982_v43 = vadd.f32 %v6182_v51, %v7902_v38 }
 0x225   : > { %v6116_v5 = vpop.f32.mrb[80].mxu0 }
 0x226   : > { %v6117_v13 = vpop.f32.mrb[81].mxu0  ;;  %v7988_v32 = vadd.f32 %v6185_v20, %v7905_v39 }
 0x227   : > { %v6118_v49 = vadd.f32 %v6117_v13, %v6116_v5  ;;  %v6119_v0 = vpop.f32.mrb[82].mxu0 }
 0x228   : > { %v6120_v27 = vpop.f32.mrb[83].mxu0 }
 0x229   : > { %v7985_v44 = vadd.f32 %v6118_v49, %v7892_v55  ;;  %v6121_v6 = vadd.f32 %v6120_v27, %v6119_v0  ;;  %v6186_v41 = vpop.f32.mrb[84].mxu1 }
 0x22a   : > { %v6187_v8 = vpop.f32.mrb[85].mxu1 }
 0x22b   : > { %v7991_v21 = vadd.f32 %v6121_v6, %v7895_v19  ;;  %v6188_v12 = vadd.f32 %v6187_v8, %v6186_v41  ;;  %v6189_v62 = vpop.f32.mrb[86].mxu1 }
 0x22c   : > { %v6190_v18 = vpop.f32.mrb[87].mxu1 }
 0x22d   : > { %v6122_v31 = vpop.f32.mrb[84].mxu0  ;;  %v6191_v38 = vadd.f32 %v6190_v18, %v6189_v62  ;;  %v7994_v40 = vadd.f32 %v6188_v12, %v7912_v24 }
 0x22e   : > { %v6123_v56 = vpop.f32.mrb[85].mxu0 }
 0x22f   : > { %v6124_v55 = vadd.f32 %v6123_v56, %v6122_v31  ;;  %v6125_v48 = vpop.f32.mrb[86].mxu0  ;;  %v7997_v39 = vadd.f32 %v6191_v38, %v7915_v52 }
 0x230   : > { %v6126_v25 = vpop.f32.mrb[87].mxu0 }
 0x231   : > { %v8000_v19 = vadd.f32 %v6124_v55, %v7897_v16  ;;  %v6127_v15 = vadd.f32 %v6126_v25, %v6125_v48 }
 0x233   : > { %v8003_v1 = vadd.f32 %v6127_v15, %v7899_v7 }
 0x234   : > { %v6192_v53 = vpop.f32.mrb[88].mxu1 }
 0x235   : > { %v6193_v33 = vpop.f32.mrb[89].mxu1 }
 0x236   : > { %v6128_v30 = vpop.f32.mrb[88].mxu0  ;;  %v6194_v3 = vadd.f32 %v6193_v33, %v6192_v53  ;;  %v6195_v4 = vpop.f32.mrb[90].mxu1 }
 0x237   : > { %v6129_v24 = vpop.f32.mrb[89].mxu0  ;;  %v6196_v29 = vpop.f32.mrb[91].mxu1 }
 0x238   : > { %v6130_v5 = vadd.f32 %v6129_v24, %v6128_v30  ;;  %v6131_v51 = vpop.f32.mrb[90].mxu0  ;;  %v6197_v47 = vadd.f32 %v6196_v29, %v6195_v4  ;;  %v8006_v52 = vadd.f32 %v6194_v3, %v7922_v26 }
 0x239   : > { %v6132_v13 = vpop.f32.mrb[91].mxu0 }
 0x23a   : > { %v8009_v16 = vadd.f32 %v6130_v5, %v7907_v59  ;;  %v6133_v22 = vadd.f32 %v6132_v13, %v6131_v51  ;;  %v8012_v7 = vadd.f32 %v6197_v47, %v7925_v57 }
 0x23c   : > { %v8015_v49 = vadd.f32 %v6133_v22, %v7909_v34 }
 0x23e   : > { %v6198_v0 = vpop.f32.mrb[92].mxu1 }
 0x23f   : > { %v6199_v20 = vpop.f32.mrb[93].mxu1 }
 0x240   : > { %v6200_v6 = vadd.f32 %v6199_v20, %v6198_v0  ;;  %v6201_v41 = vpop.f32.mrb[94].mxu1 }
 0x241   : > { %v6134_v27 = vpop.f32.mrb[92].mxu0  ;;  %v6202_v12 = vpop.f32.mrb[95].mxu1 }
 0x242   : > { %v6135_v8 = vpop.f32.mrb[93].mxu0  ;;  %v6203_v31 = vadd.f32 %v6202_v12, %v6201_v41  ;;  %v8018_v59 = vadd.f32 %v6200_v6, %v7934_v35 }
 0x243   : > { %v6136_v26 = vadd.f32 %v6135_v8, %v6134_v27  ;;  %v6137_v62 = vpop.f32.mrb[94].mxu0 }
 0x244   : > { %v6138_v18 = vpop.f32.mrb[95].mxu0  ;;  %v8024_v34 = vadd.f32 %v6203_v31, %v7937_v9 }
 0x245   : > { %v8021_v57 = vadd.f32 %v6136_v26, %v7917_v14  ;;  %v6139_v56 = vadd.f32 %v6138_v18, %v6137_v62 }
 0x247   : > { %v8027_v38 = vadd.f32 %v6139_v56, %v7919_v11 }
 0x248   : > { %v6204_v55 = vpop.f32.mrb[96].mxu1 }
 0x249   : > { %v6205_v48 = vpop.f32.mrb[97].mxu1 }
 0x24a   : > { %v6206_v25 = vadd.f32 %v6205_v48, %v6204_v55  ;;  %v6207_v15 = vpop.f32.mrb[98].mxu1 }
 0x24b   : > { %v6140_v53 = vpop.f32.mrb[96].mxu0  ;;  %v6208_v33 = vpop.f32.mrb[99].mxu1 }
 0x24c   : > { %v6141_v30 = vpop.f32.mrb[97].mxu0  ;;  %v6209_v35 = vadd.f32 %v6208_v33, %v6207_v15  ;;  %v8030_v3 = vadd.f32 %v6206_v25, %v7943_v50 }
 0x24d   : > { %v6142_v14 = vadd.f32 %v6141_v30, %v6140_v53  ;;  %v6143_v4 = vpop.f32.mrb[98].mxu0 }
 0x24e   : > { %v6144_v24 = vpop.f32.mrb[99].mxu0  ;;  %v8033_v9 = vadd.f32 %v6209_v35, %v7949_v42 }
 0x24f   : > { %v8036_v11 = vadd.f32 %v6142_v14, %v7928_v63  ;;  %v6145_v29 = vadd.f32 %v6144_v24, %v6143_v4 }
 0x251   : > { %v8039_v5 = vadd.f32 %v6145_v29, %v7931_v61 }
 0x253   : > { %v6210_v51 = vpop.f32.mrb[100].mxu1 }
 0x254   : > { %v6211_v47 = vpop.f32.mrb[101].mxu1 }
 0x255   : > { %v6212_v22 = vadd.f32 %v6211_v47, %v6210_v51  ;;  %v6213_v0 = vpop.f32.mrb[102].mxu1 }
 0x256   : > { %v6146_v13 = vpop.f32.mrb[100].mxu0  ;;  %v6214_v20 = vpop.f32.mrb[103].mxu1 }
 0x257   : > { %v6147_v50 = vpop.f32.mrb[101].mxu0  ;;  %v6215_v41 = vadd.f32 %v6214_v20, %v6213_v0  ;;  %v8042_v42 = vadd.f32 %v6212_v22, %v7955_v17 }
 0x258   : > { %v6148_v27 = vadd.f32 %v6147_v50, %v6146_v13  ;;  %v6149_v6 = vpop.f32.mrb[102].mxu0 }
 0x259   : > { %v6150_v8 = vpop.f32.mrb[103].mxu0  ;;  %v8048_v61 = vadd.f32 %v6215_v41, %v7961_v36 }
 0x25a   : > { %v8045_v63 = vadd.f32 %v6148_v27, %v7940_v2  ;;  %v6151_v12 = vadd.f32 %v6150_v8, %v6149_v6 }
 0x25c   : > { %v8051_v26 = vadd.f32 %v6151_v12, %v7946_v60 }
 0x25e   : > { %v6216_v62 = vpop.f32.mrb[104].mxu1 }
 0x25f   : > { %v6217_v18 = vpop.f32.mrb[105].mxu1 }
 0x260   : > { %v6152_v31 = vpop.f32.mrb[104].mxu0  ;;  %v6218_v55 = vadd.f32 %v6217_v18, %v6216_v62  ;;  %v6219_v48 = vpop.f32.mrb[106].mxu1 }
 0x261   : > { %v6153_v56 = vpop.f32.mrb[105].mxu0  ;;  %v6220_v15 = vpop.f32.mrb[107].mxu1 }
 0x262   : > { %v6154_v25 = vadd.f32 %v6153_v56, %v6152_v31  ;;  %v6155_v17 = vpop.f32.mrb[106].mxu0  ;;  %v6221_v33 = vadd.f32 %v6220_v15, %v6219_v48  ;;  %v8054_v2 = vadd.f32 %v6218_v55, %v7964_v23 }
 0x263   : > { %v6156_v53 = vpop.f32.mrb[107].mxu0 }
 0x264   : > { %v8057_v36 = vadd.f32 %v6154_v25, %v7952_v45  ;;  %v6157_v30 = vadd.f32 %v6156_v53, %v6155_v17  ;;  %v8060_v60 = vadd.f32 %v6221_v33, %v7967_v54 }
 0x266   : > { %v8063_v35 = vadd.f32 %v6157_v30, %v7958_v37 }
 0x269   : > { %v6222_v14 = vpop.f32.mrb[108].mxu1 }
 0x26a   : > { %v6223_v24 = vpop.f32.mrb[109].mxu1 }
 0x26b   : > { %v6158_v4 = vpop.f32.mrb[108].mxu0  ;;  %v6224_v51 = vadd.f32 %v6223_v24, %v6222_v14  ;;  %v6225_v47 = vpop.f32.mrb[110].mxu1 }
 0x26c   : > { %v6159_v29 = vpop.f32.mrb[109].mxu0  ;;  %v6226_v23 = vpop.f32.mrb[111].mxu1 }
 0x26d   : > { %v6160_v13 = vadd.f32 %v6159_v29, %v6158_v4  ;;  %v6161_v22 = vpop.f32.mrb[110].mxu0  ;;  %v6227_v45 = vadd.f32 %v6226_v23, %v6225_v47  ;;  %v8066_v50 = vadd.f32 %v6224_v51, %v7973_v10 }
 0x26e   : > { %v6162_v0 = vpop.f32.mrb[111].mxu0 }
 0x26f   : > { %v8069_v54 = vadd.f32 %v6160_v13, %v7970_v58  ;;  %v6163_v37 = vadd.f32 %v6162_v0, %v6161_v22  ;;  %v8072_v20 = vadd.f32 %v6227_v45, %v7979_v28 }
 0x271   : > { %v8075_v27 = vadd.f32 %v6163_v37, %v7976_v46 }
 0x272   : > { %v6228_v6 = vpop.f32.mrb[112].mxu1 }
 0x273   : > { %v6318_v41 = vpop.f32.mrb[112].mxu0  ;;  %v6229_v12 = vpop.f32.mrb[113].mxu1 }
 0x274   : > { %v5074_v8 = vadd.f32 %v6318_v41, %v7994_v40  ;;  %v5065_v62 = vpop.f32.mrb[113].mxu0  ;;  %v6230_v31 = vadd.f32 %v6229_v12, %v6228_v6  ;;  %v6231_v18 = vpop.f32.mrb[114].mxu1 }
 0x275   : > { %v5066_v10 = vadd.f32 %v5065_v62, %v7982_v43  ;;  %v6319_v56 = vpop.f32.mrb[114].mxu0  ;;  %v6232_v46 = vpop.f32.mrb[115].mxu1 }
 0x276   : > { %5194 = vst [vmem:[%s8081_s18 + $0x10] sm:$0xff] %v5074_v8  ;;  %v5077_v58 = vadd.f32 %v6319_v56, %v7997_v39  ;;  %v5068_v28 = vpop.f32.mrb[115].mxu0  ;;  %v6233_v40 = vadd.f32 %v6232_v46, %v6231_v18  ;;  %v8088_v43 = vadd.f32 %v6230_v31, %v7985_v44  ;;  %v5263_v53 = vmul.f32 %v5074_v8, %v5074_v8 }
 0x277   : > { %5192 = vst [vmem:[%s8081_s18] sm:$0xff] %v5066_v10  ;;  %v5069_v55 = vadd.f32 %v5068_v28, %v7988_v32  ;;  %v5261_v48 = vmul.f32 %v5066_v10, %v5066_v10 }
 0x278   : > { %5195 = vst [vmem:[%s8081_s18 + $0x18] sm:$0xff] %v5077_v58  ;;  %v8093_v15 = vadd.f32 %v6233_v40, %v7991_v21  ;;  %v5264_v44 = vmul.f32 %v5077_v58, %v5077_v58 }
 0x279   : > { %5193 = vst [vmem:[%s8081_s18 + $0x8] sm:$0xff] %v5069_v55  ;;  %v5224_v25 = vadd.f32 %v5069_v55, %v5066_v10  ;;  %v5262_v17 = vmul.f32 %v5069_v55, %v5069_v55 }
 0x27b   : > { %v5225_v39 = vadd.f32 %v5224_v25, %v5074_v8  ;;  %v5293_v33 = vadd.f32 %v5262_v17, %v5261_v48  ;;  %v6322_v30 = vpop.f32.mrb[116].mxu0  ;;  %v6234_v14 = vpop.f32.mrb[116].mxu1 }
 0x27c   : > { %v5090_v32 = vadd.f32 %v6322_v30, %v8018_v59  ;;  %v5081_v4 = vpop.f32.mrb[117].mxu0  ;;  %v6235_v29 = vpop.f32.mrb[117].mxu1 }
 0x27d   : > { %v5294_v24 = vadd.f32 %v5293_v33, %v5263_v53  ;;  %v5082_v51 = vadd.f32 %v5081_v4, %v8006_v52  ;;  %v5226_v47 = vadd.f32 %v5225_v39, %v5077_v58  ;;  %v6323_v13 = vpop.f32.mrb[118].mxu0  ;;  %v6236_v21 = vadd.f32 %v6235_v29, %v6234_v14  ;;  %v6237_v22 = vpop.f32.mrb[118].mxu1 }
 0x27e   : > { %5198 = vst [vmem:[%s8081_s18 + $0x30] sm:$0xff] %v5090_v32  ;;  %v5093_v23 = vadd.f32 %v6323_v13, %v8024_v34  ;;  %v5084_v0 = vpop.f32.mrb[119].mxu0  ;;  %v6238_v6 = vpop.f32.mrb[119].mxu1  ;;  %v5267_v10 = vmul.f32 %v5090_v32, %v5090_v32 }
 0x27f   : > { %5196 = vst [vmem:[%s8081_s18 + $0x20] sm:$0xff] %v5082_v51  ;;  %v5227_v45 = vadd.f32 %v5226_v47, %v5082_v51  ;;  %v5265_v37 = vmul.f32 %v5082_v51, %v5082_v51  ;;  %v5295_v59 = vadd.f32 %v5294_v24, %v5264_v44  ;;  %v5085_v41 = vadd.f32 %v5084_v0, %v8012_v7 }
 0x280   : > { %5199 = vst [vmem:[%s8081_s18 + $0x38] sm:$0xff] %v5093_v23  ;;  %v6239_v8 = vadd.f32 %v6238_v6, %v6237_v22  ;;  %v8103_v52 = vadd.f32 %v6236_v21, %v8000_v19  ;;  %v5268_v40 = vmul.f32 %v5093_v23, %v5093_v23 }
 0x281   : > { %v5296_v12 = vadd.f32 %v5295_v59, %v5265_v37  ;;  %5197 = vst [vmem:[%s8081_s18 + $0x28] sm:$0xff] %v5085_v41  ;;  %v5228_v62 = vadd.f32 %v5227_v45, %v5085_v41  ;;  %v5266_v31 = vmul.f32 %v5085_v41, %v5085_v41 }
 0x282   : > { %v8107_v34 = vadd.f32 %v6239_v8, %v8003_v1 }
 0x283   : > { %v5229_v18 = vadd.f32 %v5228_v62, %v5090_v32  ;;  %v5297_v56 = vadd.f32 %v5296_v12, %v5266_v31  ;;  %v6326_v58 = vpop.f32.mrb[120].mxu0 }
 0x284   : > { %v6240_v46 = vpop.f32.mrb[120].mxu1  ;;  %v5106_v7 = vadd.f32 %v6326_v58, %v8042_v42  ;;  %v5097_v28 = vpop.f32.mrb[121].mxu0 }
 0x285   : > { %v5298_v19 = vadd.f32 %v5297_v56, %v5267_v10  ;;  %v6241_v55 = vpop.f32.mrb[121].mxu1  ;;  %v5098_v48 = vadd.f32 %v5097_v28, %v8030_v3  ;;  %v5230_v25 = vadd.f32 %v5229_v18, %v5093_v23  ;;  %v6327_v17 = vpop.f32.mrb[122].mxu0 }
 0x286   : > { %5202 = vst [vmem:[%s8081_s18 + $0x50] sm:$0xff] %v5106_v7  ;;  %v6242_v1 = vadd.f32 %v6241_v55, %v6240_v46  ;;  %v6243_v53 = vpop.f32.mrb[122].mxu1  ;;  %v5109_v39 = vadd.f32 %v6327_v17, %v8048_v61  ;;  %v5100_v33 = vpop.f32.mrb[123].mxu0  ;;  %v5271_v47 = vmul.f32 %v5106_v7, %v5106_v7 }
 0x287   : > { %5200 = vst [vmem:[%s8081_s18 + $0x40] sm:$0xff] %v5098_v48  ;;  %v5231_v30 = vadd.f32 %v5230_v25, %v5098_v48  ;;  %v5269_v14 = vmul.f32 %v5098_v48, %v5098_v48  ;;  %v5299_v42 = vadd.f32 %v5298_v19, %v5268_v40  ;;  %v6244_v32 = vpop.f32.mrb[123].mxu1  ;;  %v5101_v4 = vadd.f32 %v5100_v33, %v8033_v9 }
 0x288   : > { %5203 = vst [vmem:[%s8081_s18 + $0x58] sm:$0xff] %v5109_v39  ;;  %v6245_v44 = vadd.f32 %v6244_v32, %v6243_v53  ;;  %v8117_v3 = vadd.f32 %v6242_v1, %v8009_v16  ;;  %v5272_v23 = vmul.f32 %v5109_v39, %v5109_v39 }
 0x289   : > { %v5300_v24 = vadd.f32 %v5299_v42, %v5269_v14  ;;  %5201 = vst [vmem:[%s8081_s18 + $0x48] sm:$0xff] %v5101_v4  ;;  %v5232_v29 = vadd.f32 %v5231_v30, %v5101_v4  ;;  %v5270_v51 = vmul.f32 %v5101_v4, %v5101_v4 }
 0x28a   : > { %v8121_v61 = vadd.f32 %v6245_v44, %v8015_v49 }
 0x28b   : > { %v5233_v13 = vadd.f32 %v5232_v29, %v5106_v7  ;;  %v5301_v21 = vadd.f32 %v5300_v24, %v5270_v51 }
 0x28c   : > { %v6330_v22 = vpop.f32.mrb[124].mxu0 }
 0x28d   : > { %v5302_v9 = vadd.f32 %v5301_v21, %v5271_v47  ;;  %v5122_v0 = vadd.f32 %v6330_v22, %v8066_v50  ;;  %v5113_v45 = vpop.f32.mrb[125].mxu0  ;;  %v5234_v16 = vadd.f32 %v5233_v13, %v5109_v39  ;;  %v6246_v37 = vpop.f32.mrb[124].mxu1 }
 0x28e   : > { %v5114_v59 = vadd.f32 %v5113_v45, %v8054_v2  ;;  %v6331_v6 = vpop.f32.mrb[126].mxu0  ;;  %v6247_v49 = vpop.f32.mrb[125].mxu1 }
 0x28f   : > { %5206 = vst [vmem:[%s8081_s18 + $0x70] sm:$0xff] %v5122_v0  ;;  %v5303_v41 = vadd.f32 %v5302_v9, %v5272_v23  ;;  %v5125_v8 = vadd.f32 %v6331_v6, %v8072_v20  ;;  %v5116_v12 = vpop.f32.mrb[127].mxu0  ;;  %v6248_v62 = vadd.f32 %v6247_v49, %v6246_v37  ;;  %v6249_v18 = vpop.f32.mrb[126].mxu1  ;;  %v5275_v40 = vmul.f32 %v5122_v0, %v5122_v0 }
 0x290   : > { %5204 = vst [vmem:[%s8081_s18 + $0x60] sm:$0xff] %v5114_v59  ;;  %v5235_v31 = vadd.f32 %v5234_v16, %v5114_v59  ;;  %v5273_v10 = vmul.f32 %v5114_v59, %v5114_v59  ;;  %v5117_v50 = vadd.f32 %v5116_v12, %v8060_v60  ;;  %v6250_v56 = vpop.f32.mrb[127].mxu1 }
 0x291   : > { %5207 = vst [vmem:[%s8081_s18 + $0x78] sm:$0xff] %v5125_v8  ;;  %v6251_v46 = vadd.f32 %v6250_v56, %v6249_v18  ;;  %v4993_v28 = vadd.f32 %v6248_v62, %v8021_v57  ;;  %v5276_v25 = vmul.f32 %v5125_v8, %v5125_v8 }
 0x292   : > { %v5304_v58 = vadd.f32 %v5303_v41, %v5273_v10  ;;  %5205 = vst [vmem:[%s8081_s18 + $0x68] sm:$0xff] %v5117_v50  ;;  %v5236_v2 = vadd.f32 %v5235_v31, %v5117_v50  ;;  %v5274_v7 = vmul.f32 %v5117_v50, %v5117_v50 }
 0x293   : > { %v4996_v55 = vadd.f32 %v6251_v46, %v8027_v38 }
 0x294   : > { %v5237_v20 = vadd.f32 %v5236_v2, %v5122_v0  ;;  %v5305_v19 = vadd.f32 %v5304_v58, %v5274_v7 }
 0x295   : > { %v6334_v48 = vpop.f32.mrb[128].mxu0 }
 0x296   : > { %v5306_v17 = vadd.f32 %v5305_v19, %v5275_v40  ;;  %v5138_v60 = vadd.f32 %v6334_v48, %v8103_v52  ;;  %v5129_v1 = vpop.f32.mrb[129].mxu0  ;;  %v5238_v53 = vadd.f32 %v5237_v20, %v5125_v8 }
 0x297   : > { %v5130_v39 = vadd.f32 %v5129_v1, %v8088_v43  ;;  %v6335_v33 = vpop.f32.mrb[130].mxu0  ;;  %v6252_v30 = vpop.f32.mrb[128].mxu1 }
 0x298   : > { %5210 = vst [vmem:[%s8081_s18 + $0x90] sm:$0xff] %v5138_v60  ;;  %v5307_v57 = vadd.f32 %v5306_v17, %v5276_v25  ;;  %v5141_v14 = vadd.f32 %v6335_v33, %v8107_v34  ;;  %v5132_v42 = vpop.f32.mrb[131].mxu0  ;;  %v6253_v32 = vpop.f32.mrb[129].mxu1  ;;  %v5279_v34 = vmul.f32 %v5138_v60, %v5138_v60 }
 0x299   : > { %5208 = vst [vmem:[%s8081_s18 + $0x80] sm:$0xff] %v5130_v39  ;;  %v5239_v38 = vadd.f32 %v5238_v53, %v5130_v39  ;;  %v5277_v4 = vmul.f32 %v5130_v39, %v5130_v39  ;;  %v5133_v44 = vadd.f32 %v5132_v42, %v8093_v15  ;;  %v6254_v52 = vadd.f32 %v6253_v32, %v6252_v30  ;;  %v6255_v24 = vpop.f32.mrb[130].mxu1 }
 0x29a   : > { %5211 = vst [vmem:[%s8081_s18 + $0x98] sm:$0xff] %v5141_v14  ;;  %v6256_v51 = vpop.f32.mrb[131].mxu1  ;;  %v5280_v15 = vmul.f32 %v5141_v14, %v5141_v14 }
 0x29b   : > { %v5308_v29 = vadd.f32 %v5307_v57, %v5277_v4  ;;  %5209 = vst [vmem:[%s8081_s18 + $0x88] sm:$0xff] %v5133_v44  ;;  %v5240_v43 = vadd.f32 %v5239_v38, %v5133_v44  ;;  %v5278_v47 = vmul.f32 %v5133_v44, %v5133_v44  ;;  %v6257_v13 = vadd.f32 %v6256_v51, %v6255_v24 }
 0x29c   : > { %v5001_v21 = vadd.f32 %v6254_v52, %v8036_v11 }
 0x29d   : > { %v5241_v22 = vadd.f32 %v5240_v43, %v5138_v60  ;;  %v5309_v23 = vadd.f32 %v5308_v29, %v5278_v47  ;;  %v5004_v0 = vadd.f32 %v6257_v13, %v8039_v5 }
 0x29e   : > { %v6338_v9 = vpop.f32.mrb[132].mxu0 }
 0x29f   : > { %v5310_v45 = vadd.f32 %v5309_v23, %v5279_v34  ;;  %v5154_v16 = vadd.f32 %v6338_v9, %v4993_v28  ;;  %v5145_v37 = vpop.f32.mrb[133].mxu0  ;;  %v5242_v59 = vadd.f32 %v5241_v22, %v5141_v14 }
 0x2a0   : > { %v6258_v6 = vpop.f32.mrb[132].mxu1  ;;  %v5146_v49 = vadd.f32 %v5145_v37, %v8117_v3  ;;  %v6339_v41 = vpop.f32.mrb[134].mxu0 }
 0x2a1   : > { %5214 = vst [vmem:[%s8081_s18 + $0xb0] sm:$0xff] %v5154_v16  ;;  %v6259_v11 = vpop.f32.mrb[133].mxu1  ;;  %v5311_v8 = vadd.f32 %v5310_v45, %v5280_v15  ;;  %v5157_v12 = vadd.f32 %v6339_v41, %v4996_v55  ;;  %v5148_v62 = vpop.f32.mrb[135].mxu0  ;;  %v5283_v28 = vmul.f32 %v5154_v16, %v5154_v16 }
 0x2a2   : > { %v6260_v31 = vadd.f32 %v6259_v11, %v6258_v6  ;;  %5212 = vst [vmem:[%s8081_s18 + $0xa0] sm:$0xff] %v5146_v49  ;;  %v5243_v10 = vadd.f32 %v5242_v59, %v5146_v49  ;;  %v5281_v5 = vmul.f32 %v5146_v49, %v5146_v49  ;;  %v6261_v18 = vpop.f32.mrb[134].mxu1  ;;  %v5149_v50 = vadd.f32 %v5148_v62, %v8121_v61 }
 0x2a3   : > { %5215 = vst [vmem:[%s8081_s18 + $0xb8] sm:$0xff] %v5157_v12  ;;  %v6262_v56 = vpop.f32.mrb[135].mxu1  ;;  %v5284_v55 = vmul.f32 %v5157_v12, %v5157_v12 }
 0x2a4   : > { %v5312_v58 = vadd.f32 %v5311_v8, %v5281_v5  ;;  %v6263_v46 = vadd.f32 %v6262_v56, %v6261_v18  ;;  %5213 = vst [vmem:[%s8081_s18 + $0xa8] sm:$0xff] %v5149_v50  ;;  %v5244_v3 = vadd.f32 %v5243_v10, %v5149_v50  ;;  %v5282_v2 = vmul.f32 %v5149_v50, %v5149_v50 }
 0x2a5   : > { %v5009_v7 = vadd.f32 %v6260_v31, %v8045_v63 }
 0x2a6   : > { %v5245_v40 = vadd.f32 %v5244_v3, %v5154_v16  ;;  %v5313_v20 = vadd.f32 %v5312_v58, %v5282_v2  ;;  %v5012_v19 = vadd.f32 %v6263_v46, %v8051_v26 }
 0x2a8   : > { %v5314_v48 = vadd.f32 %v5313_v20, %v5283_v28  ;;  %v6342_v25 = vpop.f32.mrb[136].mxu0  ;;  %v5246_v61 = vadd.f32 %v5245_v40, %v5157_v12 }
 0x2a9   : > { %v5170_v17 = vadd.f32 %v6342_v25, %v5009_v7  ;;  %v5161_v60 = vpop.f32.mrb[137].mxu0  ;;  %v6264_v1 = vpop.f32.mrb[136].mxu1 }
 0x2aa   : > { %v5162_v53 = vadd.f32 %v5161_v60, %v5001_v21  ;;  %v5315_v39 = vadd.f32 %v5314_v48, %v5284_v55  ;;  %v6343_v33 = vpop.f32.mrb[138].mxu0  ;;  %v6265_v63 = vpop.f32.mrb[137].mxu1 }
 0x2ab   : > { %5218 = vst [vmem:[%s8081_s18 + $0xd0] sm:$0xff] %v5170_v17  ;;  %v5173_v30 = vadd.f32 %v6343_v33, %v5012_v19  ;;  %v5164_v57 = vpop.f32.mrb[139].mxu0  ;;  %v6266_v14 = vadd.f32 %v6265_v63, %v6264_v1  ;;  %v6267_v32 = vpop.f32.mrb[138].mxu1  ;;  %v5287_v43 = vmul.f32 %v5170_v17, %v5170_v17 }
 0x2ac   : > { %5216 = vst [vmem:[%s8081_s18 + $0xc0] sm:$0xff] %v5162_v53  ;;  %v5247_v26 = vadd.f32 %v5246_v61, %v5162_v53  ;;  %v5285_v42 = vmul.f32 %v5162_v53, %v5162_v53  ;;  %v5165_v38 = vadd.f32 %v5164_v57, %v5004_v0  ;;  %v6268_v4 = vpop.f32.mrb[139].mxu1 }
 0x2ad   : > { %5219 = vst [vmem:[%s8081_s18 + $0xd8] sm:$0xff] %v5173_v30  ;;  %v6269_v52 = vadd.f32 %v6268_v4, %v6267_v32  ;;  %v5017_v51 = vadd.f32 %v6266_v14, %v8057_v36  ;;  %v5288_v22 = vmul.f32 %v5173_v30, %v5173_v30 }
 0x2ae   : > { %v5316_v44 = vadd.f32 %v5315_v39, %v5285_v42  ;;  %5217 = vst [vmem:[%s8081_s18 + $0xc8] sm:$0xff] %v5165_v38  ;;  %v5248_v24 = vadd.f32 %v5247_v26, %v5165_v38  ;;  %v5286_v29 = vmul.f32 %v5165_v38, %v5165_v38 }
 0x2af   : > { %v5020_v21 = vadd.f32 %v6269_v52, %v8063_v35 }
 0x2b0   : > { %v5249_v47 = vadd.f32 %v5248_v24, %v5170_v17  ;;  %v5317_v13 = vadd.f32 %v5316_v44, %v5286_v29  ;;  %v6346_v34 = vpop.f32.mrb[140].mxu0 }
 0x2b1   : > { %v5177_v9 = vpop.f32.mrb[141].mxu0 }
 0x2b2   : > { %v5318_v23 = vadd.f32 %v5317_v13, %v5287_v43  ;;  %v5250_v0 = vadd.f32 %v5249_v47, %v5173_v30  ;;  %v5178_v45 = vadd.f32 %v5177_v9, %v5017_v51  ;;  %v6347_v16 = vpop.f32.mrb[142].mxu0 }
 0x2b3   : > { %v6270_v15 = vpop.f32.mrb[140].mxu1  ;;  %v5180_v36 = vpop.f32.mrb[143].mxu0 }
 0x2b4   : > { %v6271_v37 = vpop.f32.mrb[141].mxu1  ;;  %v5319_v59 = vadd.f32 %v5318_v23, %v5288_v22  ;;  %5220 = vst [vmem:[%s8081_s18 + $0xe0] sm:$0xff] %v5178_v45  ;;  %v5251_v49 = vadd.f32 %v5250_v0, %v5178_v45  ;;  %v5289_v41 = vmul.f32 %v5178_v45, %v5178_v45  ;;  %v5181_v35 = vadd.f32 %v5180_v36, %v5020_v21 }
 0x2b5   : > { %v6272_v6 = vadd.f32 %v6271_v37, %v6270_v15  ;;  %v6273_v11 = vpop.f32.mrb[142].mxu1 }
 0x2b6   : > { %v6274_v8 = vpop.f32.mrb[143].mxu1  ;;  %v5320_v62 = vadd.f32 %v5319_v59, %v5289_v41  ;;  %5221 = vst [vmem:[%s8081_s18 + $0xe8] sm:$0xff] %v5181_v35  ;;  %v5252_v10 = vadd.f32 %v5251_v49, %v5181_v35  ;;  %v5290_v5 = vmul.f32 %v5181_v35, %v5181_v35 }
 0x2b7   : > { %v5025_v12 = vadd.f32 %v6272_v6, %v8069_v54  ;;  %v6275_v31 = vadd.f32 %v6274_v8, %v6273_v11 }
 0x2b8   : > { %v5321_v56 = vadd.f32 %v5320_v62, %v5290_v5 }
 0x2b9   : > { %v5186_v18 = vadd.f32 %v6346_v34, %v5025_v12  ;;  %v5028_v50 = vadd.f32 %v6275_v31, %v8075_v27 }
 0x2bb   : > { %5222 = vst [vmem:[%s8081_s18 + $0xf0] sm:$0xff] %v5186_v18  ;;  %v5291_v54 = vmul.f32 %v5186_v18, %v5186_v18  ;;  %v5189_v58 = vadd.f32 %v6347_v16, %v5028_v50  ;;  %v5253_v46 = vadd.f32 %v5252_v10, %v5186_v18 }
 0x2bd   : > { %5223 = vst [vmem:[%s8081_s18 + $0xf8] sm:$0xff] %v5189_v58  ;;  %v5292_v3 = vmul.f32 %v5189_v58, %v5189_v58  ;;  %v5254_v2 = vadd.f32 %v5253_v46, %v5189_v58  ;;  %v5322_v7 = vadd.f32 %v5321_v56, %v5291_v54 }
 0x2be   : > { %6624 = shalt.err (!%p6621_p7)
}
 0x2bf   : > { %s6625_s23 = scalar_lea.hbm %s8166_s5, 4096  ;;  %s6629_s7 = scalar_lea.hbm %s8247_s2, 8192 }
 0x2c0   : > { %p6626_p9 = scmp.ne.s32.totalorder %s8166_s5, %s6625_s23  ;;  %p6630_p5 = scmp.lt.u32.totalorder %s8166_s5, %s8247_s2 }
 0x2c1   : > { %p6631_p11 = scmp.lt.u32.totalorder %s6629_s7, %s6625_s23  ;;  %p6633_p4 = scmp.lt.u32.totalorder %s6625_s23, %s8166_s5 }
 0x2c2   : > { %p6627_p2 = pnand %p6626_p9, %p6837_p12 }
 0x2c3   : > { %p6632_p1 = por %p6631_p11, %p6630_p5 }
 0x2c4   : > { %p6628_p0 = pneg %p6627_p2 }
 0x2c5   : > { %p6634_p6 = por %p6633_p4, %p6632_p1 }
 0x2c7   : > { %p6635_p8 = pnand %p6634_p6, %p6628_p0 }
 0x2c9   : > { %6638 = shalt.err (!%p6635_p8)
}
 0x2ca   : > { %s6723_s18 = smov 128   ;;  %s6724_s20 = smov 8   ;;  %v5255_v27 = vrot.slane %v5254_v2, 4  ;;  %v5323_v28 = vadd.f32 %v5322_v7, %v5292_v3 }
 0x2cb   : > { %6370 = dma.vmem_to_hbm [thread:$0]  (%p6837_p12), %s8168_s4, 4096, %s8166_s5, %s5333_s10, %s6723_s18, %s6723_s18, %s6724_s20  }
 0x2cc   : > { %v5256_v40 = vadd.f32 %v5255_v27, %v5254_v2  ;;  %v5324_v20 = vrot.slane %v5323_v28, 4  ;;  %s5490_s25 = sshll.u32 %s6885_s6, 1  ;;  %s5791_s26 = sshll.u32 %s6767_s16, 5 }
 0x2cd   : > { %s214_s11 = scalar_lea.vmem [#allocation10], %s5490_s25  ;;  %s8201_s10 = scalar_lea.hbm %s8248_s3, %s5791_s26 }
 0x2ce   : > { %v5257_v19 = vrot.slane %v5256_v40, 2  ;;  %v5325_v55 = vadd.f32 %v5324_v20, %v5323_v28  ;;  %s5367_s27 = sshll.u32 %s214_s11, 4  ;;  %s5338_s28 = scalar_lea.sflag [#allocation11], %s6885_s6  ;;  %s8203_s27 = int_to_ptr.vmem [resolvable:$true] %s5367_s27 }
 0x2cf   : > { %s6639_s29 = scalar_lea.vmem %s8203_s27, 32  ;;  %s6725_s16 = smov [#allocation10]  }
 0x2d0   : > { %v5258_v48 = vadd.f32 %v5257_v19, %v5256_v40  ;;  %v5326_v25 = vrot.slane %v5325_v55, 2  ;;  %p6640_p10 = scmp.ne.s32.totalorder %s8203_s27, %s6639_s29  ;;  %s6643_s23 = sshll.u32 %s6725_s16, 4  ;;  %s6644_s23 = int_to_ptr.vmem [resolvable:$false] %s6643_s23 }
 0x2d1   : > { %s6645_s30 = scalar_lea.vmem %s6644_s23, 64  ;;  %p6646_p7 = scmp.lt.s32.totalorder %s8203_s27, %s6644_s23 }
 0x2d2   : > { %v5259_v61 = vrot.slane %v5258_v48, 1  ;;  %v5327_v17 = vadd.f32 %v5326_v25, %v5325_v55  ;;  %p6641_p13 = pnand %p6640_p10, %p6837_p12  ;;  %p6647_p9 = scmp.lt.s32.totalorder %s6645_s30, %s6639_s29 }
 0x2d4   : > { %v5260_v60 = vadd.f32 %v5259_v61, %v5258_v48  ;;  %v5328_v1 = vrot.slane %v5327_v17, 1  ;;  %p6642_p3 = pneg %p6641_p13  ;;  %p6648_p2 = por %p6647_p9, %p6646_p7 }
 0x2d6   : > { %v5329_v53 = vadd.f32 %v5328_v1, %v5327_v17  ;;  %5330 = vst [vmem:[%s214_s11] sm:$0x1] %v5260_v60  ;;  %p6649_p0 = pnand %p6648_p2, %p6642_p3 }
 0x2d8   : > { %5331 = vst [vmem:[%s214_s11 + $0x1] sm:$0x1] %v5329_v53 }
 0x2d9   : > { %6652 = shalt.err (!%p6649_p0)
}
 0x2da   : > { %s6653_s6 = scalar_lea.hbm %s8201_s10, 32  ;;  %s6657_s8 = scalar_lea.hbm %s8248_s3, 64 }
 0x2db   : > { %p6654_p5 = scmp.ne.s32.totalorder %s8201_s10, %s6653_s6  ;;  %p6658_p4 = scmp.lt.u32.totalorder %s8201_s10, %s8248_s3 }
 0x2dc   : > { %p6659_p6 = scmp.lt.u32.totalorder %s6657_s8, %s6653_s6  ;;  %p6661_p10 = scmp.lt.u32.totalorder %s6653_s6, %s8201_s10 }
 0x2dd   : > { %p6655_p11 = pnand %p6654_p5, %p6837_p12 }
 0x2de   : > { %p6660_p8 = por %p6659_p6, %p6658_p4 }
 0x2df   : > { %p6656_p1 = pneg %p6655_p11 }
 0x2e0   : > { %p6662_p13 = por %p6661_p10, %p6660_p8 }
 0x2e2   : > { %p6663_p3 = pnand %p6662_p13, %p6656_p1 }
 0x2e4   : > { %6666 = shalt.err (!%p6663_p3)
}
 0x2e5   : > { %6371 = dma.vmem_to_hbm [thread:$0]  (%p6837_p12), %s8203_s27, 32, %s8201_s10, %s5338_s28  }
 0x2e6 PF: > { %s5379_s20 = sand.u32 1, %s6701_s12   ;;  %p8305_p7 = scmp.ne.s32.totalorder %s8253_s19, 0 }
 0x2e7   : > { %p8306_p9 = scmp.ge.s32.totalorder %s6713_s15, 2  ;;  %s5380_s25 = scalar_lea.sflag [#allocation6], %s5379_s20 }
 0x2e9   : > { %p6383_p2 = pnand %p8306_p9, %p8305_p7 }
 0x2eb   : > { %6692 = dma.done.wait (!%p6383_p2), %s5380_s25, 4096  }
 0x2ec   : > { %6694 = vsyncadd (!%p6383_p2), %s5380_s25, 4294963200  ;;  %s5389_s26 = scalar_lea.sflag [#allocation11], %s5379_s20 }
 0x2ed   : > { %6696 = dma.done.wait (!%p6383_p2), %s5389_s26, 32  }
 0x2ee   : > { %6698 = vsyncadd (!%p6383_p2), %s5389_s26, 4294967264  ;;  %p21_p12 = scmp.ge.s32.totalorder %s6802_s24, 4   ;;  %s8307_s12 = smov %s6705_s13 }
 0x2ef   : > { %s8308_s13 = smov %s6709_s14  ;;  %s8309_s14 = smov %s6833_s17 }
 0x2f0   : > { %s8310_s15 = smov %s6802_s24  ;;  %23 = sbr.rel (!%p21_p12) target bundleno = 8 (0x8), region = 97 }
 0x2f7   :  { %5394 = vsyncpa [#allocation5], 1 }
 0x2f8   :  { %5396 = vsyncpa [#allocation5 + $0x1], 1 }
 0x2f9   :  { %5397 = vsyncpa [#allocation8], 1 }
 0x2fa   :  { %5398 = vsyncpa [#allocation6], 1 }
 0x2fb   :  { %5400 = vsyncpa [#allocation6 + $0x1], 1 }
 0x2fc   :  { %5401 = vsyncpa [#allocation11], 1 }
 0x2fd   :  { %5403 = vsyncpa [#allocation11 + $0x1], 1 }

</bundles_post_ra>
